<compile_context>
chip_gen: v6e
topology: v6e:2x2x1
jax: 0.10.0
libtpu: 0.0.40
codegen_flags: <defaults>
</compile_context>

<pallas_src>
import functools

import jax
import jax.numpy as jnp
from jax import lax
from jax.experimental import pallas as pl
from jax.experimental.pallas import tpu as pltpu


def _round_up(x, m):
    return (x + m - 1) // m * m


def _split_rows(n, max_tile, align):
    """Split n rows into >=2 balanced tiles (v7x megacore) of size <= max_tile,
    each a multiple of `align`.  Returns (tile, num_tiles, padded_n)."""
    n = max(int(n), 1)
    nt = max(2, -(-n // max_tile))
    tile = _round_up(-(-n // nt), align)
    nt = -(-n // tile)
    return tile, nt, nt * tile


# Per-grid-step VMEM budget (double-buffered blocks + live f32 temporaries).
# 12 MiB is comfortably under v7x's 32 MiB default scoped limit and v5e's 16 MiB.
_GCN_VMEM_BUDGET = 12 * 2**20


def _gcn_step_vmem_bytes(tm, F, H):
    x_b = 2 * tm * F * 2                      # bf16 x, double-buffered
    o_b = 2 * tm * H * 2                      # bf16 h, double-buffered
    w_b = 2 * (2 * F * H + 2 * H * H) * 2     # bf16 weights (worst case 2 buffers)
    ln_b = 2 * 4 * H * 4                      # LN gains/biases, f32
    tmp_b = 8 * tm * H * 4                    # live f32 temporaries (y0, y1, y, h1, ...)
    return x_b + o_b + w_b + ln_b + tmp_b


# ----------------------------------------------------------------------------
# Kernel 1: fused 2x (TypedLinear + LayerNorm + ReLU) over node tiles in the
#           ORIGINAL node order.  Per-row type select (rows < n_user -> type 1).
# ----------------------------------------------------------------------------
def _gcn2_kernel(x_ref, w1_ref, g1_ref, b1_ref, w2_ref, g2_ref, b2_ref, o_ref,
                 *, n_user):
    tm = x_ref.shape[0]
    row0 = pl.program_id(0) * tm
    rows = row0 + lax.broadcasted_iota(jnp.int32, (tm, 1), 0)
    is_user = rows < n_user                       # reference ntype-overwrite bug

    def typed_linear_ln_relu(xb, w_ref, g_ref, b_ref):
        # Both typed projections + per-row select (see header: MXU filler under
        # the DMA-bound regime; avoids all pad/reorder HBM copies).
        y0 = jnp.dot(xb, w_ref[0], preferred_element_type=jnp.float32)
        y1 = jnp.dot(xb, w_ref[1], preferred_element_type=jnp.float32)
        y = jnp.where(is_user, y1, y0)            # (tm, H) f32
        m = jnp.mean(y, axis=-1, keepdims=True)
        v = jnp.maximum(jnp.mean(y * y, axis=-1, keepdims=True) - m * m, 0.0)
        h = (y - m) * lax.rsqrt(v + 1e-5) * g_ref[...] + b_ref[...]
        return jnp.maximum(h, 0.0)

    h1 = typed_linear_ln_relu(x_ref[...], w1_ref, g1_ref, b1_ref)
    h2 = typed_linear_ln_relu(h1.astype(jnp.bfloat16), w2_ref, g2_ref, b2_ref)
    o_ref[...] = h2.astype(o_ref.dtype)           # bf16 writeback


def hetero_gcn_pallas(params, x_item, x_user, *, tm_max=1024):
    """Fused 2-layer HeteroGCN.

    Returns h_pad: (N_pad, H) bf16 whose rows [0, N) are in the ORIGINAL
    [item; user] node order; only trailing (zero-input) pad rows follow.
    """
    n_item, F = x_item.shape
    n_user = x_user.shape[0]
    N = n_item + n_user
    H = params["w1"].shape[-1]

    tm, nt, n_pad = _split_rows(N, tm_max, 16)    # 16-row align: bf16 sublane packing
    while _gcn_step_vmem_bytes(tm, F, H) > _GCN_VMEM_BUDGET and tm > 16:
        tm = max(16, _round_up(tm // 2, 16))
    nt = -(-N // tm)
    n_pad = nt * tm

    # Single padded bf16 input buffer (no concat -> slice -> pad -> concat chain).
    xb = jnp.zeros((n_pad, F), jnp.bfloat16)
    xb = lax.dynamic_update_slice(xb, x_item.astype(jnp.bfloat16), (0, 0))
    xb = lax.dynamic_update_slice(xb, x_user.astype(jnp.bfloat16), (n_item, 0))

    w1 = params["w1"].astype(jnp.bfloat16)        # (2, F, H)
    w2 = params["w2"].astype(jnp.bfloat16)        # (2, H, H)
    g1 = params["g1"].reshape(1, H).astype(jnp.float32)
    b1 = params["b1"].reshape(1, H).astype(jnp.float32)
    g2 = params["g2"].reshape(1, H).astype(jnp.float32)
    b2 = params["b2"].reshape(1, H).astype(jnp.float32)

    h_pad = pl.pallas_call(
        functools.partial(_gcn2_kernel, n_user=n_user),
        out_shape=jax.ShapeDtypeStruct((n_pad, H), jnp.bfloat16),
        grid=(nt,),
        in_specs=[
            pl.BlockSpec((tm, F), lambda i: (i, 0)),        # x tile (bf16)
            pl.BlockSpec((2, F, H), lambda i: (0, 0, 0)),   # W1 (both types; DMA'd once)
            pl.BlockSpec((1, H), lambda i: (0, 0)),         # LN1 gamma
            pl.BlockSpec((1, H), lambda i: (0, 0)),         # LN1 beta
            pl.BlockSpec((2, H, H), lambda i: (0, 0, 0)),   # W2 (both types)
            pl.BlockSpec((1, H), lambda i: (0, 0)),         # LN2 gamma
            pl.BlockSpec((1, H), lambda i: (0, 0)),         # LN2 beta
        ],
        out_specs=pl.BlockSpec((tm, H), lambda i: (i, 0)),
        compiler_params=pltpu.CompilerParams(
            dimension_semantics=("parallel",),              # megacore-shardable rows
            vmem_limit_bytes=32 * 1024 * 1024),             # <= v7x default scoped limit
    )(xb, w1, g1, b1, w2, g2, b2)
    return h_pad, N


# ----------------------------------------------------------------------------
# Kernel 2: per-edge rating = sum_h(u * v).  Lane-dense output via a bf16 MXU
#           matmul against a hoisted ones matrix (f32 accumulation).
# ----------------------------------------------------------------------------
def _edge_dot_kernel(ones_ref, u_ref, v_ref, o_ref):
    prod = u_ref[...] * v_ref[...]                           # bf16 (te, H)
    # out[r, e] = sum_h prod[e, h]  (all 8 rows identical; wrapper keeps row 0)
    o_ref[...] = lax.dot_general(ones_ref[...], prod, (((1,), (1,)), ((), ())),
                                 preferred_element_type=jnp.float32)


def edge_ratings_pallas(h_pad, user_idx, item_idx, *, te_max=2048):
    """edge_ratings[e] = sum_h h_pad[user_idx[e], h] * h_pad[item_idx[e], h]."""
    E = user_idx.shape[0]
    H = h_pad.shape[1]
    te, nt, e_pad = _split_rows(E, te_max, 128)   # lane-dense, >=2 balanced tiles

    # Pad the (tiny) index vectors instead of the (E, H) gathered operands, so the
    # XLA gather directly produces tile-aligned bf16 blocks (no extra pad pass).
    # TODO(synk): for E >> N, fuse the gather into the kernel (h VMEM-resident +
    #             scalar-prefetched indices); for small E the XLA gather is cheaper.
    pad = e_pad - E
    u_idx = jnp.pad(user_idx.astype(jnp.int32), (0, pad))
    v_idx = jnp.pad(item_idx.astype(jnp.int32), (0, pad))
    u = h_pad[u_idx]                              # (e_pad, H) bf16
    v = h_pad[v_idx]
    ones = jnp.ones((8, H), jnp.bfloat16)         # hoisted; constant index_map => 1 DMA

    out = pl.pallas_call(
        _edge_dot_kernel,
        out_shape=jax.ShapeDtypeStruct((nt * 8, te), jnp.float32),
        grid=(nt,),
        in_specs=[
            pl.BlockSpec((8, H), lambda i: (0, 0)),
            pl.BlockSpec((te, H), lambda i: (i, 0)),
            pl.BlockSpec((te, H), lambda i: (i, 0)),
        ],
        out_specs=pl.BlockSpec((8, te), lambda i: (i, 0)),
        compiler_params=pltpu.CompilerParams(dimension_semantics=("parallel",)),
    )(ones, u, v)
    # All 8 rows of each (8, te) block are identical; keep row 0 and trim padding.
    return out.reshape(nt, 8, te)[:, 0, :].reshape(-1)[:E]


# ----------------------------------------------------------------------------
# Parameter init (deterministic, synthetic) and full forward
# ----------------------------------------------------------------------------
def init_params(key, in_size, hidden_size, out_size, num_ntypes=2):
    k1, k2 = jax.random.split(key)
    lim1 = (6.0 / (in_size + hidden_size)) ** 0.5
    lim2 = (6.0 / (hidden_size + hidden_size)) ** 0.5
    return {
        # layer1.linear_v : TypedLinear(in_size, hidden_size, num_ntypes)
        "w1": jax.random.uniform(k1, (num_ntypes, in_size, hidden_size),
                                 jnp.float32, -lim1, lim1),
        "g1": jnp.ones((hidden_size,), jnp.float32),   # LayerNorm default init
        "b1": jnp.zeros((hidden_size,), jnp.float32),
        # layer2.linear_v : TypedLinear(hidden_size, hidden_size, num_ntypes)
        "w2": jax.random.uniform(k2, (num_ntypes, hidden_size, hidden_size),
                                 jnp.float32, -lim2, lim2),
        "g2": jnp.ones((hidden_size,), jnp.float32),
        "b2": jnp.zeros((hidden_size,), jnp.float32),
        # linear_a / dropout / residual_w exist in __init__ but their outputs are
        # discarded by the reference forward (use_norm=True) -> not represented.
    }


def rating_predictor_forward(params, x_item, x_user, src, dst, clamp=False):
    n_item = x_item.shape[0]
    n_user = x_user.shape[0]
    if n_item > n_user:
        # The reference's h[:len(user)][dst] silently assumes n_item <= n_user.
        raise ValueError("reference semantics require n_item <= n_user")

    # Fused 2-layer GCN; h_pad rows [0, N) are in the original [item; user] order.
    h_pad, N = hetero_gcn_pallas(params, x_item, x_user)

    # RatingPredictor gathers read the kernel output directly (no reorder copy):
    #   user_embeds = h[n_item:][src]  -> h_pad[n_item + src]   (indices < N)
    #   item_embeds = h[:n_user][dst]  -> h_pad[dst]            (dst < n_item <= n_user)
    # so no index can land in the trailing pad region.
    edge_ratings = edge_ratings_pallas(h_pad, src + n_item, dst)
    if clamp:
        edge_ratings = jnp.clip(edge_ratings, 1.0, 5.0)
    h = h_pad[:N]   # returned in reference order/shape (bf16, per the perf review)
    return h, edge_ratings


# ----------------------------------------------------------------------------
# Pure-JAX reference with the same precision choices (bf16 MXU, f32 LN, bf16 h)
# ----------------------------------------------------------------------------
def _reference_forward(params, x_item, x_user, src, dst, clamp=False):
    n_item, n_user = x_item.shape[0], x_user.shape[0]
    x = jnp.concatenate([x_item, x_user], axis=0)
    N = x.shape[0]
    is_user = (jnp.arange(N) < n_user)[:, None]   # reference ntype-overwrite bug

    def layer(x_in, w, g, b):
        xb = x_in.astype(jnp.bfloat16)
        wb = w.astype(jnp.bfloat16)
        y0 = jnp.dot(xb, wb[0], preferred_element_type=jnp.float32)
        y1 = jnp.dot(xb, wb[1], preferred_element_type=jnp.float32)
        y = jnp.where(is_user, y1, y0)
        mean = jnp.mean(y, axis=-1, keepdims=True)
        var = jnp.mean(jnp.square(y - mean), axis=-1, keepdims=True)
        hh = (y - mean) * lax.rsqrt(var + 1e-5) * g + b
        return jnp.maximum(hh, 0.0)

    h = layer(x, params["w1"], params["g1"], params["b1"])
    h = layer(h, params["w2"], params["g2"], params["b2"])
    hb = h.astype(jnp.bfloat16)                   # kernel stores h in bf16
    ue = hb[n_item:][src]
    ie = hb[:n_user][dst]
    r = jnp.sum((ue * ie).astype(jnp.float32), axis=-1)
    if clamp:
        r = jnp.clip(r, 1.0, 5.0)
    return h, r


if __name__ == "__main__":
    in_size, hidden_size, out_size = 48, 64, 64
    num_ntypes, num_etypes = 2, 1
    # n_item <= n_user so the reference's h[:len(user)][dst] slice is in range.
    n_item, n_user, n_edges = 280, 300, 700

    key = jax.random.PRNGKey(0)
    k_params, k_item, k_user, k_src, k_dst = jax.random.split(key, 5)

    params = init_params(k_params, in_size, hidden_size, out_size, num_ntypes)
    x_item = jax.random.normal(k_item, (n_item, in_size), jnp.float32)
    x_user = jax.random.normal(k_user, (n_user, in_size), jnp.float32)
    # edges of ('user', 'interacts', 'item'): src = user ids, dst = item ids
    src = jax.random.randint(k_src, (n_edges,), 0, n_user)
    dst = jax.random.randint(k_dst, (n_edges,), 0, n_item)

    fwd = jax.jit(functools.partial(rating_predictor_forward, params))
    h, edge_ratings = fwd(x_item, x_user, src, dst)
    jax.block_until_ready((h, edge_ratings))

    assert h.shape == (n_item + n_user, hidden_size)
    assert h.dtype == jnp.bfloat16
    assert edge_ratings.shape == (n_edges,)
    h32 = h.astype(jnp.float32)
    assert bool(jnp.all(jnp.isfinite(h32)))
    assert bool(jnp.all(jnp.isfinite(edge_ratings)))

    # Numerical check vs. a pure-JAX reference with the identical precision path.
    h_ref, r_ref = _reference_forward(params, x_item, x_user, src, dst)
    assert bool(jnp.allclose(h32, h_ref, atol=3e-2, rtol=3e-2)), \
        float(jnp.max(jnp.abs(h32 - h_ref)))
    assert bool(jnp.allclose(edge_ratings, r_ref, atol=1e-1, rtol=3e-2)), \
        float(jnp.max(jnp.abs(edge_ratings - r_ref)))

    print("KERNEL_OK")
</pallas_src>

<mosaic_0001>
module attributes {stable_mosaic.version = 11 : i64} {
  func.func @_gcn2_kernel(%arg0: i32, %arg1: memref<304x48xbf16, #tpu.memory_space<vmem>>, %arg2: memref<2x48x64xbf16, #tpu.memory_space<vmem>>, %arg3: memref<1x64xf32, #tpu.memory_space<vmem>>, %arg4: memref<1x64xf32, #tpu.memory_space<vmem>>, %arg5: memref<2x64x64xbf16, #tpu.memory_space<vmem>>, %arg6: memref<1x64xf32, #tpu.memory_space<vmem>>, %arg7: memref<1x64xf32, #tpu.memory_space<vmem>>, %arg8: memref<304x64xbf16, #tpu.memory_space<vmem>>) attributes {dimension_semantics = [#tpu.dimension_semantics<parallel>], iteration_bounds = array<i64: 2>, scalar_prefetch = 0 : i64, scratch_operands = 0 : i64, tpu.core_type = #tpu.core_type<tc>, window_params = [{transform_indices = @transform_0, window_bounds = array<i64: 304, 48>}, {pipeline_mode = #tpu.pipeline_mode<synchronous>, transform_indices = @transform_1, window_bounds = array<i64: 2, 48, 64>}, {pipeline_mode = #tpu.pipeline_mode<synchronous>, transform_indices = @transform_2, window_bounds = array<i64: 1, 64>}, {pipeline_mode = #tpu.pipeline_mode<synchronous>, transform_indices = @transform_3, window_bounds = array<i64: 1, 64>}, {pipeline_mode = #tpu.pipeline_mode<synchronous>, transform_indices = @transform_4, window_bounds = array<i64: 2, 64, 64>}, {pipeline_mode = #tpu.pipeline_mode<synchronous>, transform_indices = @transform_5, window_bounds = array<i64: 1, 64>}, {pipeline_mode = #tpu.pipeline_mode<synchronous>, transform_indices = @transform_6, window_bounds = array<i64: 1, 64>}, {transform_indices = @transform_7, window_bounds = array<i64: 304, 64>}]} {
    %c304_i32 = arith.constant 304 : i32
    %0 = arith.muli %arg0, %c304_i32 : i32
    %1 = tpu.iota {dimensions = array<i32: 0>} : vector<304x1xi32>
    %2 = vector.broadcast %0 : i32 to vector<304x1xi32>
    %3 = arith.addi %2, %1 : vector<304x1xi32>
    %c300_i32 = arith.constant 300 : i32
    %4 = vector.broadcast %c300_i32 : i32 to vector<304x1xi32>
    %5 = arith.cmpi slt, %3, %4 : vector<304x1xi32>
    %c0 = arith.constant 0 : index
    %c0_0 = arith.constant 0 : index
    %6 = vector.load %arg1[%c0, %c0_0] : memref<304x48xbf16, #tpu.memory_space<vmem>>, vector<304x48xbf16>
    %c0_1 = arith.constant 0 : index
    %c0_2 = arith.constant 0 : index
    %c0_3 = arith.constant 0 : index
    %7 = vector.load %arg2[%c0_1, %c0_2, %c0_3] : memref<2x48x64xbf16, #tpu.memory_space<vmem>>, vector<1x48x64xbf16>
    %8 = vector.shape_cast %7 : vector<1x48x64xbf16> to vector<48x64xbf16>
    %cst = arith.constant dense<0.000000e+00> : vector<304x64xf32>
    %9 = tpu.matmul %6, %8, %cst {dimension_numbers = #tpu.dot_dimension_numbers<[1], [0], [0], [1], [0, 0, 1, 1], [], []>} : vector<304x48xbf16>, vector<48x64xbf16>, vector<304x64xf32> -> vector<304x64xf32>
    %c1 = arith.constant 1 : index
    %c0_4 = arith.constant 0 : index
    %c0_5 = arith.constant 0 : index
    %10 = vector.load %arg2[%c1, %c0_4, %c0_5] : memref<2x48x64xbf16, #tpu.memory_space<vmem>>, vector<1x48x64xbf16>
    %11 = vector.shape_cast %10 : vector<1x48x64xbf16> to vector<48x64xbf16>
    %cst_6 = arith.constant dense<0.000000e+00> : vector<304x64xf32>
    %12 = tpu.matmul %6, %11, %cst_6 {dimension_numbers = #tpu.dot_dimension_numbers<[1], [0], [0], [1], [0, 0, 1, 1], [], []>} : vector<304x48xbf16>, vector<48x64xbf16>, vector<304x64xf32> -> vector<304x64xf32>
    %13 = vector.shape_cast %5 : vector<304x1xi1> to vector<304x1xi1>
    %14 = vector.broadcast %13 : vector<304x1xi1> to vector<304x64xi1>
    %15 = arith.select %14, %12, %9 : vector<304x64xi1>, vector<304x64xf32>
    %cst_7 = arith.constant dense<0.000000e+00> : vector<304xf32>
    %16 = vector.multi_reduction <add>, %15, %cst_7 [1] : vector<304x64xf32> to vector<304xf32>
    %17 = vector.shape_cast %16 : vector<304xf32> to vector<304x1xf32>
    %cst_8 = arith.constant 6.400000e+01 : f32
    %18 = vector.broadcast %cst_8 : f32 to vector<304x1xf32>
    %19 = arith.divf %17, %18 : vector<304x1xf32>
    %20 = arith.mulf %15, %15 : vector<304x64xf32>
    %cst_9 = arith.constant dense<0.000000e+00> : vector<304xf32>
    %21 = vector.multi_reduction <add>, %20, %cst_9 [1] : vector<304x64xf32> to vector<304xf32>
    %22 = vector.shape_cast %21 : vector<304xf32> to vector<304x1xf32>
    %cst_10 = arith.constant 6.400000e+01 : f32
    %23 = vector.broadcast %cst_10 : f32 to vector<304x1xf32>
    %24 = arith.divf %22, %23 : vector<304x1xf32>
    %25 = arith.mulf %19, %19 : vector<304x1xf32>
    %26 = arith.subf %24, %25 : vector<304x1xf32>
    %cst_11 = arith.constant 0.000000e+00 : f32
    %27 = vector.broadcast %cst_11 : f32 to vector<304x1xf32>
    %28 = arith.maximumf %26, %27 : vector<304x1xf32>
    %29 = vector.broadcast %19 : vector<304x1xf32> to vector<304x64xf32>
    %30 = arith.subf %15, %29 : vector<304x64xf32>
    %cst_12 = arith.constant 9.99999974E-6 : f32
    %31 = vector.broadcast %cst_12 : f32 to vector<304x1xf32>
    %32 = arith.addf %28, %31 : vector<304x1xf32>
    %33 = math.rsqrt %32 : vector<304x1xf32>
    %34 = vector.broadcast %33 : vector<304x1xf32> to vector<304x64xf32>
    %35 = arith.mulf %30, %34 : vector<304x64xf32>
    %c0_13 = arith.constant 0 : index
    %c0_14 = arith.constant 0 : index
    %36 = vector.load %arg3[%c0_13, %c0_14] : memref<1x64xf32, #tpu.memory_space<vmem>>, vector<1x64xf32>
    %37 = vector.broadcast %36 : vector<1x64xf32> to vector<304x64xf32>
    %38 = arith.mulf %35, %37 : vector<304x64xf32>
    %c0_15 = arith.constant 0 : index
    %c0_16 = arith.constant 0 : index
    %39 = vector.load %arg4[%c0_15, %c0_16] : memref<1x64xf32, #tpu.memory_space<vmem>>, vector<1x64xf32>
    %40 = vector.broadcast %39 : vector<1x64xf32> to vector<304x64xf32>
    %41 = arith.addf %38, %40 : vector<304x64xf32>
    %cst_17 = arith.constant 0.000000e+00 : f32
    %42 = vector.broadcast %cst_17 : f32 to vector<304x64xf32>
    %43 = arith.maximumf %41, %42 : vector<304x64xf32>
    %44 = arith.truncf %43 : vector<304x64xf32> to vector<304x64xbf16>
    %c0_18 = arith.constant 0 : index
    %c0_19 = arith.constant 0 : index
    %c0_20 = arith.constant 0 : index
    %45 = vector.load %arg5[%c0_18, %c0_19, %c0_20] : memref<2x64x64xbf16, #tpu.memory_space<vmem>>, vector<1x64x64xbf16>
    %46 = vector.shape_cast %45 : vector<1x64x64xbf16> to vector<64x64xbf16>
    %cst_21 = arith.constant dense<0.000000e+00> : vector<304x64xf32>
    %47 = tpu.matmul %44, %46, %cst_21 {dimension_numbers = #tpu.dot_dimension_numbers<[1], [0], [0], [1], [0, 0, 1, 1], [], []>} : vector<304x64xbf16>, vector<64x64xbf16>, vector<304x64xf32> -> vector<304x64xf32>
    %c1_22 = arith.constant 1 : index
    %c0_23 = arith.constant 0 : index
    %c0_24 = arith.constant 0 : index
    %48 = vector.load %arg5[%c1_22, %c0_23, %c0_24] : memref<2x64x64xbf16, #tpu.memory_space<vmem>>, vector<1x64x64xbf16>
    %49 = vector.shape_cast %48 : vector<1x64x64xbf16> to vector<64x64xbf16>
    %cst_25 = arith.constant dense<0.000000e+00> : vector<304x64xf32>
    %50 = tpu.matmul %44, %49, %cst_25 {dimension_numbers = #tpu.dot_dimension_numbers<[1], [0], [0], [1], [0, 0, 1, 1], [], []>} : vector<304x64xbf16>, vector<64x64xbf16>, vector<304x64xf32> -> vector<304x64xf32>
    %51 = vector.shape_cast %5 : vector<304x1xi1> to vector<304x1xi1>
    %52 = vector.broadcast %51 : vector<304x1xi1> to vector<304x64xi1>
    %53 = arith.select %52, %50, %47 : vector<304x64xi1>, vector<304x64xf32>
    %cst_26 = arith.constant dense<0.000000e+00> : vector<304xf32>
    %54 = vector.multi_reduction <add>, %53, %cst_26 [1] : vector<304x64xf32> to vector<304xf32>
    %55 = vector.shape_cast %54 : vector<304xf32> to vector<304x1xf32>
    %cst_27 = arith.constant 6.400000e+01 : f32
    %56 = vector.broadcast %cst_27 : f32 to vector<304x1xf32>
    %57 = arith.divf %55, %56 : vector<304x1xf32>
    %58 = arith.mulf %53, %53 : vector<304x64xf32>
    %cst_28 = arith.constant dense<0.000000e+00> : vector<304xf32>
    %59 = vector.multi_reduction <add>, %58, %cst_28 [1] : vector<304x64xf32> to vector<304xf32>
    %60 = vector.shape_cast %59 : vector<304xf32> to vector<304x1xf32>
    %cst_29 = arith.constant 6.400000e+01 : f32
    %61 = vector.broadcast %cst_29 : f32 to vector<304x1xf32>
    %62 = arith.divf %60, %61 : vector<304x1xf32>
    %63 = arith.mulf %57, %57 : vector<304x1xf32>
    %64 = arith.subf %62, %63 : vector<304x1xf32>
    %cst_30 = arith.constant 0.000000e+00 : f32
    %65 = vector.broadcast %cst_30 : f32 to vector<304x1xf32>
    %66 = arith.maximumf %64, %65 : vector<304x1xf32>
    %67 = vector.broadcast %57 : vector<304x1xf32> to vector<304x64xf32>
    %68 = arith.subf %53, %67 : vector<304x64xf32>
    %cst_31 = arith.constant 9.99999974E-6 : f32
    %69 = vector.broadcast %cst_31 : f32 to vector<304x1xf32>
    %70 = arith.addf %66, %69 : vector<304x1xf32>
    %71 = math.rsqrt %70 : vector<304x1xf32>
    %72 = vector.broadcast %71 : vector<304x1xf32> to vector<304x64xf32>
    %73 = arith.mulf %68, %72 : vector<304x64xf32>
    %c0_32 = arith.constant 0 : index
    %c0_33 = arith.constant 0 : index
    %74 = vector.load %arg6[%c0_32, %c0_33] : memref<1x64xf32, #tpu.memory_space<vmem>>, vector<1x64xf32>
    %75 = vector.broadcast %74 : vector<1x64xf32> to vector<304x64xf32>
    %76 = arith.mulf %73, %75 : vector<304x64xf32>
    %c0_34 = arith.constant 0 : index
    %c0_35 = arith.constant 0 : index
    %77 = vector.load %arg7[%c0_34, %c0_35] : memref<1x64xf32, #tpu.memory_space<vmem>>, vector<1x64xf32>
    %78 = vector.broadcast %77 : vector<1x64xf32> to vector<304x64xf32>
    %79 = arith.addf %76, %78 : vector<304x64xf32>
    %cst_36 = arith.constant 0.000000e+00 : f32
    %80 = vector.broadcast %cst_36 : f32 to vector<304x64xf32>
    %81 = arith.maximumf %79, %80 : vector<304x64xf32>
    %82 = arith.truncf %81 : vector<304x64xf32> to vector<304x64xbf16>
    %c0_37 = arith.constant 0 : index
    %c0_38 = arith.constant 0 : index
    %83 = vector.load %arg8[%c0_37, %c0_38] : memref<304x64xbf16, #tpu.memory_space<vmem>>, vector<304x64xbf16>
    tpu.vector_store %arg8[%c0_37, %c0_38], %82 {strides = array<i32>} : memref<304x64xbf16, #tpu.memory_space<vmem>>, vector<304x64xbf16>,
    return
  }
  func.func @transform_0(%arg0: i32) -> (i32, i32) {
    %c0_i32 = arith.constant 0 : i32
    %c0_i32_0 = arith.constant 0 : i32
    return %arg0, %c0_i32 : i32, i32
  }
  func.func @transform_1(%arg0: i32) -> (i32, i32, i32) {
    %c0_i32 = arith.constant 0 : i32
    %c0_i32_0 = arith.constant 0 : i32
    %c0_i32_1 = arith.constant 0 : i32
    %c0_i32_2 = arith.constant 0 : i32
    return %c0_i32, %c0_i32_0, %c0_i32_1 : i32, i32, i32
  }
  func.func @transform_2(%arg0: i32) -> (i32, i32) {
    %c0_i32 = arith.constant 0 : i32
    %c0_i32_0 = arith.constant 0 : i32
    %c0_i32_1 = arith.constant 0 : i32
    return %c0_i32, %c0_i32_0 : i32, i32
  }
  func.func @transform_3(%arg0: i32) -> (i32, i32) {
    %c0_i32 = arith.constant 0 : i32
    %c0_i32_0 = arith.constant 0 : i32
    %c0_i32_1 = arith.constant 0 : i32
    return %c0_i32, %c0_i32_0 : i32, i32
  }
  func.func @transform_4(%arg0: i32) -> (i32, i32, i32) {
    %c0_i32 = arith.constant 0 : i32
    %c0_i32_0 = arith.constant 0 : i32
    %c0_i32_1 = arith.constant 0 : i32
    %c0_i32_2 = arith.constant 0 : i32
    return %c0_i32, %c0_i32_0, %c0_i32_1 : i32, i32, i32
  }
  func.func @transform_5(%arg0: i32) -> (i32, i32) {
    %c0_i32 = arith.constant 0 : i32
    %c0_i32_0 = arith.constant 0 : i32
    %c0_i32_1 = arith.constant 0 : i32
    return %c0_i32, %c0_i32_0 : i32, i32
  }
  func.func @transform_6(%arg0: i32) -> (i32, i32) {
    %c0_i32 = arith.constant 0 : i32
    %c0_i32_0 = arith.constant 0 : i32
    %c0_i32_1 = arith.constant 0 : i32
    return %c0_i32, %c0_i32_0 : i32, i32
  }
  func.func @transform_7(%arg0: i32) -> (i32, i32) {
    %c0_i32 = arith.constant 0 : i32
    %c0_i32_0 = arith.constant 0 : i32
    return %arg0, %c0_i32 : i32, i32
  }
}

module attributes {stable_mosaic.version = 11 : i64} {
  func.func @_edge_dot_kernel(%arg0: i32, %arg1: memref<8x64xbf16, #tpu.memory_space<vmem>>, %arg2: memref<384x64xbf16, #tpu.memory_space<vmem>>, %arg3: memref<384x64xbf16, #tpu.memory_space<vmem>>, %arg4: memref<8x384xf32, #tpu.memory_space<vmem>>) attributes {dimension_semantics = [#tpu.dimension_semantics<parallel>], iteration_bounds = array<i64: 2>, scalar_prefetch = 0 : i64, scratch_operands = 0 : i64, tpu.core_type = #tpu.core_type<tc>, window_params = [{pipeline_mode = #tpu.pipeline_mode<synchronous>, transform_indices = @transform_0, window_bounds = array<i64: 8, 64>}, {transform_indices = @transform_1, window_bounds = array<i64: 384, 64>}, {transform_indices = @transform_2, window_bounds = array<i64: 384, 64>}, {transform_indices = @transform_3, window_bounds = array<i64: 8, 384>}]} {
    %c0 = arith.constant 0 : index
    %c0_0 = arith.constant 0 : index
    %0 = vector.load %arg2[%c0, %c0_0] : memref<384x64xbf16, #tpu.memory_space<vmem>>, vector<384x64xbf16>
    %c0_1 = arith.constant 0 : index
    %c0_2 = arith.constant 0 : index
    %1 = vector.load %arg3[%c0_1, %c0_2] : memref<384x64xbf16, #tpu.memory_space<vmem>>, vector<384x64xbf16>
    %2 = arith.mulf %0, %1 : vector<384x64xbf16>
    %c0_3 = arith.constant 0 : index
    %c0_4 = arith.constant 0 : index
    %3 = vector.load %arg1[%c0_3, %c0_4] : memref<8x64xbf16, #tpu.memory_space<vmem>>, vector<8x64xbf16>
    %cst = arith.constant dense<0.000000e+00> : vector<8x384xf32>
    %4 = tpu.matmul %3, %2, %cst {dimension_numbers = #tpu.dot_dimension_numbers<[1], [1], [0], [0], [0, 0, 1, 0], [], []>} : vector<8x64xbf16>, vector<384x64xbf16>, vector<8x384xf32> -> vector<8x384xf32>
    %c0_5 = arith.constant 0 : index
    %c0_6 = arith.constant 0 : index
    %5 = vector.load %arg4[%c0_5, %c0_6] : memref<8x384xf32, #tpu.memory_space<vmem>>, vector<8x384xf32>
    tpu.vector_store %arg4[%c0_5, %c0_6], %4 {strides = array<i32>} : memref<8x384xf32, #tpu.memory_space<vmem>>, vector<8x384xf32>,
    return
  }
  func.func @transform_0(%arg0: i32) -> (i32, i32) {
    %c0_i32 = arith.constant 0 : i32
    %c0_i32_0 = arith.constant 0 : i32
    %c0_i32_1 = arith.constant 0 : i32
    return %c0_i32, %c0_i32_0 : i32, i32
  }
  func.func @transform_1(%arg0: i32) -> (i32, i32) {
    %c0_i32 = arith.constant 0 : i32
    %c0_i32_0 = arith.constant 0 : i32
    return %arg0, %c0_i32 : i32, i32
  }
  func.func @transform_2(%arg0: i32) -> (i32, i32) {
    %c0_i32 = arith.constant 0 : i32
    %c0_i32_0 = arith.constant 0 : i32
    return %arg0, %c0_i32 : i32, i32
  }
  func.func @transform_3(%arg0: i32) -> (i32, i32) {
    %c0_i32 = arith.constant 0 : i32
    %c0_i32_0 = arith.constant 0 : i32
    return %arg0, %c0_i32 : i32, i32
  }
}

</mosaic_0001>

<bundles_post_ra>
// kernel: rating_predictor_forward.3
= control target key start
LH: loop header
LB: loop body
LE: loop exit
PB: predicated region body
PF: predicated region fallthrough
CT: control target
= control target key end

     0   :  { %s820_s12 = smov 0   ;;  %s989_s0 = inlined_call_operand.vmem [shape: bf16[8,64], index: 0, kind: input, shape index: {}]   ;;  %s990_s1 = inlined_call_operand.vmem [shape: bf16[768,64], index: 1, kind: input, shape index: {}]   ;;  %s991_s2 = inlined_call_operand.vmem [shape: bf16[768,64], index: 2, kind: input, shape index: {}]   ;;  %s992_s3 = inlined_call_operand.vmem [shape: f32[16,384], index: 3, kind: output, shape index: {}]  }
   0x1 LB: > { %s826_s13 = sadd.s32 4294967295, %s796_s12   ;;  %p692_p0 = scmp.ge.s32.totalorder %s796_s12, 1  ;;  %s796_s12 = sphi %s820_s12, %s13_s12  }
   0x2   : > { %p149_p1 = scmp.lt.s32.totalorder %s796_s12, 3 }
   0x4   : > { %p150_p2 = pnand %p692_p0, %p149_p1 }
   0x5   : > { %s178_s14 = smul.u32 (!%p150_p2), 48, %s826_s13  ;;  %p190_p4 = scmp.lt.s32.totalorder (!%p150_p2), %s826_s13, 1 }
   0x6   : > { %153 = sbr.rel (%p150_p2) target bundleno = 287 (0x11f), region = 32 }
   0x7   : > { %p179_p3 = scmp.lt.s32.totalorder (!%p150_p2), %s178_s14, 95 }
   0xb   : > { %vm461_vm0 = vcmask 523264   ;;  %v834_v0 = vld [vmem:[%s989_s0] sm:$0xf]  ;;  %v798_v1 = vmov 0.0   ;;  %vm799_vm1 = vmmov 0   ;;  %s994_s14 = smov (!%p179_p3, %s178_s14), 95 }
   0xc   : > { %751 = vmatprep.subr.bf16.mxu1 %v798_v1  ;;  %740 = vmatprep.mubr.msk.bf16.mxu0 %vm461_vm0, %v834_v0  ;;  %s693_s17 = sshll.u32 %s994_s14, 2  ;;  %s996_s13 = smov (!%p190_p4, %s826_s13), 1 }
   0xd   : > { %767 = vmatprep.mubr.msk.bf16.mxu1 %vm799_vm1, %v798_v1  ;;  %s843_s20 = scalar_lea.vmem %s990_s1, %s693_s17  ;;  %s848_s23 = scalar_lea.vmem %s991_s2, %s693_s17 }
   0xe   : > { %v226_v2 = vld [vmem:[%s843_s20 + $0x78] sm:$0xf]  ;;  %v227_v3 = vld [vmem:[%s843_s20 + $0x7c] sm:$0xf]  ;;  %v224_v21 = vld [vmem:[%s843_s20 + $0x70] sm:$0xf] }
   0xf   : > { %v274_v4 = vld [vmem:[%s848_s23 + $0x78] sm:$0xf]  ;;  %v275_v5 = vld [vmem:[%s848_s23 + $0x7c] sm:$0xf]  ;;  %v225_v22 = vld [vmem:[%s843_s20 + $0x74] sm:$0xf] }
  0x10   : > { %v322_v6 = vmul.bf16 %v274_v4, %v226_v2  ;;  %v210_v7 = vld [vmem:[%s843_s20 + $0x38] sm:$0xf]  ;;  %v211_v8 = vld [vmem:[%s843_s20 + $0x3c] sm:$0xf]  ;;  %v323_v9 = vmul.bf16 %v275_v5, %v227_v3  ;;  %v272_v23 = vld [vmem:[%s848_s23 + $0x70] sm:$0xf] }
  0x11   : > { %v258_v10 = vld [vmem:[%s848_s23 + $0x38] sm:$0xf]  ;;  %v259_v11 = vld [vmem:[%s848_s23 + $0x3c] sm:$0xf]  ;;  %v273_v25 = vld [vmem:[%s848_s23 + $0x74] sm:$0xf]  ;;  %v320_v26 = vmul.bf16 %v272_v23, %v224_v21 }
  0x12   : > { %v242_v12 = vld [vmem:[%s843_s20 + $0xb8] sm:$0xf]  ;;  %v306_v13 = vmul.bf16 %v258_v10, %v210_v7  ;;  %v307_v14 = vmul.bf16 %v259_v11, %v211_v8  ;;  %v243_v15 = vld [vmem:[%s843_s20 + $0xbc] sm:$0xf]  ;;  %v711_v18 = vcombine.low %v322_v6, %v323_v9  ;;  %v208_v27 = vld [vmem:[%s843_s20 + $0x30] sm:$0xf]  ;;  %v321_v30 = vmul.bf16 %v273_v25, %v225_v22 }
  0x13   : > { %v290_v16 = vld [vmem:[%s848_s23 + $0xb8] sm:$0xf]  ;;  %v291_v17 = vld [vmem:[%s848_s23 + $0xbc] sm:$0xf]  ;;  %v209_v28 = vld [vmem:[%s843_s20 + $0x34] sm:$0xf] }
  0x14   : > { %v338_v19 = vmul.bf16 %v290_v16, %v242_v12  ;;  %v339_v20 = vmul.bf16 %v291_v17, %v243_v15  ;;  %v703_v24 = vcombine.low %v306_v13, %v307_v14  ;;  %771 = vmatprep.subr.msk.bf16.mxu0 %vm461_vm0, %v711_v18  ;;  %v256_v31 = vld [vmem:[%s848_s23 + $0x30] sm:$0xf]  ;;  %v257_v32 = vld [vmem:[%s848_s23 + $0x34] sm:$0xf]  ;;  %v710_v40 = vcombine.low %v320_v26, %v321_v30  ;;  %v222_v43 = vld [vmem:[%s843_s20 + $0x68] sm:$0xf] }
  0x15   : > { %v240_v33 = vld [vmem:[%s843_s20 + $0xb0] sm:$0xf]  ;;  %v304_v35 = vmul.bf16 %v256_v31, %v208_v27  ;;  %v305_v36 = vmul.bf16 %v257_v32, %v209_v28  ;;  %v241_v37 = vld [vmem:[%s843_s20 + $0xb4] sm:$0xf]  ;;  %v223_v46 = vld [vmem:[%s843_s20 + $0x6c] sm:$0xf] }
  0x16   : > { %v719_v29 = vcombine.low %v338_v19, %v339_v20  ;;  %v487_v34 = vsel %vm461_vm0, %v703_v24, 0  ;;  %v288_v38 = vld [vmem:[%s848_s23 + $0xb0] sm:$0xf]  ;;  %v289_v41 = vld [vmem:[%s848_s23 + $0xb4] sm:$0xf]  ;;  %s779_s24 = smul.u32 24, %s996_s13 }
  0x17   : > { %725 = vmatpush3.bf16.xpose.msra.mxu0 %v487_v34  ;;  %v336_v42 = vmul.bf16 %v288_v38, %v240_v33  ;;  %v702_v44 = vcombine.low %v304_v35, %v305_v36  ;;  %v337_v45 = vmul.bf16 %v289_v41, %v241_v37  ;;  %v270_v47 = vld [vmem:[%s848_s23 + $0x68] sm:$0xf]  ;;  %v271_v48 = vld [vmem:[%s848_s23 + $0x6c] sm:$0xf]  ;;  %v220_v5 = vld [vmem:[%s843_s20 + $0x60] sm:$0xf] }
  0x18   : > { %v535_v39 = vsel %vm461_vm0, %v719_v29, 0  ;;  %772 = vmatprep.subr.msk.bf16.mxu0 %vm461_vm0, %v710_v40  ;;  %v318_v49 = vmul.bf16 %v270_v47, %v222_v43  ;;  %v319_v50 = vmul.bf16 %v271_v48, %v223_v46  ;;  %v206_v51 = vld [vmem:[%s843_s20 + $0x28] sm:$0xf]  ;;  %v207_v52 = vld [vmem:[%s843_s20 + $0x2c] sm:$0xf]  ;;  %s194_s27 = scalar_lea.vmem %s992_s3, %s779_s24 }
  0x19   : > { %752 = vmatpush3.bf16.xpose.msra.mxu1 %v535_v39  ;;  %v254_v53 = vld [vmem:[%s848_s23 + $0x28] sm:$0xf]  ;;  %v484_v54 = vsel %vm461_vm0, %v702_v44, 0  ;;  %v718_v55 = vcombine.low %v336_v42, %v337_v45  ;;  %v255_v56 = vld [vmem:[%s848_s23 + $0x2c] sm:$0xf] }
  0x1a   : > { %753 = vmatprep.subr.bf16.mxu1 %v798_v1  ;;  %v238_v57 = vld [vmem:[%s843_s20 + $0xa8] sm:$0xf]  ;;  %v302_v58 = vmul.bf16 %v254_v53, %v206_v51  ;;  %v303_v59 = vmul.bf16 %v255_v56, %v207_v52  ;;  %v239_v60 = vld [vmem:[%s843_s20 + $0xac] sm:$0xf]  ;;  %v709_v2 = vcombine.low %v318_v49, %v319_v50  ;;  %v221_v6 = vld [vmem:[%s843_s20 + $0x64] sm:$0xf] }
  0x1b   : > { %v286_v61 = vld [vmem:[%s848_s23 + $0xa8] sm:$0xf]  ;;  %v287_v62 = vld [vmem:[%s848_s23 + $0xac] sm:$0xf]  ;;  %v532_v63 = vsel %vm461_vm0, %v718_v55, 0 }
  0x1c   : > { %v334_v3 = vmul.bf16 %v286_v61, %v238_v57  ;;  %v335_v4 = vmul.bf16 %v287_v62, %v239_v60  ;;  %v268_v7 = vld [vmem:[%s848_s23 + $0x60] sm:$0xf]  ;;  %v269_v8 = vld [vmem:[%s848_s23 + $0x64] sm:$0xf]  ;;  %v701_v9 = vcombine.low %v302_v58, %v303_v59  ;;  %v218_v28 = vld [vmem:[%s843_s20 + $0x58] sm:$0xf] }
  0x1d   : > { %v204_v10 = vld [vmem:[%s843_s20 + $0x20] sm:$0xf]  ;;  %v205_v11 = vld [vmem:[%s843_s20 + $0x24] sm:$0xf]  ;;  %v316_v13 = vmul.bf16 %v268_v7, %v220_v5  ;;  %v317_v14 = vmul.bf16 %v269_v8, %v221_v6  ;;  %v219_v29 = vld [vmem:[%s843_s20 + $0x5c] sm:$0xf] }
  0x1e   : > { %v717_v12 = vcombine.low %v334_v3, %v335_v4  ;;  %v252_v15 = vld [vmem:[%s848_s23 + $0x20] sm:$0xf]  ;;  %v253_v16 = vld [vmem:[%s848_s23 + $0x24] sm:$0xf]  ;;  %v481_v21 = vsel %vm461_vm0, %v701_v9, 0 }
  0x1f   : > { %727 = vmatpush3.bf16.xpose.msra.mxu0 %v484_v54  ;;  %v236_v17 = vld [vmem:[%s843_s20 + $0xa0] sm:$0xf]  ;;  %v237_v18 = vld [vmem:[%s843_s20 + $0xa4] sm:$0xf]  ;;  %v300_v22 = vmul.bf16 %v252_v15, %v204_v10  ;;  %v301_v23 = vmul.bf16 %v253_v16, %v205_v11  ;;  %v708_v25 = vcombine.low %v316_v13, %v317_v14  ;;  %v266_v30 = vld [vmem:[%s848_s23 + $0x58] sm:$0xf] }
  0x20   : > { %773 = vmatprep.subr.msk.bf16.mxu0 %vm461_vm0, %v709_v2  ;;  %v284_v19 = vld [vmem:[%s848_s23 + $0xa0] sm:$0xf]  ;;  %v285_v20 = vld [vmem:[%s848_s23 + $0xa4] sm:$0xf]  ;;  %v529_v24 = vsel %vm461_vm0, %v717_v12, 0  ;;  %v314_v36 = vmul.bf16 %v266_v30, %v218_v28 }
  0x21   : > { %754 = vmatpush3.bf16.xpose.msra.mxu1 %v532_v63  ;;  %v332_v26 = vmul.bf16 %v284_v19, %v236_v17  ;;  %v333_v27 = vmul.bf16 %v285_v20, %v237_v18  ;;  %v267_v31 = vld [vmem:[%s848_s23 + $0x5c] sm:$0xf]  ;;  %v700_v32 = vcombine.low %v300_v22, %v301_v23  ;;  %v202_v33 = vld [vmem:[%s843_s20 + $0x18] sm:$0xf]  ;;  %v216_v51 = vld [vmem:[%s843_s20 + $0x50] sm:$0xf] }
  0x22   : > { %755 = vmatprep.subr.bf16.mxu1 %v798_v1  ;;  %v203_v34 = vld [vmem:[%s843_s20 + $0x1c] sm:$0xf]  ;;  %v315_v37 = vmul.bf16 %v267_v31, %v219_v29  ;;  %v250_v38 = vld [vmem:[%s848_s23 + $0x18] sm:$0xf]  ;;  %v217_v52 = vld [vmem:[%s843_s20 + $0x54] sm:$0xf] }
  0x23   : > { %v716_v35 = vcombine.low %v332_v26, %v333_v27  ;;  %v251_v39 = vld [vmem:[%s848_s23 + $0x1c] sm:$0xf]  ;;  %v234_v40 = vld [vmem:[%s843_s20 + $0x98] sm:$0xf]  ;;  %v478_v44 = vsel %vm461_vm0, %v700_v32, 0  ;;  %v298_v45 = vmul.bf16 %v250_v38, %v202_v33 }
  0x24   : > { %v235_v41 = vld [vmem:[%s843_s20 + $0x9c] sm:$0xf]  ;;  %v282_v42 = vld [vmem:[%s848_s23 + $0x98] sm:$0xf]  ;;  %v299_v46 = vmul.bf16 %v251_v39, %v203_v34  ;;  %v707_v48 = vcombine.low %v314_v36, %v315_v37  ;;  %v264_v53 = vld [vmem:[%s848_s23 + $0x50] sm:$0xf] }
  0x25   : > { %v283_v43 = vld [vmem:[%s848_s23 + $0x9c] sm:$0xf]  ;;  %v526_v47 = vsel %vm461_vm0, %v716_v35, 0  ;;  %v330_v49 = vmul.bf16 %v282_v42, %v234_v40  ;;  %v265_v54 = vld [vmem:[%s848_s23 + $0x54] sm:$0xf]  ;;  %v312_v59 = vmul.bf16 %v264_v53, %v216_v51 }
  0x26   : > { %v331_v50 = vmul.bf16 %v283_v43, %v235_v41  ;;  %v699_v55 = vcombine.low %v298_v45, %v299_v46  ;;  %v200_v56 = vld [vmem:[%s843_s20 + $0x10] sm:$0xf]  ;;  %v201_v57 = vld [vmem:[%s843_s20 + $0x14] sm:$0xf]  ;;  %v313_v60 = vmul.bf16 %v265_v54, %v217_v52  ;;  %v214_v12 = vld [vmem:[%s843_s20 + $0x48] sm:$0xf] }
  0x27   : > { %729 = vmatpush3.bf16.xpose.msra.mxu0 %v481_v21  ;;  %v248_v61 = vld [vmem:[%s848_s23 + $0x10] sm:$0xf]  ;;  %v249_v62 = vld [vmem:[%s848_s23 + $0x14] sm:$0xf]  ;;  %v215_v13 = vld [vmem:[%s843_s20 + $0x4c] sm:$0xf] }
  0x28   : > { %774 = vmatprep.subr.msk.bf16.mxu0 %vm461_vm0, %v708_v25  ;;  %v715_v58 = vcombine.low %v330_v49, %v331_v50  ;;  %v232_v63 = vld [vmem:[%s843_s20 + $0x90] sm:$0xf]  ;;  %v233_v2 = vld [vmem:[%s843_s20 + $0x94] sm:$0xf]  ;;  %v475_v5 = vsel %vm461_vm0, %v699_v55, 0  ;;  %v296_v6 = vmul.bf16 %v248_v61, %v200_v56  ;;  %v297_v7 = vmul.bf16 %v249_v62, %v201_v57 }
  0x29   : > { %756 = vmatpush3.bf16.xpose.msra.mxu1 %v529_v24  ;;  %v280_v3 = vld [vmem:[%s848_s23 + $0x90] sm:$0xf]  ;;  %v281_v4 = vld [vmem:[%s848_s23 + $0x94] sm:$0xf]  ;;  %v706_v9 = vcombine.low %v312_v59, %v313_v60  ;;  %v262_v14 = vld [vmem:[%s848_s23 + $0x48] sm:$0xf] }
  0x2a   : > { %757 = vmatprep.subr.bf16.mxu1 %v798_v1  ;;  %v523_v8 = vsel %vm461_vm0, %v715_v58, 0  ;;  %v328_v10 = vmul.bf16 %v280_v3, %v232_v63  ;;  %v329_v11 = vmul.bf16 %v281_v4, %v233_v2  ;;  %v263_v15 = vld [vmem:[%s848_s23 + $0x4c] sm:$0xf]  ;;  %v698_v16 = vcombine.low %v296_v6, %v297_v7  ;;  %v198_v20 = vld [vmem:[%s843_s20 + $0x8] sm:$0xf] }
  0x2b   : > { %v310_v18 = vmul.bf16 %v262_v14, %v214_v12  ;;  %v311_v19 = vmul.bf16 %v263_v15, %v215_v13  ;;  %v199_v21 = vld [vmem:[%s843_s20 + $0xc] sm:$0xf]  ;;  %v246_v22 = vld [vmem:[%s848_s23 + $0x8] sm:$0xf]  ;;  %v212_v33 = vld [vmem:[%s843_s20 + $0x40] sm:$0xf] }
  0x2c   : > { %v714_v17 = vcombine.low %v328_v10, %v329_v11  ;;  %v247_v23 = vld [vmem:[%s848_s23 + $0xc] sm:$0xf]  ;;  %v230_v24 = vld [vmem:[%s843_s20 + $0x88] sm:$0xf]  ;;  %v472_v28 = vsel %vm461_vm0, %v698_v16, 0  ;;  %v294_v31 = vmul.bf16 %v246_v22, %v198_v20 }
  0x2d   : > { %v231_v25 = vld [vmem:[%s843_s20 + $0x8c] sm:$0xf]  ;;  %v278_v26 = vld [vmem:[%s848_s23 + $0x88] sm:$0xf]  ;;  %v705_v30 = vcombine.low %v310_v18, %v311_v19  ;;  %v295_v32 = vmul.bf16 %v247_v23, %v199_v21  ;;  %v213_v36 = vld [vmem:[%s843_s20 + $0x44] sm:$0xf] }
  0x2e   : > { %v279_v27 = vld [vmem:[%s848_s23 + $0x8c] sm:$0xf]  ;;  %v520_v29 = vsel %vm461_vm0, %v714_v17, 0  ;;  %v326_v34 = vmul.bf16 %v278_v26, %v230_v24  ;;  %v260_v37 = vld [vmem:[%s848_s23 + $0x40] sm:$0xf] }
  0x2f   : > { %731 = vmatpush3.bf16.xpose.msra.mxu0 %v478_v44  ;;  %v327_v35 = vmul.bf16 %v279_v27, %v231_v25  ;;  %v261_v38 = vld [vmem:[%s848_s23 + $0x44] sm:$0xf]  ;;  %v697_v39 = vcombine.low %v294_v31, %v295_v32  ;;  %v308_v40 = vmul.bf16 %v260_v37, %v212_v33  ;;  %v196_v42 = vld [vmem:[%s843_s20] sm:$0xf] }
  0x30   : > { %775 = vmatprep.subr.msk.bf16.mxu0 %vm461_vm0, %v707_v48  ;;  %v309_v41 = vmul.bf16 %v261_v38, %v213_v36  ;;  %v197_v43 = vld [vmem:[%s843_s20 + $0x4] sm:$0xf]  ;;  %v244_v45 = vld [vmem:[%s848_s23] sm:$0xf] }
  0x31   : > { %758 = vmatpush3.bf16.xpose.msra.mxu1 %v526_v47  ;;  %v713_v44 = vcombine.low %v326_v34, %v327_v35  ;;  %v245_v46 = vld [vmem:[%s848_s23 + $0x4] sm:$0xf]  ;;  %v228_v47 = vld [vmem:[%s843_s20 + $0x80] sm:$0xf]  ;;  %v469_v51 = vsel %vm461_vm0, %v697_v39, 0  ;;  %v292_v53 = vmul.bf16 %v244_v45, %v196_v42 }
  0x32   : > { %759 = vmatprep.subr.bf16.mxu1 %v798_v1  ;;  %v229_v48 = vld [vmem:[%s843_s20 + $0x84] sm:$0xf]  ;;  %v276_v49 = vld [vmem:[%s848_s23 + $0x80] sm:$0xf]  ;;  %v704_v52 = vcombine.low %v308_v40, %v309_v41  ;;  %v293_v54 = vmul.bf16 %v245_v46, %v197_v43 }
  0x33   : > { %v277_v50 = vld [vmem:[%s848_s23 + $0x84] sm:$0xf]  ;;  %v517_v55 = vsel %vm461_vm0, %v713_v44, 0  ;;  %v324_v56 = vmul.bf16 %v276_v49, %v228_v47 }
  0x34   : > { %v325_v57 = vmul.bf16 %v277_v50, %v229_v48  ;;  %v696_v58 = vcombine.low %v292_v53, %v293_v54 }
  0x36   : > { %v712_v59 = vcombine.low %v324_v56, %v325_v57  ;;  %v466_v60 = vsel %vm461_vm0, %v696_v58, 0 }
  0x37   : > { %733 = vmatpush3.bf16.xpose.msra.mxu0 %v475_v5 }
  0x38   : > { %776 = vmatprep.subr.msk.bf16.mxu0 %vm461_vm0, %v706_v9  ;;  %v514_v61 = vsel %vm461_vm0, %v712_v59, 0 }
  0x39   : > { %760 = vmatpush3.bf16.xpose.msra.mxu1 %v523_v8 }
  0x3a   : > { %761 = vmatprep.subr.bf16.mxu1 %v798_v1 }
  0x3f   : > { %735 = vmatpush3.bf16.xpose.msra.mxu0 %v472_v28 }
  0x40   : > { %777 = vmatprep.subr.msk.bf16.mxu0 %vm461_vm0, %v705_v30 }
  0x41   : > { %762 = vmatpush3.bf16.xpose.msra.mxu1 %v520_v29 }
  0x42   : > { %763 = vmatprep.subr.bf16.mxu1 %v798_v1 }
  0x47   : > { %737 = vmatpush3.bf16.xpose.msra.mxu0 %v469_v51 }
  0x48   : > { %778 = vmatprep.subr.msk.bf16.mxu0 %vm461_vm0, %v704_v52 }
  0x49   : > { %764 = vmatpush3.bf16.xpose.msra.mxu1 %v517_v55 }
  0x4a   : > { %765 = vmatprep.subr.bf16.mxu1 %v798_v1 }
  0x4f   : > { %739 = vmatpush3.bf16.xpose.msra.mxu0 %v466_v60 }
  0x51   : > { %766 = vmatpush3.bf16.xpose.msra.mxu1 %v514_v61 }
  0x56   : > { %741 = vmatmul.mubr.msk.bf16.vlgmr.msra.gmra.mxu0 %vm461_vm0, %v834_v0 }
  0x58   : > { %768 = vmatmul.mubr.msk.bf16.vlgmr.msra.gmra.mxu1 %vm461_vm0, %v834_v0 }
 0x116   : > { %v571_v1 = vpop.f32.mrf.mxu0 }
 0x117   : > { %618 = vst [vmem:[%s194_s27] sm:$0xff] %v571_v1 }
 0x118   : > { %v612_v62 = vpop.f32.mrf.mxu1  ;;  %v573_v63 = vpop.f32.mrf.mxu0 }
 0x119   : > { %620 = vst [vmem:[%s194_s27 + $0x10] sm:$0xff] %v612_v62  ;;  %619 = vst [vmem:[%s194_s27 + $0x8] sm:$0xff] %v573_v63 }
 0x11a   : > { %v769_v2 = vpop.f32.mrf.mxu1  ;;  %v575_v3 = vpop.f32.mrf.mxu0 }
 0x11c   : > { %v615_v4 = vpop.f32.mrf.mxu1  ;;  %v576_v5 = vpop.f32.mrf.mxu0 }
 0x11e   : > { %v770_v6 = vpop.f32.mrf.mxu1 }
 0x11f PF: > { %s13_s12 = sadd.s32 1, %s796_s12  }
 0x120   : > { %p10_p5 = scmp.ge.s32.totalorder %s13_s12, 4  }
 0x122   :  { %12 = sbr.rel (!%p10_p5) target bundleno = 1 (0x1), region = 65 }

// kernel: squeeze.1
= control target key start
LH: loop header
LB: loop body
LE: loop exit
PB: predicated region body
PF: predicated region fallthrough
CT: control target
= control target key end

     0   :  { %2 = vsyncpa [#allocation1], 0  ;;  %s86_s0 = inlined_call_operand.vmem [shape: f32[2,384], index: 0, kind: input, shape index: {}]   ;;  %s87_s1 = inlined_call_operand.hbm [shape: f32[768], index: 1, kind: output, shape index: {}]  }
   0x1   :  { %v38_v0 = vld [vmem:[%s86_s0 + $0x4] sm:$0x3]  ;;  %v39_v1 = vld [vmem:[%s86_s0 + $0x2] sm:$0x3]  ;;  %v15_v2 = vld [vmem:[%s86_s0] sm:$0x3] }
   0x2   :  { %10 = vst [vmem:[#allocation2] sm:$0x3] %v38_v0  ;;  %14 = vst [vmem:[#allocation2 + $0x10] sm:$0x3] %v39_v1  ;;  %s63_s0 = smov [#allocation0]  }
   0x3   :  { %16 = vst [vmem:[#allocation2 + $0x8] sm:$0x3] %v15_v2  ;;  %s31_s12 = sshll.u32 %s63_s0, 4  ;;  %s32_s12 = int_to_ptr.vmem [resolvable:$true] %s31_s12 }
   0x4   :  { %s41_s13 = scalar_lea.vmem %s32_s12, 128  ;;  %p46_p1 = scmp.lt.s32.totalorder %s32_s12, %s32_s12 }
   0x5   :  { %p42_p0 = scmp.ne.s32.totalorder %s32_s12, %s41_s13  ;;  %p47_p2 = scmp.lt.s32.totalorder %s41_s13, %s41_s13 }
   0x7   :  { %p48_p3 = por %p47_p2, %p46_p1 }
   0x9   :  { %v20_v3 = vld [vmem:[#allocation2 + $0x10] sm:$0x3]   ;;  %v24_v4 = vld [vmem:[#allocation2] sm:$0x3]   ;;  %p49_p4 = pnand %p48_p3, %p42_p0 }
   0xa   :  { %v17_v5 = vld [vmem:[#allocation2 + $0x8] sm:$0x3]   ;;  %22 = vst [vmem:[#allocation0 + $0x1] ss:$3 sm:$0x3] %v20_v3  }
   0xb   :  { %26 = vst [vmem:[#allocation0 + $0x2] ss:$3 sm:$0x3] %v24_v4   ;;  %18 = vst [vmem:[#allocation0] ss:$3 sm:$0x3] %v17_v5  }
   0xc   :  { %52 = shalt.err (!%p49_p4)
}
   0xd   :  { %34 = dma.vmem_to_hbm [thread:$0]  %s32_s12, 128, %s87_s1, [#allocation1]  }
   0xe   :  { %61 = dma.done.wait [#allocation1], 128  }
   0xf   :  { %62 = vsyncadd [#allocation1], 4294967168 }
  0x10   :  { %36 = vsyncpa [#allocation1], 1 }

// kernel: rating_predictor_forward.2
= control target key start
LH: loop header
LB: loop body
LE: loop exit
PB: predicated region body
PF: predicated region fallthrough
CT: control target
= control target key end

     0   :  { %s4277_s24 = smov 0   ;;  %s6214_s0 = inlined_call_operand.vmem [shape: bf16[608,48], index: 0, kind: input, shape index: {}]   ;;  %s6215_s1 = inlined_call_operand.vmem [shape: bf16[2,48,64], index: 1, kind: input, shape index: {}]   ;;  %s6216_s2 = inlined_call_operand.vmem [shape: f32[1,64], index: 2, kind: input, shape index: {}, may-alias: {2,5}]   ;;  %s6217_s3 = inlined_call_operand.vmem [shape: f32[1,64], index: 3, kind: input, shape index: {}, may-alias: {3,6}]   ;;  %s6218_s4 = inlined_call_operand.vmem [shape: bf16[2,64,64], index: 4, kind: input, shape index: {}]   ;;  %s6219_s5 = inlined_call_operand.vmem [shape: f32[1,64], index: 5, kind: input, shape index: {}, may-alias: {2,5}]   ;;  %s6220_s6 = inlined_call_operand.vmem [shape: f32[1,64], index: 6, kind: input, shape index: {}, may-alias: {3,6}]   ;;  %s6221_s7 = inlined_call_operand.vmem [shape: bf16[608,64], index: 7, kind: output, shape index: {}]  }
   0x1 LB: > { %s3394_s25 = sadd.s32 4294967295, %s4233_s24   ;;  %p3398_p0 = scmp.ge.s32.totalorder %s4233_s24, 1  ;;  %s4233_s24 = sphi %s4277_s24, %s17_s24  }
   0x2   : > { %p238_p1 = scmp.lt.s32.totalorder %s4233_s24, 3 }
   0x4   : > { %p239_p2 = pnand %p3398_p0, %p238_p1 }
   0x6   : > { %242 = sbr.rel (%p239_p2) target bundleno = 917 (0x395), region = 48 }
   0xb   : > { %v4038_v0 = vld [vmem:[%s6215_s1 + $0x10] sm:$0xff]   ;;  %v6233_v1 = vmov 0.0   ;;  %v4039_v2 = vld [vmem:[%s6215_s1 + $0x28] sm:$0xff]   ;;  %vm4236_vm0 = vmmov 0   ;;  %s270_s9 = smul.u32 38, %s3394_s25  ;;  %v4041_v4 = vld [vmem:[%s6215_s1 + $0x20] sm:$0xff]   ;;  %v284_v32 = vlaneseq }
   0xc   : > { %3696 = vmatprep.subr.bf16.mxu0 %v6233_v1  ;;  %3778 = vmatprep.subr.bf16.mxu1 %v6233_v1  ;;  %v4040_v3 = vld [vmem:[%s6215_s1 + $0x8] sm:$0xff]   ;;  %v4042_v5 = vld [vmem:[%s6215_s1] sm:$0xff]   ;;  %v4043_v6 = vld [vmem:[%s6215_s1 + $0x18] sm:$0xff]   ;;  %vm557_vm1 = vcmask 392192   ;;  %s283_s12 = smul.u32 304, %s3394_s25  ;;  %vm1124_vm3 = vcmask 523264  }
   0xd   : > { %3697 = vmatpush3.bf16.msra.mxu0 %v4038_v0  ;;  %3702 = vmatprep.mubr.msk.bf16.mxu0 %vm4236_vm0, %v6233_v1  ;;  %p271_p3 = scmp.lt.s32.totalorder %s270_s9, 75  ;;  %v4063_v20 = vld [vmem:[%s6218_s4 + $0x18] sm:$0xff]   ;;  %v4065_v26 = vld [vmem:[%s6218_s4 + $0x10] sm:$0xff]   ;;  %v4067_v30 = vld [vmem:[%s6218_s4 + $0x8] sm:$0xff]   ;;  %v4486_v33 = vshrl.u32 %v284_v32, 7 }
   0xe   : > { %3779 = vmatpush3.bf16.msra.mxu1 %v4039_v2  ;;  %3698 = vmatprep.subr.bf16.mxu0 %v6233_v1  ;;  %v4064_v21 = vld [vmem:[%s6218_s4 + $0x38] sm:$0xff]   ;;  %v4066_v27 = vld [vmem:[%s6218_s4 + $0x30] sm:$0xff]   ;;  %v4068_v31 = vld [vmem:[%s6218_s4 + $0x28] sm:$0xff]   ;;  %v4488_v34 = vstv %s283_s12 }
   0xf   : > { %3780 = vmatprep.subr.bf16.mxu1 %v6233_v1  ;;  %3784 = vmatprep.mubr.msk.bf16.mxu1 %vm4236_vm0, %v6233_v1  ;;  %s6391_s9 = smov (!%p271_p3, %s270_s9), 75  ;;  %v4492_v35 = vadd.s32 %v4488_v34, %v4486_v33  ;;  %v286_v36 = vadd.s32 8, %v4486_v33  ;;  %v287_v37 = vadd.s32 16, %v4486_v33  ;;  %v288_v47 = vadd.s32 24, %v4486_v33 }
  0x10   : > { %s3399_s16 = sshll.u32 %s6391_s9, 2  ;;  %v289_v57 = vadd.s32 32, %v4486_v33  ;;  %v290_v63 = vadd.s32 40, %v4486_v33 }
  0x11   : > { %3699 = vmatpush3.bf16.msra.mxu0 %v4040_v3  ;;  %s4323_s19 = scalar_lea.vmem %s6214_s0, %s3399_s16  ;;  %6287 = vst [vmem:[#allocation2_spill] sm:$0xff] %v4492_v35  ;;  %vm362_vm2 = vcmp.lt.s32.totalorder %v4492_v35, 300  ;;  %v4498_v38 = vadd.s32 %v4488_v34, %v286_v36  ;;  %v4505_v43 = vadd.s32 %v4488_v34, %v287_v37  ;;  %v4524_v56 = vadd.s32 %v4488_v34, %v288_v47  ;;  %s5855_s11 = scalar_lea.vmem %s6221_s7, %s3399_s16 }
  0x12   : > { %3781 = vmatpush3.bf16.msra.mxu1 %v4041_v4  ;;  %3700 = vmatprep.subr.bf16.mxu0 %v6233_v1  ;;  %v4044_v7 = vld [vmem:[%s4323_s19] sm:$0xff]   ;;  %v4045_v8 = vld [vmem:[%s4323_s19 + $0x8] sm:$0xff]   ;;  %v4046_v9 = vld [vmem:[%s4323_s19 + $0x10] sm:$0xff]   ;;  %v4539_v4 = vadd.s32 %v4488_v34, %v289_v57 }
  0x13   : > { %3782 = vmatprep.subr.bf16.mxu1 %v6233_v1  ;;  %v4047_v10 = vld [vmem:[%s4323_s19 + $0x18] sm:$0xff]   ;;  %v4048_v11 = vld [vmem:[%s4323_s19 + $0x20] sm:$0xff]   ;;  %v4049_v12 = vld [vmem:[%s4323_s19 + $0x28] sm:$0xff]   ;;  %6288 = vst [vmem:[#allocation3_spill] sm:$0xff] %v4498_v38  ;;  %vm363_vm4 = vcmp.lt.s32.totalorder %v4498_v38, 300  ;;  %vm364_vm5 = vcmp.lt.s32.totalorder %v4505_v43, 300 }
  0x14   : > { %v4050_v13 = vld [vmem:[%s4323_s19 + $0x30] sm:$0xff]   ;;  %v4051_v14 = vld [vmem:[%s4323_s19 + $0x38] sm:$0xff]   ;;  %v4052_v15 = vld [vmem:[%s4323_s19 + $0x40] sm:$0xff]   ;;  %6289 = vst [vmem:[#allocation4_spill] sm:$0xff] %v4505_v43  ;;  %vm365_vm6 = vcmp.lt.s32.totalorder %v4524_v56, 300  ;;  %vm366_vm7 = vcmp.lt.s32.totalorder %v4539_v4, 300 }
  0x15   : > { %3701 = vmatpush3.bf16.msra.mxu0 %v4042_v5  ;;  %v4053_v16 = vld [vmem:[%s4323_s19 + $0x48] sm:$0xff]   ;;  %v4054_v17 = vld [vmem:[%s4323_s19 + $0x50] sm:$0xff]   ;;  %v4055_v18 = vld [vmem:[%s4323_s19 + $0x58] sm:$0xff]   ;;  %6290 = vst [vmem:[#allocation5_spill] sm:$0xff] %v4524_v56 }
  0x16   : > { %3783 = vmatpush3.bf16.msra.mxu1 %v4043_v6  ;;  %3860 = vmatprep.subr.bf16.mxu0 %v6233_v1  ;;  %v4056_v19 = vld [vmem:[%s4323_s19 + $0x60] sm:$0xff]   ;;  %v4057_v22 = vld [vmem:[%s4323_s19 + $0x68] sm:$0xff]   ;;  %v4058_v23 = vld [vmem:[%s4323_s19 + $0x70] sm:$0xff]   ;;  %6291 = vst [vmem:[#allocation6_spill] sm:$0xff] %v4539_v4 }
  0x17   : > { %3944 = vmatprep.subr.bf16.mxu1 %v6233_v1  ;;  %v4059_v24 = vld [vmem:[%s4323_s19 + $0x78] sm:$0xff]   ;;  %v4060_v25 = vld [vmem:[%s4323_s19 + $0x80] sm:$0xff]   ;;  %v4061_v28 = vld [vmem:[%s4323_s19 + $0x88] sm:$0xff]  }
  0x18   : > { %3703 = vmatmul.mubr.msk.bf16.vlgmr.msra.gmra.mxu0 %vm557_vm1, %v4044_v7  ;;  %v4062_v29 = vld [vmem:[%s4323_s19 + $0x90] sm:$0xff]  }
  0x19   : > { %3785 = vmatmul.mubr.msk.bf16.vlgmr.msra.gmra.mxu1 %vm557_vm1, %v4044_v7  ;;  %3706 = vmatprep.mubr.msk.bf16.mxu0 %vm4236_vm0, %v6233_v1 }
  0x1a   : > { %3788 = vmatprep.mubr.msk.bf16.mxu1 %vm4236_vm0, %v6233_v1  ;;  %3945 = vmatpush3.bf16.msra.mxu1 %v4064_v21 }
  0x1b   : > { %3861 = vmatpush3.bf16.msra.mxu0 %v4063_v20  ;;  %3946 = vmatprep.subr.bf16.mxu1 %v6233_v1 }
  0x1c   : > { %3862 = vmatprep.subr.bf16.mxu0 %v6233_v1 }
  0x1e   : > { %3947 = vmatpush3.bf16.msra.mxu1 %v4066_v27 }
  0x1f   : > { %3863 = vmatpush3.bf16.msra.mxu0 %v4065_v26  ;;  %3948 = vmatprep.subr.bf16.mxu1 %v6233_v1 }
  0x20   : > { %3707 = vmatmul.mubr.msk.bf16.gmra.mxu0 %vm557_vm1, %v4045_v8  ;;  %3864 = vmatprep.subr.bf16.mxu0 %v6233_v1 }
  0x21   : > { %3789 = vmatmul.mubr.msk.bf16.gmra.mxu1 %vm557_vm1, %v4045_v8  ;;  %3710 = vmatprep.mubr.msk.bf16.mxu0 %vm4236_vm0, %v6233_v1 }
  0x22   : > { %3792 = vmatprep.mubr.msk.bf16.mxu1 %vm4236_vm0, %v6233_v1  ;;  %3949 = vmatpush3.bf16.msra.mxu1 %v4068_v31 }
  0x23   : > { %3865 = vmatpush3.bf16.msra.mxu0 %v4067_v30  ;;  %3950 = vmatprep.subr.bf16.mxu1 %v6233_v1 }
  0x24   : > { %3866 = vmatprep.subr.bf16.mxu0 %v6233_v1 }
  0x28   : > { %3711 = vmatmul.mubr.msk.bf16.gmra.mxu0 %vm557_vm1, %v4046_v9 }
  0x29   : > { %3793 = vmatmul.mubr.msk.bf16.gmra.mxu1 %vm557_vm1, %v4046_v9  ;;  %3714 = vmatprep.mubr.msk.bf16.mxu0 %vm4236_vm0, %v6233_v1  ;;  %v4546_v9 = vadd.s32 %v4488_v34, %v290_v63  ;;  %v295_v63 = vadd.s32 80, %v4486_v33 }
  0x2a   : > { %3796 = vmatprep.mubr.msk.bf16.mxu1 %vm4236_vm0, %v6233_v1 }
  0x2b   : > { %6292 = vst [vmem:[#allocation7_spill] sm:$0xff] %v4546_v9  ;;  %vm367_vm8 = vcmp.lt.s32.totalorder %v4546_v9, 300 }
  0x30   : > { %3715 = vmatmul.mubr.msk.bf16.gmra.mxu0 %vm557_vm1, %v4047_v10 }
  0x31   : > { %3797 = vmatmul.mubr.msk.bf16.gmra.mxu1 %vm557_vm1, %v4047_v10  ;;  %3718 = vmatprep.mubr.msk.bf16.mxu0 %vm4236_vm0, %v6233_v1  ;;  %v291_v10 = vadd.s32 48, %v4486_v33 }
  0x32   : > { %3800 = vmatprep.mubr.msk.bf16.mxu1 %vm4236_vm0, %v6233_v1 }
  0x38   : > { %3719 = vmatmul.mubr.msk.bf16.gmra.mxu0 %vm557_vm1, %v4048_v11 }
  0x39   : > { %3801 = vmatmul.mubr.msk.bf16.gmra.mxu1 %vm557_vm1, %v4048_v11  ;;  %3722 = vmatprep.mubr.msk.bf16.mxu0 %vm4236_vm0, %v6233_v1 }
  0x3a   : > { %3804 = vmatprep.mubr.msk.bf16.mxu1 %vm4236_vm0, %v6233_v1 }
  0x40   : > { %3723 = vmatmul.mubr.msk.bf16.gmra.mxu0 %vm557_vm1, %v4049_v12 }
  0x41   : > { %3805 = vmatmul.mubr.msk.bf16.gmra.mxu1 %vm557_vm1, %v4049_v12  ;;  %3726 = vmatprep.mubr.msk.bf16.mxu0 %vm4236_vm0, %v6233_v1 }
  0x42   : > { %3808 = vmatprep.mubr.msk.bf16.mxu1 %vm4236_vm0, %v6233_v1 }
  0x48   : > { %3727 = vmatmul.mubr.msk.bf16.gmra.mxu0 %vm557_vm1, %v4050_v13 }
  0x49   : > { %3809 = vmatmul.mubr.msk.bf16.gmra.mxu1 %vm557_vm1, %v4050_v13  ;;  %3730 = vmatprep.mubr.msk.bf16.mxu0 %vm4236_vm0, %v6233_v1 }
  0x4a   : > { %3812 = vmatprep.mubr.msk.bf16.mxu1 %vm4236_vm0, %v6233_v1 }
  0x50   : > { %3731 = vmatmul.mubr.msk.bf16.gmra.mxu0 %vm557_vm1, %v4051_v14 }
  0x51   : > { %3813 = vmatmul.mubr.msk.bf16.gmra.mxu1 %vm557_vm1, %v4051_v14  ;;  %3734 = vmatprep.mubr.msk.bf16.mxu0 %vm4236_vm0, %v6233_v1 }
  0x52   : > { %3816 = vmatprep.mubr.msk.bf16.mxu1 %vm4236_vm0, %v6233_v1 }
  0x58   : > { %3735 = vmatmul.mubr.msk.bf16.gmra.mxu0 %vm557_vm1, %v4052_v15 }
  0x59   : > { %3817 = vmatmul.mubr.msk.bf16.gmra.mxu1 %vm557_vm1, %v4052_v15  ;;  %3738 = vmatprep.mubr.msk.bf16.mxu0 %vm4236_vm0, %v6233_v1 }
  0x5a   : > { %3820 = vmatprep.mubr.msk.bf16.mxu1 %vm4236_vm0, %v6233_v1 }
  0x60   : > { %3739 = vmatmul.mubr.msk.bf16.gmra.mxu0 %vm557_vm1, %v4053_v16 }
  0x61   : > { %3821 = vmatmul.mubr.msk.bf16.gmra.mxu1 %vm557_vm1, %v4053_v16  ;;  %3742 = vmatprep.mubr.msk.bf16.mxu0 %vm4236_vm0, %v6233_v1 }
  0x62   : > { %3824 = vmatprep.mubr.msk.bf16.mxu1 %vm4236_vm0, %v6233_v1 }
  0x68   : > { %3743 = vmatmul.mubr.msk.bf16.gmra.mxu0 %vm557_vm1, %v4054_v17 }
  0x69   : > { %3825 = vmatmul.mubr.msk.bf16.gmra.mxu1 %vm557_vm1, %v4054_v17  ;;  %3746 = vmatprep.mubr.msk.bf16.mxu0 %vm4236_vm0, %v6233_v1 }
  0x6a   : > { %3828 = vmatprep.mubr.msk.bf16.mxu1 %vm4236_vm0, %v6233_v1 }
  0x70   : > { %3747 = vmatmul.mubr.msk.bf16.gmra.mxu0 %vm557_vm1, %v4055_v18 }
  0x71   : > { %3829 = vmatmul.mubr.msk.bf16.gmra.mxu1 %vm557_vm1, %v4055_v18  ;;  %3750 = vmatprep.mubr.msk.bf16.mxu0 %vm4236_vm0, %v6233_v1 }
  0x72   : > { %3832 = vmatprep.mubr.msk.bf16.mxu1 %vm4236_vm0, %v6233_v1 }
  0x78   : > { %3751 = vmatmul.mubr.msk.bf16.gmra.mxu0 %vm557_vm1, %v4056_v19 }
  0x79   : > { %3833 = vmatmul.mubr.msk.bf16.gmra.mxu1 %vm557_vm1, %v4056_v19  ;;  %3754 = vmatprep.mubr.msk.bf16.mxu0 %vm4236_vm0, %v6233_v1  ;;  %v4561_v19 = vadd.s32 %v4488_v34, %v291_v10 }
  0x7a   : > { %3836 = vmatprep.mubr.msk.bf16.mxu1 %vm4236_vm0, %v6233_v1 }
  0x7b   : > { %6293 = vst [vmem:[#allocation8_spill] sm:$0xff] %v4561_v19  ;;  %vm368_vm9 = vcmp.lt.s32.totalorder %v4561_v19, 300 }
  0x80   : > { %3755 = vmatmul.mubr.msk.bf16.gmra.mxu0 %vm557_vm1, %v4057_v22 }
  0x81   : > { %3837 = vmatmul.mubr.msk.bf16.gmra.mxu1 %vm557_vm1, %v4057_v22  ;;  %3758 = vmatprep.mubr.msk.bf16.mxu0 %vm4236_vm0, %v6233_v1 }
  0x82   : > { %3840 = vmatprep.mubr.msk.bf16.mxu1 %vm4236_vm0, %v6233_v1 }
  0x88   : > { %3759 = vmatmul.mubr.msk.bf16.gmra.mxu0 %vm557_vm1, %v4058_v23 }
  0x89   : > { %3841 = vmatmul.mubr.msk.bf16.gmra.mxu1 %vm557_vm1, %v4058_v23  ;;  %3762 = vmatprep.mubr.msk.bf16.mxu0 %vm4236_vm0, %v6233_v1 }
  0x8a   : > { %3844 = vmatprep.mubr.msk.bf16.mxu1 %vm4236_vm0, %v6233_v1 }
  0x90   : > { %3763 = vmatmul.mubr.msk.bf16.gmra.mxu0 %vm557_vm1, %v4059_v24 }
  0x91   : > { %3845 = vmatmul.mubr.msk.bf16.gmra.mxu1 %vm557_vm1, %v4059_v24  ;;  %3766 = vmatprep.mubr.msk.bf16.mxu0 %vm4236_vm0, %v6233_v1  ;;  %v292_v24 = vadd.s32 56, %v4486_v33 }
  0x92   : > { %3848 = vmatprep.mubr.msk.bf16.mxu1 %vm4236_vm0, %v6233_v1 }
  0x93   : > { %v4581_v37 = vadd.s32 %v4488_v34, %v292_v24 }
  0x95   : > { %6294 = vst [vmem:[#allocation9_spill] sm:$0xff] %v4581_v37  ;;  %vm369_vm10 = vcmp.lt.s32.totalorder %v4581_v37, 300 }
  0x98   : > { %3767 = vmatmul.mubr.msk.bf16.gmra.mxu0 %vm557_vm1, %v4060_v25 }
  0x99   : > { %3849 = vmatmul.mubr.msk.bf16.gmra.mxu1 %vm557_vm1, %v4060_v25  ;;  %3770 = vmatprep.mubr.msk.bf16.mxu0 %vm4236_vm0, %v6233_v1 }
  0x9a   : > { %3852 = vmatprep.mubr.msk.bf16.mxu1 %vm4236_vm0, %v6233_v1 }
  0xa0   : > { %3771 = vmatmul.mubr.msk.bf16.gmra.mxu0 %vm557_vm1, %v4061_v28 }
  0xa1   : > { %3853 = vmatmul.mubr.msk.bf16.gmra.mxu1 %vm557_vm1, %v4061_v28  ;;  %3774 = vmatprep.mubr.msk.bf16.mxu0 %vm4236_vm0, %v6233_v1 }
  0xa2   : > { %3856 = vmatprep.mubr.msk.bf16.mxu1 %vm4236_vm0, %v6233_v1 }
  0xa8   : > { %3775 = vmatmul.mubr.msk.bf16.gmra.mxu0 %vm557_vm1, %v4062_v29 }
  0xa9   : > { %3857 = vmatmul.mubr.msk.bf16.gmra.mxu1 %vm557_vm1, %v4062_v29  ;;  %3868 = vmatprep.mubr.msk.bf16.mxu0 %vm4236_vm0, %v6233_v1  ;;  %v293_v29 = vadd.s32 64, %v4486_v33 }
  0xaa   : > { %3952 = vmatprep.mubr.msk.bf16.mxu1 %vm4236_vm0, %v6233_v1 }
  0xd8   : > { %v649_v39 = vpop.f32.mrf.mxu0 }
  0xd9   : > { %v859_v40 = vpop.f32.mrf.mxu1 }
  0xda   : > { %v4502_v41 = vsel %vm362_vm2, %v859_v40, %v649_v39  ;;  %v3704_v42 = vpop.f32.mrf.mxu0 }
  0xdb   : > { %v3786_v44 = vpop.f32.mrf.mxu1  ;;  %v1125_v45 = vsel %vm1124_vm3, %v4502_v41, 0.0  ;;  %v1278_v46 = vmul.f32 %v4502_v41, %v4502_v41 }
  0xdc   : > { %1126 = vadd.xlane.f32.xlu0 %v1125_v45  ;;  %v652_v48 = vpop.f32.mrf.mxu0  ;;  %v4588_v45 = vadd.s32 %v4488_v34, %v293_v29  ;;  %v4070_v29 = vld [vmem:[%s6218_s4 + $0x20] sm:$0xff]  }
  0xdd   : > { %v862_v49 = vpop.f32.mrf.mxu1  ;;  %v1316_v50 = vsel %vm1124_vm3, %v1278_v46, 0.0  ;;  %v294_v46 = vadd.s32 72, %v4486_v33  ;;  %3951 = vmatpush3.bf16.msra.mxu1 %v4070_v29  ;;  %v301_v29 = vadd.s32 128, %v4486_v33 }
  0xde   : > { %v4516_v51 = vsel %vm363_vm4, %v862_v49, %v652_v48  ;;  %1317 = vadd.xlane.f32.xlu1 %v1316_v50  ;;  %v3705_v52 = vpop.f32.mrf.mxu0  ;;  %6295 = vst [vmem:[#allocation10_spill] sm:$0xff] %v4588_v45  ;;  %vm370_vm11 = vcmp.lt.s32.totalorder %v4588_v45, 300 }
  0xdf   : > { %v3787_v53 = vpop.f32.mrf.mxu1  ;;  %v1128_v54 = vsel %vm1124_vm3, %v4516_v51, 0.0  ;;  %v1279_v55 = vmul.f32 %v4516_v51, %v4516_v51  ;;  %v4603_v57 = vadd.s32 %v4488_v34, %v294_v46 }
  0xe0   : > { %1129 = vadd.xlane.f32.xlu0 %v1128_v54  ;;  %v657_v58 = vpop.f32.mrf.mxu0 }
  0xe1   : > { %v867_v59 = vpop.f32.mrf.mxu1  ;;  %v1319_v60 = vsel %vm1124_vm3, %v1279_v55, 0.0  ;;  %6296 = vst [vmem:[#allocation11_spill] sm:$0xff] %v4603_v57  ;;  %vm371_vm12 = vcmp.lt.s32.totalorder %v4603_v57, 300 }
  0xe2   : > { %v4530_v61 = vsel %vm364_vm5, %v867_v59, %v657_v58  ;;  %1320 = vadd.xlane.f32.xlu1 %v1319_v60  ;;  %v3708_v62 = vpop.f32.mrf.mxu0 }
  0xe3   : > { %v3790_v0 = vpop.f32.mrf.mxu1  ;;  %v1131_v2 = vsel %vm1124_vm3, %v4530_v61, 0.0  ;;  %v1280_v3 = vmul.f32 %v4530_v61, %v4530_v61 }
  0xe4   : > { %1132 = vadd.xlane.f32.xlu0 %v1131_v2  ;;  %v660_v5 = vpop.f32.mrf.mxu0 }
  0xe5   : > { %v870_v6 = vpop.f32.mrf.mxu1  ;;  %v1322_v12 = vsel %vm1124_vm3, %v1280_v3, 0.0 }
  0xe6   : > { %v4543_v7 = vsel %vm365_vm6, %v870_v6, %v660_v5  ;;  %v3709_v8 = vpop.f32.mrf.mxu0  ;;  %v296_v6 = vadd.s32 88, %v4486_v33 }
  0xe7   : > { %v3791_v11 = vpop.f32.mrf.mxu1  ;;  %v1134_v13 = vsel %vm1124_vm3, %v4543_v7, 0.0  ;;  %v1281_v14 = vmul.f32 %v4543_v7, %v4543_v7 }
  0xe8   : > { %1323 = vadd.xlane.f32.xlu0 %v1322_v12  ;;  %1135 = vadd.xlane.f32.xlu1 %v1134_v13  ;;  %v665_v15 = vpop.f32.mrf.mxu0  ;;  %v4623_v13 = vadd.s32 %v4488_v34, %v295_v63 }
  0xe9   : > { %v875_v16 = vpop.f32.mrf.mxu1  ;;  %v1325_v21 = vsel %vm1124_vm3, %v1281_v14, 0.0 }
  0xea   : > { %v4557_v17 = vsel %vm366_vm7, %v875_v16, %v665_v15  ;;  %v3712_v18 = vpop.f32.mrf.mxu0  ;;  %6297 = vst [vmem:[#allocation12_spill] sm:$0xff] %v4623_v13  ;;  %vm372_vm13 = vcmp.lt.s32.totalorder %v4623_v13, 300 }
  0xeb   : > { %v3794_v20 = vpop.f32.mrf.mxu1  ;;  %v1137_v22 = vsel %vm1124_vm3, %v4557_v17, 0.0  ;;  %v1282_v23 = vmul.f32 %v4557_v17, %v4557_v17 }
  0xec   : > { %1326 = vadd.xlane.f32.xlu1 %v1325_v21  ;;  %1138 = vadd.xlane.f32.xlu0 %v1137_v22  ;;  %v668_v25 = vpop.f32.mrf.mxu0  ;;  %v4630_v20 = vadd.s32 %v4488_v34, %v296_v6  ;;  %v297_v21 = vadd.s32 96, %v4486_v33 }
  0xed   : > { %v878_v26 = vpop.f32.mrf.mxu1  ;;  %v1328_v31 = vsel %vm1124_vm3, %v1282_v23, 0.0 }
  0xee   : > { %v4571_v27 = vsel %vm367_vm8, %v878_v26, %v668_v25  ;;  %v3713_v28 = vpop.f32.mrf.mxu0  ;;  %6298 = vst [vmem:[#allocation13_spill] sm:$0xff] %v4630_v20  ;;  %vm373_vm14 = vcmp.lt.s32.totalorder %v4630_v20, 300 }
  0xef   : > { %v3795_v30 = vpop.f32.mrf.mxu1  ;;  %v1140_v32 = vsel %vm1124_vm3, %v4571_v27, 0.0  ;;  %v1283_v36 = vmul.f32 %v4571_v27, %v4571_v27  ;;  %v4069_v28 = vld [vmem:[%s6218_s4] sm:$0xff]  }
  0xf0   : > { %1329 = vadd.xlane.f32.xlu0 %v1328_v31  ;;  %1141 = vadd.xlane.f32.xlu1 %v1140_v32  ;;  %v673_v39 = vpop.f32.mrf.mxu0 }
  0xf1   : > { %v883_v40 = vpop.f32.mrf.mxu1  ;;  %v1331_v48 = vsel %vm1124_vm3, %v1283_v36, 0.0  ;;  %v4651_v36 = vadd.s32 %v4488_v34, %v297_v21  ;;  %3867 = vmatpush3.bf16.msra.mxu0 %v4069_v28 }
  0xf2   : > { %v4585_v42 = vsel %vm368_vm9, %v883_v40, %v673_v39  ;;  %v3716_v44 = vpop.f32.mrf.mxu0 }
  0xf3   : > { %v3798_v47 = vpop.f32.mrf.mxu1  ;;  %v1143_v49 = vsel %vm1124_vm3, %v4585_v42, 0.0  ;;  %v1284_v50 = vmul.f32 %v4585_v42, %v4585_v42  ;;  %6299 = vst [vmem:[#allocation14_spill] sm:$0xff] %v4651_v36  ;;  %vm6222_vm15 = vcmp.lt.s32.totalorder %v4651_v36, 300 }
  0xf4   : > { %1332 = vadd.xlane.f32.xlu1 %v1331_v48  ;;  %1144 = vadd.xlane.f32.xlu0 %v1143_v49  ;;  %v676_v52 = vpop.f32.mrf.mxu0  ;;  %v298_v47 = vadd.s32 104, %v4486_v33 }
  0xf5   : > { %v886_v53 = vpop.f32.mrf.mxu1  ;;  %v1334_v59 = vsel %vm1124_vm3, %v1284_v50, 0.0 }
  0xf6   : > { %v4599_v54 = vsel %vm369_vm10, %v886_v53, %v676_v52  ;;  %v3717_v55 = vpop.f32.mrf.mxu0  ;;  %v299_v53 = vadd.s32 112, %v4486_v33 }
  0xf7   : > { %v3799_v58 = vpop.f32.mrf.mxu1  ;;  %v1146_v60 = vsel %vm1124_vm3, %v4599_v54, 0.0  ;;  %v1285_v62 = vmul.f32 %v4599_v54, %v4599_v54 }
  0xf8   : > { %1335 = vadd.xlane.f32.xlu0 %v1334_v59  ;;  %1147 = vadd.xlane.f32.xlu1 %v1146_v60  ;;  %v681_v0 = vpop.f32.mrf.mxu0  ;;  %v4678_v6 = vadd.s32 %v4488_v34, %v299_v53 }
  0xf9   : > { %v891_v2 = vpop.f32.mrf.mxu1  ;;  %v1337_v10 = vsel %vm1124_vm3, %v1285_v62, 0.0  ;;  %v4671_v62 = vadd.s32 %v4488_v34, %v298_v47 }
  0xfa   : > { %v4613_v3 = vsel %vm370_vm11, %v891_v2, %v681_v0  ;;  %v3720_v5 = vpop.f32.mrf.mxu0  ;;  %6301 = vst [vmem:[#allocation16_spill] sm:$0xff] %v4678_v6 }
  0xfb   : > { %v3802_v8 = vpop.f32.mrf.mxu1  ;;  %v1149_v11 = vsel %vm1124_vm3, %v4613_v3, 0.0  ;;  %v1286_v12 = vmul.f32 %v4613_v3, %v4613_v3  ;;  %6300 = vst [vmem:[#allocation15_spill] sm:$0xff] %v4671_v62  ;;  %vm6223_vm1 = vcmp.lt.s32.totalorder %v4671_v62, 300 }
  0xfc   : > { %1338 = vadd.xlane.f32.xlu1 %v1337_v10  ;;  %1150 = vadd.xlane.f32.xlu0 %v1149_v11  ;;  %v684_v14 = vpop.f32.mrf.mxu0  ;;  %v300_v8 = vadd.s32 120, %v4486_v33 }
  0xfd   : > { %v894_v15 = vpop.f32.mrf.mxu1  ;;  %v1340_v23 = vsel %vm1124_vm3, %v1286_v12, 0.0 }
  0xfe   : > { %v4627_v16 = vsel %vm371_vm12, %v894_v15, %v684_v14  ;;  %v3721_v18 = vpop.f32.mrf.mxu0 }
  0xff   : > { %v3803_v22 = vpop.f32.mrf.mxu1  ;;  %v1152_v24 = vsel %vm1124_vm3, %v4627_v16, 0.0  ;;  %v1287_v25 = vmul.f32 %v4627_v16, %v4627_v16 }
 0x100   : > { %1341 = vadd.xlane.f32.xlu0 %v1340_v23  ;;  %1153 = vadd.xlane.f32.xlu1 %v1152_v24  ;;  %v689_v26 = vpop.f32.mrf.mxu0  ;;  %v4693_v23 = vadd.s32 %v4488_v34, %v300_v8 }
 0x101   : > { %v899_v30 = vpop.f32.mrf.mxu1  ;;  %v1343_v40 = vsel %vm1124_vm3, %v1287_v25, 0.0 }
 0x102   : > { %v4647_v31 = vsel %vm372_vm13, %v899_v30, %v689_v26  ;;  %v3724_v32 = vpop.f32.mrf.mxu0  ;;  %6302 = vst [vmem:[#allocation17_spill] sm:$0xff] %v4693_v23 }
 0x103   : > { %v3806_v39 = vpop.f32.mrf.mxu1  ;;  %v1155_v44 = vsel %vm1124_vm3, %v4647_v31, 0.0  ;;  %v1288_v46 = vmul.f32 %v4647_v31, %v4647_v31 }
 0x104   : > { %1344 = vadd.xlane.f32.xlu1 %v1343_v40  ;;  %1156 = vadd.xlane.f32.xlu0 %v1155_v44  ;;  %v692_v48 = vpop.f32.mrf.mxu0  ;;  %v302_v44 = vadd.s32 136, %v4486_v33 }
 0x105   : > { %v902_v49 = vpop.f32.mrf.mxu1  ;;  %v1346_v58 = vsel %vm1124_vm3, %v1288_v46, 0.0 }
 0x106   : > { %v4661_v50 = vsel %vm373_vm14, %v902_v49, %v692_v48  ;;  %v3725_v52 = vpop.f32.mrf.mxu0 }
 0x107   : > { %v3807_v55 = vpop.f32.mrf.mxu1  ;;  %v1158_v59 = vsel %vm1124_vm3, %v4661_v50, 0.0  ;;  %v1289_v60 = vmul.f32 %v4661_v50, %v4661_v50  ;;  %v4713_v52 = vadd.s32 %v4488_v34, %v301_v29 }
 0x108   : > { %1347 = vadd.xlane.f32.xlu0 %v1346_v58  ;;  %1159 = vadd.xlane.f32.xlu1 %v1158_v59  ;;  %v697_v63 = vpop.f32.mrf.mxu0 }
 0x109   : > { %v907_v0 = vpop.f32.mrf.mxu1  ;;  %v1349_v11 = vsel %vm1124_vm3, %v1289_v60, 0.0  ;;  %6303 = vst [vmem:[#allocation18_spill] sm:$0xff] %v4713_v52  ;;  %v4720_v60 = vadd.s32 %v4488_v34, %v302_v44  ;;  %v305_v44 = vadd.s32 160, %v4486_v33 }
 0x10a   : > { %v4675_v2 = vsel %vm6222_vm15, %v907_v0, %v697_v63  ;;  %v3728_v5 = vpop.f32.mrf.mxu0  ;;  %vm6224_vm15 = vcmp.lt.s32.totalorder %v4678_v6, 300  ;;  %v303_v63 = vadd.s32 144, %v4486_v33 }
 0x10b   : > { %v3810_v10 = vpop.f32.mrf.mxu1  ;;  %v1161_v12 = vsel %vm1124_vm3, %v4675_v2, 0.0  ;;  %v1290_v14 = vmul.f32 %v4675_v2, %v4675_v2  ;;  %6304 = vst [vmem:[#allocation19_spill] sm:$0xff] %v4720_v60 }
 0x10c   : > { %1350 = vadd.xlane.f32.xlu1 %v1349_v11  ;;  %1162 = vadd.xlane.f32.xlu0 %v1161_v12  ;;  %v700_v15 = vpop.f32.mrf.mxu0 }
 0x10d   : > { %v910_v18 = vpop.f32.mrf.mxu1  ;;  %v1352_v25 = vsel %vm1124_vm3, %v1290_v14, 0.0 }
 0x10e   : > { %v4689_v21 = vsel %vm6223_vm1, %v910_v18, %v700_v15  ;;  %v3729_v22 = vpop.f32.mrf.mxu0  ;;  %vm6225_vm1 = vcmp.lt.s32.totalorder %v4693_v23, 300  ;;  %v4735_v18 = vadd.s32 %v4488_v34, %v303_v63 }
 0x10f   : > { %v3811_v24 = vpop.f32.mrf.mxu1  ;;  %v1164_v26 = vsel %vm1124_vm3, %v4689_v21, 0.0  ;;  %v1291_v28 = vmul.f32 %v4689_v21, %v4689_v21 }
 0x110   : > { %1353 = vadd.xlane.f32.xlu0 %v1352_v25  ;;  %1165 = vadd.xlane.f32.xlu1 %v1164_v26  ;;  %v705_v30 = vpop.f32.mrf.mxu0  ;;  %6305 = vst [vmem:[#allocation20_spill] sm:$0xff] %v4735_v18 }
 0x111   : > { %v915_v32 = vpop.f32.mrf.mxu1  ;;  %v1355_v47 = vsel %vm1124_vm3, %v1291_v28, 0.0  ;;  %v304_v28 = vadd.s32 152, %v4486_v33 }
 0x112   : > { %v4703_v39 = vsel %vm6224_vm15, %v915_v32, %v705_v30  ;;  %v3732_v40 = vpop.f32.mrf.mxu0  ;;  %vm6226_vm15 = vcmp.lt.s32.totalorder %v4713_v52, 300 }
 0x113   : > { %v3814_v46 = vpop.f32.mrf.mxu1  ;;  %v1167_v48 = vsel %vm1124_vm3, %v4703_v39, 0.0  ;;  %v1292_v49 = vmul.f32 %v4703_v39, %v4703_v39 }
 0x114   : > { %1356 = vadd.xlane.f32.xlu1 %v1355_v47  ;;  %1168 = vadd.xlane.f32.xlu0 %v1167_v48  ;;  %v708_v53 = vpop.f32.mrf.mxu0 }
 0x115   : > { %v918_v55 = vpop.f32.mrf.mxu1  ;;  %v1358_v5 = vsel %vm1124_vm3, %v1292_v49, 0.0 }
 0x116   : > { %v4717_v58 = vsel %vm6225_vm1, %v918_v55, %v708_v53  ;;  %v3733_v59 = vpop.f32.mrf.mxu0  ;;  %vm6227_vm1 = vcmp.lt.s32.totalorder %v4720_v60, 300  ;;  %v4755_v53 = vadd.s32 %v4488_v34, %v304_v28 }
 0x117   : > { %v3815_v0 = vpop.f32.mrf.mxu1  ;;  %v1170_v8 = vsel %vm1124_vm3, %v4717_v58, 0.0  ;;  %v1293_v10 = vmul.f32 %v4717_v58, %v4717_v58 }
 0x118   : > { %1359 = vadd.xlane.f32.xlu0 %v1358_v5  ;;  %1171 = vadd.xlane.f32.xlu1 %v1170_v8  ;;  %v713_v11 = vpop.f32.mrf.mxu0  ;;  %6306 = vst [vmem:[#allocation21_spill] sm:$0xff] %v4755_v53  ;;  %v4762_v5 = vadd.s32 %v4488_v34, %v305_v44  ;;  %v306_v8 = vadd.s32 168, %v4486_v33 }
 0x119   : > { %v923_v12 = vpop.f32.mrf.mxu1  ;;  %v1361_v24 = vsel %vm1124_vm3, %v1293_v10, 0.0 }
 0x11a   : > { %v4731_v14 = vsel %vm6226_vm15, %v923_v12, %v713_v11  ;;  %v3736_v15 = vpop.f32.mrf.mxu0  ;;  %vm6228_vm15 = vcmp.lt.s32.totalorder %v4735_v18, 300  ;;  %6307 = vst [vmem:[#allocation22_spill] sm:$0xff] %v4762_v5  ;;  %v4777_v28 = vadd.s32 %v4488_v34, %v306_v8 }
 0x11b   : > { %v3818_v22 = vpop.f32.mrf.mxu1  ;;  %v1173_v25 = vsel %vm1124_vm3, %v4731_v14, 0.0  ;;  %v1294_v26 = vmul.f32 %v4731_v14, %v4731_v14 }
 0x11c   : > { %1362 = vadd.xlane.f32.xlu1 %v1361_v24  ;;  %1174 = vadd.xlane.f32.xlu0 %v1173_v25  ;;  %v716_v29 = vpop.f32.mrf.mxu0  ;;  %6308 = vst [vmem:[#allocation23_spill] sm:$0xff] %v4777_v28 }
 0x11d   : > { %v926_v30 = vpop.f32.mrf.mxu1  ;;  %v1364_v47 = vsel %vm1124_vm3, %v1294_v26, 0.0 }
 0x11e   : > { %v4745_v32 = vsel %vm6227_vm1, %v926_v30, %v716_v29  ;;  %v3737_v40 = vpop.f32.mrf.mxu0  ;;  %vm6229_vm1 = vcmp.lt.s32.totalorder %v4755_v53, 300 }
 0x11f   : > { %v3819_v46 = vpop.f32.mrf.mxu1  ;;  %v1176_v48 = vsel %vm1124_vm3, %v4745_v32, 0.0  ;;  %v1295_v49 = vmul.f32 %v4745_v32, %v4745_v32 }
 0x120   : > { %1365 = vadd.xlane.f32.xlu0 %v1364_v47  ;;  %1177 = vadd.xlane.f32.xlu1 %v1176_v48  ;;  %v721_v55 = vpop.f32.mrf.mxu0  ;;  %v307_v46 = vadd.s32 176, %v4486_v33 }
 0x121   : > { %v931_v59 = vpop.f32.mrf.mxu1  ;;  %v1367_v11 = vsel %vm1124_vm3, %v1295_v49, 0.0 }
 0x122   : > { %v4759_v63 = vsel %vm6228_vm15, %v931_v59, %v721_v55  ;;  %v3740_v0 = vpop.f32.mrf.mxu0  ;;  %vm6230_vm15 = vcmp.lt.s32.totalorder %v4762_v5, 300  ;;  %v308_v59 = vadd.s32 184, %v4486_v33 }
 0x123   : > { %v3822_v10 = vpop.f32.mrf.mxu1  ;;  %v1179_v12 = vsel %vm1124_vm3, %v4759_v63, 0.0  ;;  %v1296_v15 = vmul.f32 %v4759_v63, %v4759_v63 }
 0x124   : > { %1368 = vadd.xlane.f32.xlu1 %v1367_v11  ;;  %1180 = vadd.xlane.f32.xlu0 %v1179_v12  ;;  %v724_v22 = vpop.f32.mrf.mxu0  ;;  %v4797_v12 = vadd.s32 %v4488_v34, %v307_v46 }
 0x125   : > { %v934_v24 = vpop.f32.mrf.mxu1  ;;  %v1370_v30 = vsel %vm1124_vm3, %v1296_v15, 0.0 }
 0x126   : > { %v4773_v25 = vsel %vm6229_vm1, %v934_v24, %v724_v22  ;;  %v3741_v26 = vpop.f32.mrf.mxu0  ;;  %vm6231_vm1 = vcmp.lt.s32.totalorder %v4777_v28, 300  ;;  %6309 = vst [vmem:[#allocation24_spill] sm:$0xff] %v4797_v12 }
 0x127   : > { %v3823_v29 = vpop.f32.mrf.mxu1  ;;  %v1182_v40 = vsel %vm1124_vm3, %v4773_v25, 0.0  ;;  %v1297_v44 = vmul.f32 %v4773_v25, %v4773_v25 }
 0x128   : > { %1371 = vadd.xlane.f32.xlu0 %v1370_v30  ;;  %1183 = vadd.xlane.f32.xlu1 %v1182_v40  ;;  %v729_v47 = vpop.f32.mrf.mxu0  ;;  %v4804_v29 = vadd.s32 %v4488_v34, %v308_v59  ;;  %v309_v30 = vadd.s32 192, %v4486_v33 }
 0x129   : > { %v939_v48 = vpop.f32.mrf.mxu1  ;;  %v1373_v8 = vsel %vm1124_vm3, %v1297_v44, 0.0 }
 0x12a   : > { %v4787_v49 = vsel %vm6230_vm15, %v939_v48, %v729_v47  ;;  %v3744_v55 = vpop.f32.mrf.mxu0  ;;  %6310 = vst [vmem:[#allocation25_spill] sm:$0xff] %v4804_v29  ;;  %vm6232_vm15 = vcmp.lt.s32.totalorder %v4797_v12, 300 }
 0x12b   : > { %v3826_v0 = vpop.f32.mrf.mxu1  ;;  %v1185_v10 = vsel %vm1124_vm3, %v4787_v49, 0.0  ;;  %v1298_v11 = vmul.f32 %v4787_v49, %v4787_v49 }
 0x12c   : > { %1374 = vadd.xlane.f32.xlu1 %v1373_v8  ;;  %1186 = vadd.xlane.f32.xlu0 %v1185_v10  ;;  %v732_v15 = vpop.f32.mrf.mxu0  ;;  %v4819_v8 = vadd.s32 %v4488_v34, %v309_v30 }
 0x12d   : > { %v942_v22 = vpop.f32.mrf.mxu1  ;;  %v1376_v44 = vsel %vm1124_vm3, %v1298_v11, 0.0 }
 0x12e   : > { %v4801_v24 = vsel %vm6231_vm1, %v942_v22, %v732_v15  ;;  %v3745_v26 = vpop.f32.mrf.mxu0  ;;  %vm6236_vm1 = vcmp.lt.s32.totalorder %v4804_v29, 300  ;;  %6311 = vst [vmem:[#allocation26_spill] sm:$0xff] %v4819_v8 }
 0x12f   : > { %v3827_v40 = vpop.f32.mrf.mxu1  ;;  %v1188_v46 = vsel %vm1124_vm3, %v4801_v24, 0.0  ;;  %v1299_v47 = vmul.f32 %v4801_v24, %v4801_v24  ;;  %v310_v26 = vadd.s32 200, %v4486_v33 }
 0x130   : > { %1377 = vadd.xlane.f32.xlu0 %v1376_v44  ;;  %1189 = vadd.xlane.f32.xlu1 %v1188_v46  ;;  %v737_v48 = vpop.f32.mrf.mxu0 }
 0x131   : > { %v947_v55 = vpop.f32.mrf.mxu1  ;;  %v1379_v11 = vsel %vm1124_vm3, %v1299_v47, 0.0  ;;  %v311_v47 = vadd.s32 208, %v4486_v33 }
 0x132   : > { %v4815_v59 = vsel %vm6232_vm15, %v947_v55, %v737_v48  ;;  %v3748_v0 = vpop.f32.mrf.mxu0  ;;  %vm6237_vm15 = vcmp.lt.s32.totalorder %v4819_v8, 300 }
 0x133   : > { %v3830_v10 = vpop.f32.mrf.mxu1  ;;  %v1191_v15 = vsel %vm1124_vm3, %v4815_v59, 0.0  ;;  %v1300_v22 = vmul.f32 %v4815_v59, %v4815_v59 }
 0x134   : > { %1380 = vadd.xlane.f32.xlu1 %v1379_v11  ;;  %1192 = vadd.xlane.f32.xlu0 %v1191_v15  ;;  %v740_v40 = vpop.f32.mrf.mxu0  ;;  %v4839_v11 = vadd.s32 %v4488_v34, %v310_v26 }
 0x135   : > { %v950_v44 = vpop.f32.mrf.mxu1  ;;  %v1382_v55 = vsel %vm1124_vm3, %v1300_v22, 0.0  ;;  %v4846_v22 = vadd.s32 %v4488_v34, %v311_v47 }
 0x136   : > { %v4829_v46 = vsel %vm6236_vm1, %v950_v44, %v740_v40  ;;  %v3749_v30 = vpop.f32.mrf.mxu0  ;;  %6312 = vst [vmem:[#allocation27_spill] sm:$0xff] %v4839_v11  ;;  %vm6239_vm1 = vcmp.lt.s32.totalorder %v4839_v11, 300 }
 0x137   : > { %v3831_v48 = vpop.f32.mrf.mxu1  ;;  %v1194_v0 = vsel %vm1124_vm3, %v4829_v46, 0.0  ;;  %v1301_v10 = vmul.f32 %v4829_v46, %v4829_v46  ;;  %6313 = vst [vmem:[#allocation28_spill] sm:$0xff] %v4846_v22 }
 0x138   : > { %1383 = vadd.xlane.f32.xlu0 %v1382_v55  ;;  %1195 = vadd.xlane.f32.xlu1 %v1194_v0  ;;  %v745_v15 = vpop.f32.mrf.mxu0  ;;  %v312_v48 = vadd.s32 216, %v4486_v33 }
 0x139   : > { %v955_v40 = vpop.f32.mrf.mxu1  ;;  %v1385_v29 = vsel %vm1124_vm3, %v1301_v10, 0.0 }
 0x13a   : > { %v4843_v44 = vsel %vm6237_vm15, %v955_v40, %v745_v15  ;;  %v3752_v30 = vpop.f32.mrf.mxu0  ;;  %vm6245_vm15 = vcmp.lt.s32.totalorder %v4846_v22, 300  ;;  %v315_v22 = vadd.s32 240, %v4486_v33 }
 0x13b   : > { %v3834_v1 = vpop.f32.mrf.mxu1  ;;  %v1197_v26 = vsel %vm1124_vm3, %v4843_v44, 0.0  ;;  %v1302_v55 = vmul.f32 %v4843_v44, %v4843_v44 }
 0x13c   : > { %1386 = vadd.xlane.f32.xlu1 %v1385_v29  ;;  %1198 = vadd.xlane.f32.xlu0 %v1197_v26  ;;  %v748_v0 = vpop.f32.mrf.mxu0  ;;  %v4861_v1 = vadd.s32 %v4488_v34, %v312_v48  ;;  %v313_v26 = vadd.s32 224, %v4486_v33 }
 0x13d   : > { %v958_v15 = vpop.f32.mrf.mxu1  ;;  %v1388_v30 = vsel %vm1124_vm3, %v1302_v55, 0.0  ;;  %v314_v55 = vadd.s32 232, %v4486_v33 }
 0x13e   : > { %v4857_v47 = vsel %vm6239_vm1, %v958_v15, %v748_v0  ;;  %v3753_v40 = vpop.f32.mrf.mxu0  ;;  %6314 = vst [vmem:[#allocation29_spill] sm:$0xff] %v4861_v1  ;;  %vm6246_vm1 = vcmp.lt.s32.totalorder %v4861_v1, 300 }
 0x13f   : > { %v3835_v10 = vpop.f32.mrf.mxu1  ;;  %v1200_v8 = vsel %vm1124_vm3, %v4857_v47, 0.0  ;;  %v1303_v29 = vmul.f32 %v4857_v47, %v4857_v47 }
 0x140   : > { %1389 = vadd.xlane.f32.xlu0 %v1388_v30  ;;  %1201 = vadd.xlane.f32.xlu1 %v1200_v8  ;;  %v753_v0 = vpop.f32.mrf.mxu0  ;;  %v4881_v30 = vadd.s32 %v4488_v34, %v313_v26 }
 0x141   : > { %v963_v15 = vpop.f32.mrf.mxu1  ;;  %v1391_v11 = vsel %vm1124_vm3, %v1303_v29, 0.0  ;;  %v4888_v29 = vadd.s32 %v4488_v34, %v314_v55 }
 0x142   : > { %v4871_v40 = vsel %vm6245_vm15, %v963_v15, %v753_v0  ;;  %v3756_v48 = vpop.f32.mrf.mxu0  ;;  %6315 = vst [vmem:[#allocation30_spill] sm:$0xff] %v4881_v30  ;;  %vm6248_vm15 = vcmp.lt.s32.totalorder %v4881_v30, 300 }
 0x143   : > { %v3838_v10 = vpop.f32.mrf.mxu1  ;;  %v1203_v12 = vsel %vm1124_vm3, %v4871_v40, 0.0  ;;  %v1304_v8 = vmul.f32 %v4871_v40, %v4871_v40  ;;  %6316 = vst [vmem:[#allocation31_spill] sm:$0xff] %v4888_v29 }
 0x144   : > { %1392 = vadd.xlane.f32.xlu1 %v1391_v11  ;;  %1204 = vadd.xlane.f32.xlu0 %v1203_v12  ;;  %v756_v0 = vpop.f32.mrf.mxu0 }
 0x145   : > { %v966_v15 = vpop.f32.mrf.mxu1  ;;  %v1394_v5 = vsel %vm1124_vm3, %v1304_v8, 0.0 }
 0x146   : > { %v4885_v48 = vsel %vm6246_vm1, %v966_v15, %v756_v0  ;;  %v3757_v10 = vpop.f32.mrf.mxu0  ;;  %vm6254_vm1 = vcmp.lt.s32.totalorder %v4888_v29, 300  ;;  %v318_v29 = vadd.s32 264, %v4486_v33 }
 0x147   : > { %v3839_v28 = vpop.f32.mrf.mxu1  ;;  %v1206_v26 = vsel %vm1124_vm3, %v4885_v48, 0.0  ;;  %v1305_v12 = vmul.f32 %v4885_v48, %v4885_v48 }
 0x148   : > { %1395 = vadd.xlane.f32.xlu0 %v1394_v5  ;;  %1207 = vadd.xlane.f32.xlu1 %v1206_v26  ;;  %v761_v11 = vpop.f32.mrf.mxu0  ;;  %v4903_v28 = vadd.s32 %v4488_v34, %v315_v22  ;;  %v316_v26 = vadd.s32 248, %v4486_v33 }
 0x149   : > { %v971_v0 = vpop.f32.mrf.mxu1  ;;  %v1397_v10 = vsel %vm1124_vm3, %v1305_v12, 0.0  ;;  %v317_v12 = vadd.s32 256, %v4486_v33 }
 0x14a   : > { %v4899_v55 = vsel %vm6248_vm15, %v971_v0, %v761_v11  ;;  %v3760_v15 = vpop.f32.mrf.mxu0  ;;  %6317 = vst [vmem:[#allocation32_spill] sm:$0xff] %v4903_v28  ;;  %vm6255_vm15 = vcmp.lt.s32.totalorder %v4903_v28, 300 }
 0x14b   : > { %v3842_v8 = vpop.f32.mrf.mxu1  ;;  %v1209_v1 = vsel %vm1124_vm3, %v4899_v55, 0.0  ;;  %v1306_v5 = vmul.f32 %v4899_v55, %v4899_v55 }
 0x14c   : > { %1398 = vadd.xlane.f32.xlu1 %v1397_v10  ;;  %1210 = vadd.xlane.f32.xlu0 %v1209_v1  ;;  %v764_v11 = vpop.f32.mrf.mxu0  ;;  %v4923_v10 = vadd.s32 %v4488_v34, %v316_v26 }
 0x14d   : > { %v974_v0 = vpop.f32.mrf.mxu1  ;;  %v1400_v30 = vsel %vm1124_vm3, %v1306_v5, 0.0  ;;  %v4930_v5 = vadd.s32 %v4488_v34, %v317_v12 }
 0x14e   : > { %v4913_v15 = vsel %vm6254_vm1, %v974_v0, %v764_v11  ;;  %v3761_v22 = vpop.f32.mrf.mxu0  ;;  %6318 = vst [vmem:[#allocation33_spill] sm:$0xff] %v4923_v10  ;;  %vm6257_vm1 = vcmp.lt.s32.totalorder %v4923_v10, 300 }
 0x14f   : > { %v3843_v8 = vpop.f32.mrf.mxu1  ;;  %v1212_v53 = vsel %vm1124_vm3, %v4913_v15, 0.0  ;;  %v1307_v1 = vmul.f32 %v4913_v15, %v4913_v15  ;;  %6319 = vst [vmem:[#allocation34_spill] sm:$0xff] %v4930_v5 }
 0x150   : > { %1401 = vadd.xlane.f32.xlu0 %v1400_v30  ;;  %1213 = vadd.xlane.f32.xlu1 %v1212_v53  ;;  %v769_v11 = vpop.f32.mrf.mxu0 }
 0x151   : > { %v979_v0 = vpop.f32.mrf.mxu1  ;;  %v1403_v60 = vsel %vm1124_vm3, %v1307_v1, 0.0 }
 0x152   : > { %v4927_v22 = vsel %vm6255_vm15, %v979_v0, %v769_v11  ;;  %v3764_v8 = vpop.f32.mrf.mxu0  ;;  %vm6263_vm15 = vcmp.lt.s32.totalorder %v4930_v5, 300  ;;  %v321_v5 = vadd.s32 288, %v4486_v33 }
 0x153   : > { %v3846_v18 = vpop.f32.mrf.mxu1  ;;  %v1215_v26 = vsel %vm1124_vm3, %v4927_v22, 0.0  ;;  %v1308_v53 = vmul.f32 %v4927_v22, %v4927_v22 }
 0x154   : > { %1404 = vadd.xlane.f32.xlu1 %v1403_v60  ;;  %1216 = vadd.xlane.f32.xlu0 %v1215_v26  ;;  %v772_v30 = vpop.f32.mrf.mxu0  ;;  %v4945_v18 = vadd.s32 %v4488_v34, %v318_v29  ;;  %v319_v26 = vadd.s32 272, %v4486_v33 }
 0x155   : > { %v982_v11 = vpop.f32.mrf.mxu1  ;;  %v1406_v8 = vsel %vm1124_vm3, %v1308_v53, 0.0  ;;  %v320_v53 = vadd.s32 280, %v4486_v33 }
 0x156   : > { %v4941_v12 = vsel %vm6257_vm1, %v982_v11, %v772_v30  ;;  %v3765_v0 = vpop.f32.mrf.mxu0  ;;  %6320 = vst [vmem:[#allocation35_spill] sm:$0xff] %v4945_v18  ;;  %vm6264_vm1 = vcmp.lt.s32.totalorder %v4945_v18, 300 }
 0x157   : > { %v3847_v1 = vpop.f32.mrf.mxu1  ;;  %v1218_v28 = vsel %vm1124_vm3, %v4941_v12, 0.0  ;;  %v1309_v60 = vmul.f32 %v4941_v12, %v4941_v12 }
 0x158   : > { %1407 = vadd.xlane.f32.xlu0 %v1406_v8  ;;  %1219 = vadd.xlane.f32.xlu1 %v1218_v28  ;;  %v777_v30 = vpop.f32.mrf.mxu0  ;;  %v4965_v8 = vadd.s32 %v4488_v34, %v319_v26 }
 0x159   : > { %v987_v11 = vpop.f32.mrf.mxu1  ;;  %v1409_v10 = vsel %vm1124_vm3, %v1309_v60, 0.0  ;;  %v4972_v60 = vadd.s32 %v4488_v34, %v320_v53 }
 0x15a   : > { %v4955_v0 = vsel %vm6263_vm15, %v987_v11, %v777_v30  ;;  %v3768_v29 = vpop.f32.mrf.mxu0  ;;  %6321 = vst [vmem:[#allocation36_spill] sm:$0xff] %v4965_v8  ;;  %vm6267_vm15 = vcmp.lt.s32.totalorder %v4965_v8, 300 }
 0x15b   : > { %v3850_v1 = vpop.f32.mrf.mxu1  ;;  %v1221_v52 = vsel %vm1124_vm3, %v4955_v0, 0.0  ;;  %v1310_v28 = vmul.f32 %v4955_v0, %v4955_v0  ;;  %6322 = vst [vmem:[#allocation37_spill] sm:$0xff] %v4972_v60 }
 0x15c   : > { %1410 = vadd.xlane.f32.xlu1 %v1409_v10  ;;  %1222 = vadd.xlane.f32.xlu0 %v1221_v52  ;;  %v780_v30 = vpop.f32.mrf.mxu0 }
 0x15d   : > { %v990_v11 = vpop.f32.mrf.mxu1  ;;  %v1412_v6 = vsel %vm1124_vm3, %v1310_v28, 0.0 }
 0x15e   : > { %v4969_v29 = vsel %vm6264_vm1, %v990_v11, %v780_v30  ;;  %v3769_v1 = vpop.f32.mrf.mxu0  ;;  %vm6274_vm1 = vcmp.lt.s32.totalorder %v4972_v60, 300 }
 0x15f   : > { %v3851_v23 = vpop.f32.mrf.mxu1  ;;  %v1224_v26 = vsel %vm1124_vm3, %v4969_v29, 0.0  ;;  %v1311_v52 = vmul.f32 %v4969_v29, %v4969_v29 }
 0x160   : > { %1413 = vadd.xlane.f32.xlu0 %v1412_v6  ;;  %1225 = vadd.xlane.f32.xlu1 %v1224_v26  ;;  %v785_v10 = vpop.f32.mrf.mxu0  ;;  %v4987_v23 = vadd.s32 %v4488_v34, %v321_v5  ;;  %v322_v26 = vadd.s32 296, %v4486_v33 }
 0x161   : > { %v995_v30 = vpop.f32.mrf.mxu1  ;;  %v1415_v1 = vsel %vm1124_vm3, %v1311_v52, 0.0 }
 0x162   : > { %v4983_v53 = vsel %vm6267_vm15, %v995_v30, %v785_v10  ;;  %v3772_v11 = vpop.f32.mrf.mxu0  ;;  %6323 = vst [vmem:[#allocation38_spill] sm:$0xff] %v4987_v23  ;;  %vm398_vm15 = vcmp.lt.s32.totalorder %v4987_v23, 300 }
 0x163   : > { %v3854_v28 = vpop.f32.mrf.mxu1  ;;  %v1227_v18 = vsel %vm1124_vm3, %v4983_v53, 0.0  ;;  %v1312_v6 = vmul.f32 %v4983_v53, %v4983_v53 }
 0x164   : > { %1416 = vadd.xlane.f32.xlu1 %v1415_v1  ;;  %1228 = vadd.xlane.f32.xlu0 %v1227_v18  ;;  %v788_v10 = vpop.f32.mrf.mxu0  ;;  %v5008_v1 = vadd.s32 %v4488_v34, %v322_v26 }
 0x165   : > { %v998_v30 = vpop.f32.mrf.mxu1  ;;  %v1127_v11 = vpop.xlane.xlu0 %1126  ;;  %v1418_v36 = vsel %vm1124_vm3, %v1312_v6, 0.0 }
 0x166   : > { %v4995_v8 = vmul.f32 0.015625, %v1127_v11  ;;  %v4999_v5 = vsel %vm6274_vm1, %v998_v30, %v788_v10  ;;  %v3773_v52 = vpop.f32.mrf.mxu0  ;;  %6324 = vst [vmem:[#allocation39_spill] sm:$0xff] %v5008_v1  ;;  %vm399_vm1 = vcmp.lt.s32.totalorder %v5008_v1, 300 }
 0x167   : > { %v3855_v28 = vpop.f32.mrf.mxu1  ;;  %v1318_v62 = vpop.xlane.xlu1 %1317  ;;  %v1230_v33 = vsel %vm1124_vm3, %v4999_v5, 0.0  ;;  %v1313_v18 = vmul.f32 %v4999_v5, %v4999_v5 }
 0x168   : > { %v1468_v10 = vmul.f32 %v4995_v8, %v4995_v8  ;;  %v1430_v30 = vmul.f32 0.015625, %v1318_v62  ;;  %1419 = vadd.xlane.f32.xlu0 %v1418_v36  ;;  %1231 = vadd.xlane.f32.xlu1 %v1230_v33  ;;  %v793_v11 = vpop.f32.mrf.mxu0 }
 0x169   : > { %v1003_v52 = vpop.f32.mrf.mxu1  ;;  %v1130_v28 = vpop.xlane.xlu0 %1129  ;;  %v1421_v26 = vsel %vm1124_vm3, %v1313_v18, 0.0 }
 0x16a   : > { %v1506_v60 = vsub.f32 %v1430_v30, %v1468_v10  ;;  %v5012_v6 = vmul.f32 0.015625, %v1130_v28  ;;  %v5016_v20 = vsel %vm398_vm15, %v1003_v52, %v793_v11  ;;  %v3776_v13 = vpop.f32.mrf.mxu0 }
 0x16b   : > { %v3858_v57 = vpop.f32.mrf.mxu1  ;;  %v1321_v34 = vpop.xlane.xlu1 %1320  ;;  %v1233_v62 = vsel %vm1124_vm3, %v5016_v20, 0.0  ;;  %v1314_v36 = vmul.f32 %v5016_v20, %v5016_v20 }
 0x16c   : > { %v1544_v33 = vmax.f32 %v1506_v60, 0.0  ;;  %v1469_v10 = vmul.f32 %v5012_v6, %v5012_v6  ;;  %v1431_v30 = vmul.f32 0.015625, %v1321_v34  ;;  %1422 = vadd.xlane.f32.xlu1 %v1421_v26  ;;  %1234 = vadd.xlane.f32.xlu0 %v1233_v62  ;;  %v796_v13 = vpop.f32.mrf.mxu0 }
 0x16d   : > { %v1006_v57 = vpop.f32.mrf.mxu1  ;;  %v1133_v11 = vpop.xlane.xlu0 %1132  ;;  %v1424_v60 = vsel %vm1124_vm3, %v1314_v36, 0.0 }
 0x16e   : > { %v1620_v52 = vadd.f32 1e-05, %v1544_v33  ;;  %v1507_v18 = vsub.f32 %v1431_v30, %v1469_v10  ;;  %v5026_v28 = vmul.f32 0.015625, %v1133_v11  ;;  %v5030_v23 = vsel %vm399_vm1, %v1006_v57, %v796_v13  ;;  %v3777_v45 = vpop.f32.mrf.mxu0 }
 0x16f   : > { %6325 = vst [vmem:[#allocation40_spill] sm:$0xff] %v5030_v23  ;;  %v3859_v37 = vpop.f32.mrf.mxu1  ;;  %v1236_v34 = vsel %vm1124_vm3, %v5030_v23, 0.0  ;;  %v1315_v26 = vmul.f32 %v5030_v23, %v5030_v23 }
 0x170   : > { %4071 = vrsqrt.f32 %v1620_v52  ;;  %v1545_v62 = vmax.f32 %v1507_v18, 0.0  ;;  %1425 = vadd.xlane.f32.xlu0 %v1424_v60  ;;  %1237 = vadd.xlane.f32.xlu1 %v1236_v34  ;;  %v1470_v13 = vmul.f32 %v5026_v28, %v5026_v28 }
 0x171   : > { %v1324_v33 = vpop.xlane.xlu0 %1323  ;;  %v1136_v10 = vpop.xlane.xlu1 %1135  ;;  %v1427_v36 = vsel %vm1124_vm3, %v1315_v26, 0.0 }
 0x172   : > { %v1621_v30 = vadd.f32 1e-05, %v1545_v62  ;;  %v1432_v45 = vmul.f32 0.015625, %v1324_v33  ;;  %v5039_v37 = vmul.f32 0.015625, %v1136_v10 }
 0x174   : > { %4073 = vrsqrt.f32 %v1621_v30  ;;  %v1508_v57 = vsub.f32 %v1432_v45, %v1470_v13  ;;  %1428 = vadd.xlane.f32.xlu1 %v1427_v36  ;;  %v1471_v18 = vmul.f32 %v5039_v37, %v5039_v37  ;;  %v1582_v45 = vsub.f32 %v4502_v41, %v4995_v8 }
 0x175   : > { %v1327_v11 = vpop.xlane.xlu1 %1326  ;;  %v1139_v1 = vpop.xlane.xlu0 %1138  ;;  %v1583_v41 = vsub.f32 %v4516_v51, %v5012_v6 }
 0x176   : > { %v1546_v52 = vmax.f32 %v1508_v57, 0.0  ;;  %v1433_v60 = vmul.f32 0.015625, %v1327_v11  ;;  %v5044_v34 = vmul.f32 0.015625, %v1139_v1 }
 0x178   : > { %v1622_v62 = vadd.f32 1e-05, %v1546_v52  ;;  %v1509_v19 = vsub.f32 %v1433_v60, %v1471_v18  ;;  %v1472_v33 = vmul.f32 %v5044_v34, %v5044_v34  ;;  %v5057_v60 = vld [vmem:[%s6216_s2] ss:$0 sm:$0xff] }
 0x179   : > { %v1330_v10 = vpop.xlane.xlu0 %1329  ;;  %v1142_v9 = vpop.xlane.xlu1 %1141 }
 0x17a   : > { %4075 = vrsqrt.f32 %v1622_v62  ;;  %v1547_v26 = vmax.f32 %v1509_v19, 0.0  ;;  %v1434_v30 = vmul.f32 0.015625, %v1330_v10  ;;  %v5048_v13 = vmul.f32 0.015625, %v1142_v9 }
 0x17c   : > { %v1623_v36 = vadd.f32 1e-05, %v1547_v26  ;;  %v1510_v57 = vsub.f32 %v1434_v30, %v1472_v33  ;;  %v1473_v1 = vmul.f32 %v5048_v13, %v5048_v13 }
 0x17d   : > { %v4072_v11 = vpop.eup %4071  ;;  %v1333_v52 = vpop.xlane.xlu1 %1332 }
 0x17e   : > { %v1145_v18 = vpop.xlane.xlu0 %1144  ;;  %v1696_v19 = vmul.f32 %v4072_v11, %v1582_v45  ;;  %4077 = vrsqrt.f32 %v1623_v36  ;;  %v1548_v9 = vmax.f32 %v1510_v57, 0.0  ;;  %v1435_v62 = vmul.f32 0.015625, %v1333_v52  ;;  %v5069_v57 = vld [vmem:[%s6217_s3] ss:$0 sm:$0xff] }
 0x17f   : > { %v5059_v10 = vmul.f32 0.015625, %v1145_v18 }
 0x180   : > { %v1624_v8 = vadd.f32 1e-05, %v1548_v9  ;;  %v1511_v33 = vsub.f32 %v1435_v62, %v1473_v1  ;;  %v1741_v30 = vmul.f32 %v5057_v60, %v1696_v19 }
 0x181   : > { %v4074_v26 = vpop.eup %4073  ;;  %v1474_v4 = vmul.f32 %v5059_v10, %v5059_v10  ;;  %v1148_v43 = vpop.xlane.xlu1 %1147 }
 0x182   : > { %v1336_v56 = vpop.xlane.xlu0 %1335  ;;  %v1697_v38 = vmul.f32 %v4074_v26, %v1583_v41  ;;  %4079 = vrsqrt.f32 %v1624_v8  ;;  %v1549_v45 = vmax.f32 %v1511_v33, 0.0  ;;  %v5071_v51 = vmul.f32 0.015625, %v1148_v43 }
 0x183   : > { %v1436_v36 = vmul.f32 0.015625, %v1336_v56  ;;  %v1786_v9 = vadd.f32 %v5069_v57, %v1741_v30  ;;  %v1584_v43 = vsub.f32 %v4530_v61, %v5026_v28  ;;  %v1585_v61 = vsub.f32 %v4543_v7, %v5039_v37 }
 0x184   : > { %v1742_v6 = vmul.f32 %v5057_v60, %v1697_v38  ;;  %v1625_v11 = vadd.f32 1e-05, %v1549_v45  ;;  %v1475_v52 = vmul.f32 %v5071_v51, %v5071_v51  ;;  %v1586_v37 = vsub.f32 %v4557_v17, %v5044_v34 }
 0x185   : > { %v1512_v1 = vsub.f32 %v1436_v36, %v1474_v4  ;;  %v1339_v18 = vpop.xlane.xlu1 %1338  ;;  %v1824_v35 = vmax.f32 %v1786_v9, 0.0  ;;  %v1587_v34 = vsub.f32 %v4571_v27, %v5048_v13  ;;  %v1588_v27 = vsub.f32 %v4585_v42, %v5059_v10 }
 0x186   : > { %v1151_v19 = vpop.xlane.xlu0 %1150  ;;  %4081 = vrsqrt.f32 %v1625_v11  ;;  %v1437_v62 = vmul.f32 0.015625, %v1339_v18  ;;  %v1787_v38 = vadd.f32 %v5069_v57, %v1742_v6 }
 0x187   : > { %v1550_v56 = vmax.f32 %v1512_v1, 0.0  ;;  %v5077_v41 = vmul.f32 0.015625, %v1151_v19  ;;  %v4076_v8 = vpop.eup %4075 }
 0x188   : > { %v1513_v4 = vsub.f32 %v1437_v62, %v1475_v52  ;;  %v1825_v30 = vmax.f32 %v1787_v38, 0.0  ;;  %v1698_v11 = vmul.f32 %v4076_v8, %v1584_v43 }
 0x189   : > { %v1626_v33 = vadd.f32 1e-05, %v1550_v56  ;;  %v1476_v26 = vmul.f32 %v5077_v41, %v5077_v41  ;;  %v1154_v36 = vpop.xlane.xlu1 %1153 }
 0x18a   : > { %v1342_v45 = vpop.xlane.xlu0 %1341  ;;  %v1551_v1 = vmax.f32 %v1513_v4, 0.0  ;;  %v5084_v19 = vmul.f32 0.015625, %v1154_v36  ;;  %v1862_v28 = vpack.c.bf16 %v1825_v30, %v1824_v35  ;;  %v1743_v6 = vmul.f32 %v5057_v60, %v1698_v11 }
 0x18b   : > { %4083 = vrsqrt.f32 %v1626_v33  ;;  %v1438_v18 = vmul.f32 0.015625, %v1342_v45  ;;  %v4078_v23 = vpop.eup %4077  ;;  %v6326_v35 = vmov 0.0  }
 0x18c   : > { %v1627_v52 = vadd.f32 1e-05, %v1551_v1  ;;  %v1477_v62 = vmul.f32 %v5084_v19, %v5084_v19  ;;  %3869 = vmatmul.mubr.msk.bf16.vlgmr.msra.gmra.mxu0 %vm1124_vm3, %v1862_v28  ;;  %3953 = vmatmul.mubr.msk.bf16.vlgmr.msra.gmra.mxu1 %vm1124_vm3, %v1862_v28  ;;  %v1699_v43 = vmul.f32 %v4078_v23, %v1585_v61  ;;  %v1788_v45 = vadd.f32 %v5069_v57, %v1743_v6 }
 0x18d   : > { %v1514_v56 = vsub.f32 %v1438_v18, %v1476_v26  ;;  %v1345_v9 = vpop.xlane.xlu1 %1344  ;;  %3872 = vmatprep.mubr.msk.bf16.mxu0 %vm4236_vm0, %v6326_v35  ;;  %3956 = vmatprep.mubr.msk.bf16.mxu1 %vm4236_vm0, %v6326_v35 }
 0x18e   : > { %v1157_v8 = vpop.xlane.xlu0 %1156  ;;  %4085 = vrsqrt.f32 %v1627_v52  ;;  %v1439_v33 = vmul.f32 0.015625, %v1345_v9  ;;  %v1744_v26 = vmul.f32 %v5057_v60, %v1699_v43  ;;  %v1826_v6 = vmax.f32 %v1788_v45, 0.0 }
 0x18f   : > { %v1552_v38 = vmax.f32 %v1514_v56, 0.0  ;;  %v5093_v4 = vmul.f32 0.015625, %v1157_v8  ;;  %v4080_v7 = vpop.eup %4079 }
 0x190   : > { %v1515_v36 = vsub.f32 %v1439_v33, %v1477_v62  ;;  %v1789_v18 = vadd.f32 %v5069_v57, %v1744_v26  ;;  %v1700_v61 = vmul.f32 %v4080_v7, %v1586_v37 }
 0x191   : > { %v1628_v23 = vadd.f32 1e-05, %v1552_v38  ;;  %v1478_v30 = vmul.f32 %v5093_v4, %v5093_v4  ;;  %v1160_v1 = vpop.xlane.xlu1 %1159 }
 0x192   : > { %v1348_v11 = vpop.xlane.xlu0 %1347  ;;  %v1553_v28 = vmax.f32 %v1515_v36, 0.0  ;;  %v5106_v56 = vmul.f32 0.015625, %v1160_v1  ;;  %v1827_v9 = vmax.f32 %v1789_v18, 0.0  ;;  %v1745_v62 = vmul.f32 %v5057_v60, %v1700_v61 }
 0x193   : > { %4087 = vrsqrt.f32 %v1628_v23  ;;  %v1440_v52 = vmul.f32 0.015625, %v1348_v11  ;;  %v4082_v17 = vpop.eup %4081 }
 0x194   : > { %v1629_v8 = vadd.f32 1e-05, %v1553_v28  ;;  %v1479_v38 = vmul.f32 %v5106_v56, %v5106_v56  ;;  %v1863_v37 = vpack.c.bf16 %v1827_v9, %v1826_v6  ;;  %v1701_v26 = vmul.f32 %v4082_v17, %v1587_v34 }
 0x195   : > { %v1516_v43 = vsub.f32 %v1440_v52, %v1478_v30  ;;  %v1351_v33 = vpop.xlane.xlu1 %1350  ;;  %v1790_v45 = vadd.f32 %v5069_v57, %v1745_v62  ;;  %v1589_v62 = vsub.f32 %v4599_v54, %v5071_v51  ;;  %v1590_v54 = vsub.f32 %v4613_v3, %v5077_v41 }
 0x196   : > { %v1163_v7 = vpop.xlane.xlu0 %1162  ;;  %4089 = vrsqrt.f32 %v1629_v8  ;;  %v1441_v36 = vmul.f32 0.015625, %v1351_v33  ;;  %3873 = vmatmul.mubr.msk.bf16.gmra.mxu0 %vm1124_vm3, %v1863_v37  ;;  %3957 = vmatmul.mubr.msk.bf16.gmra.mxu1 %vm1124_vm3, %v1863_v37  ;;  %v1746_v13 = vmul.f32 %v5057_v60, %v1701_v26 }
 0x197   : > { %v1554_v23 = vmax.f32 %v1516_v43, 0.0  ;;  %v5113_v11 = vmul.f32 0.015625, %v1163_v7  ;;  %3876 = vmatprep.mubr.msk.bf16.mxu0 %vm4236_vm0, %v6326_v35  ;;  %3960 = vmatprep.mubr.msk.bf16.mxu1 %vm4236_vm0, %v6326_v35  ;;  %v1828_v8 = vmax.f32 %v1790_v45, 0.0 }
 0x198   : > { %v4084_v1 = vpop.eup %4083  ;;  %v1517_v18 = vsub.f32 %v1441_v36, %v1479_v38  ;;  %v1791_v28 = vadd.f32 %v5069_v57, %v1746_v13 }
 0x199   : > { %v1630_v30 = vadd.f32 1e-05, %v1554_v23  ;;  %v1480_v61 = vmul.f32 %v5113_v11, %v5113_v11  ;;  %v1166_v10 = vpop.xlane.xlu1 %1165  ;;  %v1702_v52 = vmul.f32 %v4084_v1, %v1588_v27 }
 0x19a   : > { %v1354_v42 = vpop.xlane.xlu0 %1353  ;;  %v1555_v17 = vmax.f32 %v1517_v18, 0.0  ;;  %v5128_v6 = vmul.f32 0.015625, %v1166_v10  ;;  %v1829_v43 = vmax.f32 %v1791_v28, 0.0 }
 0x19b   : > { %4091 = vrsqrt.f32 %v1630_v30  ;;  %v1442_v34 = vmul.f32 0.015625, %v1354_v42  ;;  %v4086_v9 = vpop.eup %4085  ;;  %v1747_v38 = vmul.f32 %v5057_v60, %v1702_v52 }
 0x19c   : > { %v1631_v33 = vadd.f32 1e-05, %v1555_v17  ;;  %v1481_v37 = vmul.f32 %v5128_v6, %v5128_v6  ;;  %v1864_v36 = vpack.c.bf16 %v1829_v43, %v1828_v8  ;;  %v1703_v1 = vmul.f32 %v4086_v9, %v1589_v62 }
 0x19d   : > { %v1518_v7 = vsub.f32 %v1442_v34, %v1480_v61  ;;  %v1357_v26 = vpop.xlane.xlu1 %1356  ;;  %v1792_v45 = vadd.f32 %v5069_v57, %v1747_v38  ;;  %v1591_v8 = vsub.f32 %v4627_v16, %v5084_v19  ;;  %v1592_v16 = vsub.f32 %v4647_v31, %v5093_v4 }
 0x19e   : > { %v1169_v23 = vpop.xlane.xlu0 %1168  ;;  %4093 = vrsqrt.f32 %v1631_v33  ;;  %v1443_v13 = vmul.f32 0.015625, %v1357_v26  ;;  %3877 = vmatmul.mubr.msk.bf16.gmra.mxu0 %vm1124_vm3, %v1864_v36  ;;  %3961 = vmatmul.mubr.msk.bf16.gmra.mxu1 %vm1124_vm3, %v1864_v36  ;;  %v1748_v51 = vmul.f32 %v5057_v60, %v1703_v1 }
 0x19f   : > { %v1556_v27 = vmax.f32 %v1518_v7, 0.0  ;;  %v5135_v30 = vmul.f32 0.015625, %v1169_v23  ;;  %3880 = vmatprep.mubr.msk.bf16.mxu0 %vm4236_vm0, %v6326_v35  ;;  %3964 = vmatprep.mubr.msk.bf16.mxu1 %vm4236_vm0, %v6326_v35  ;;  %v1830_v43 = vmax.f32 %v1792_v45, 0.0 }
 0x1a0   : > { %v4088_v18 = vpop.eup %4087  ;;  %v1519_v42 = vsub.f32 %v1443_v13, %v1481_v37  ;;  %v1793_v28 = vadd.f32 %v5069_v57, %v1748_v51 }
 0x1a1   : > { %v1632_v61 = vadd.f32 1e-05, %v1556_v27  ;;  %v1482_v10 = vmul.f32 %v5135_v30, %v5135_v30  ;;  %v1172_v41 = vpop.xlane.xlu1 %1171  ;;  %v1704_v52 = vmul.f32 %v4088_v18, %v1590_v54 }
 0x1a2   : > { %v1360_v3 = vpop.xlane.xlu0 %1359  ;;  %v1557_v17 = vmax.f32 %v1519_v42, 0.0  ;;  %v5150_v9 = vmul.f32 0.015625, %v1172_v41  ;;  %v1831_v38 = vmax.f32 %v1793_v28, 0.0 }
 0x1a3   : > { %4095 = vrsqrt.f32 %v1632_v61  ;;  %v1444_v34 = vmul.f32 0.015625, %v1360_v3  ;;  %v4090_v62 = vpop.eup %4089  ;;  %v1749_v33 = vmul.f32 %v5057_v60, %v1704_v52 }
 0x1a4   : > { %v1633_v7 = vadd.f32 1e-05, %v1557_v17  ;;  %v1483_v26 = vmul.f32 %v5150_v9, %v5150_v9  ;;  %v1865_v1 = vpack.c.bf16 %v1831_v38, %v1830_v43  ;;  %v1705_v27 = vmul.f32 %v4090_v62, %v1591_v8 }
 0x1a5   : > { %v1520_v37 = vsub.f32 %v1444_v34, %v1482_v10  ;;  %v1363_v23 = vpop.xlane.xlu1 %1362  ;;  %v1794_v45 = vadd.f32 %v5069_v57, %v1749_v33  ;;  %v1593_v62 = vsub.f32 %v4661_v50, %v5106_v56  ;;  %v1594_v50 = vsub.f32 %v4675_v2, %v5113_v11 }
 0x1a6   : > { %v1175_v36 = vpop.xlane.xlu0 %1174  ;;  %4097 = vrsqrt.f32 %v1633_v7  ;;  %v1445_v18 = vmul.f32 0.015625, %v1363_v23  ;;  %3881 = vmatmul.mubr.msk.bf16.gmra.mxu0 %vm1124_vm3, %v1865_v1  ;;  %3965 = vmatmul.mubr.msk.bf16.gmra.mxu1 %vm1124_vm3, %v1865_v1  ;;  %v1750_v19 = vmul.f32 %v5057_v60, %v1705_v27 }
 0x1a7   : > { %v1558_v13 = vmax.f32 %v1520_v37, 0.0  ;;  %v5157_v54 = vmul.f32 0.015625, %v1175_v36  ;;  %3884 = vmatprep.mubr.msk.bf16.mxu0 %vm4236_vm0, %v6326_v35  ;;  %3968 = vmatprep.mubr.msk.bf16.mxu1 %vm4236_vm0, %v6326_v35  ;;  %v1832_v8 = vmax.f32 %v1794_v45, 0.0 }
 0x1a8   : > { %v4092_v51 = vpop.eup %4091  ;;  %v1521_v42 = vsub.f32 %v1445_v18, %v1483_v26  ;;  %v1795_v3 = vadd.f32 %v5069_v57, %v1750_v19 }
 0x1a9   : > { %v1634_v61 = vadd.f32 1e-05, %v1558_v13  ;;  %v1484_v10 = vmul.f32 %v5157_v54, %v5157_v54  ;;  %v1178_v4 = vpop.xlane.xlu1 %1177  ;;  %v1706_v41 = vmul.f32 %v4092_v51, %v1592_v16 }
 0x1aa   : > { %v1366_v31 = vpop.xlane.xlu0 %1365  ;;  %v1559_v28 = vmax.f32 %v1521_v42, 0.0  ;;  %v5172_v17 = vmul.f32 0.015625, %v1178_v4  ;;  %v1833_v43 = vmax.f32 %v1795_v3, 0.0 }
 0x1ab   : > { %4099 = vrsqrt.f32 %v1634_v61  ;;  %v1446_v52 = vmul.f32 0.015625, %v1366_v31  ;;  %v4094_v34 = vpop.eup %4093  ;;  %v1751_v38 = vmul.f32 %v5057_v60, %v1706_v41 }
 0x1ac   : > { %v1635_v33 = vadd.f32 1e-05, %v1559_v28  ;;  %v1485_v37 = vmul.f32 %v5172_v17, %v5172_v17  ;;  %v1866_v36 = vpack.c.bf16 %v1833_v43, %v1832_v8  ;;  %v1707_v1 = vmul.f32 %v4094_v34, %v1593_v62 }
 0x1ad   : > { %v1522_v7 = vsub.f32 %v1446_v52, %v1484_v10  ;;  %v1369_v26 = vpop.xlane.xlu1 %1368  ;;  %v1796_v16 = vadd.f32 %v5069_v57, %v1751_v38  ;;  %v1595_v28 = vsub.f32 %v4689_v21, %v5128_v6  ;;  %v1596_v21 = vsub.f32 %v4703_v39, %v5135_v30 }
 0x1ae   : > { %v1181_v23 = vpop.xlane.xlu0 %1180  ;;  %4101 = vrsqrt.f32 %v1635_v33  ;;  %v1447_v13 = vmul.f32 0.015625, %v1369_v26  ;;  %3885 = vmatmul.mubr.msk.bf16.gmra.mxu0 %vm1124_vm3, %v1866_v36  ;;  %3969 = vmatmul.mubr.msk.bf16.gmra.mxu1 %vm1124_vm3, %v1866_v36  ;;  %v1752_v56 = vmul.f32 %v5057_v60, %v1707_v1 }
 0x1af   : > { %v1560_v27 = vmax.f32 %v1522_v7, 0.0  ;;  %v5179_v18 = vmul.f32 0.015625, %v1181_v23  ;;  %3888 = vmatprep.mubr.msk.bf16.mxu0 %vm4236_vm0, %v6326_v35  ;;  %3972 = vmatprep.mubr.msk.bf16.mxu1 %vm4236_vm0, %v6326_v35  ;;  %v1834_v52 = vmax.f32 %v1796_v16, 0.0 }
 0x1b0   : > { %v4096_v51 = vpop.eup %4095  ;;  %v1523_v45 = vsub.f32 %v1447_v13, %v1485_v37  ;;  %v1797_v42 = vadd.f32 %v5069_v57, %v1752_v56 }
 0x1b1   : > { %v1636_v19 = vadd.f32 1e-05, %v1560_v27  ;;  %v1486_v61 = vmul.f32 %v5179_v18, %v5179_v18  ;;  %v1184_v11 = vpop.xlane.xlu1 %1183  ;;  %v1708_v10 = vmul.f32 %v4096_v51, %v1594_v50 }
 0x1b2   : > { %v1372_v2 = vpop.xlane.xlu0 %1371  ;;  %v1561_v31 = vmax.f32 %v1523_v45, 0.0  ;;  %v5194_v3 = vmul.f32 0.015625, %v1184_v11  ;;  %v1835_v34 = vmax.f32 %v1797_v42, 0.0  ;;  %v1597_v42 = vsub.f32 %v4717_v58, %v5150_v9 }
 0x1b3   : > { %4103 = vrsqrt.f32 %v1636_v19  ;;  %v1448_v4 = vmul.f32 0.015625, %v1372_v2  ;;  %v4098_v41 = vpop.eup %4097  ;;  %v1753_v62 = vmul.f32 %v5057_v60, %v1708_v10  ;;  %v1598_v58 = vsub.f32 %v4731_v14, %v5157_v54 }
 0x1b4   : > { %v1637_v8 = vadd.f32 1e-05, %v1561_v31  ;;  %v1487_v38 = vmul.f32 %v5194_v3, %v5194_v3  ;;  %v1867_v37 = vpack.c.bf16 %v1835_v34, %v1834_v52  ;;  %v1709_v26 = vmul.f32 %v4098_v41, %v1595_v28 }
 0x1b5   : > { %v1524_v43 = vsub.f32 %v1448_v4, %v1486_v61  ;;  %v1375_v33 = vpop.xlane.xlu1 %1374  ;;  %v1798_v13 = vadd.f32 %v5069_v57, %v1753_v62 }
 0x1b6   : > { %v1187_v7 = vpop.xlane.xlu0 %1186  ;;  %4105 = vrsqrt.f32 %v1637_v8  ;;  %v1449_v36 = vmul.f32 0.015625, %v1375_v33  ;;  %3889 = vmatmul.mubr.msk.bf16.gmra.mxu0 %vm1124_vm3, %v1867_v37  ;;  %3973 = vmatmul.mubr.msk.bf16.gmra.mxu1 %vm1124_vm3, %v1867_v37  ;;  %v1754_v6 = vmul.f32 %v5057_v60, %v1709_v26 }
 0x1b7   : > { %v1562_v23 = vmax.f32 %v1524_v43, 0.0  ;;  %v5201_v1 = vmul.f32 0.015625, %v1187_v7  ;;  %3892 = vmatprep.mubr.msk.bf16.mxu0 %vm4236_vm0, %v6326_v35  ;;  %3976 = vmatprep.mubr.msk.bf16.mxu1 %vm4236_vm0, %v6326_v35  ;;  %v1836_v10 = vmax.f32 %v1798_v13, 0.0 }
 0x1b8   : > { %v4100_v27 = vpop.eup %4099  ;;  %v1525_v50 = vsub.f32 %v1449_v36, %v1487_v38  ;;  %v1799_v16 = vadd.f32 %v5069_v57, %v1754_v6 }
 0x1b9   : > { %v1638_v51 = vadd.f32 1e-05, %v1562_v23  ;;  %v1488_v56 = vmul.f32 %v5201_v1, %v5201_v1  ;;  %v1190_v30 = vpop.xlane.xlu1 %1189  ;;  %v1710_v19 = vmul.f32 %v4100_v27, %v1596_v21 }
 0x1ba   : > { %v1378_v39 = vpop.xlane.xlu0 %1377  ;;  %v1563_v45 = vmax.f32 %v1525_v50, 0.0  ;;  %v5216_v2 = vmul.f32 0.015625, %v1190_v30  ;;  %v1837_v31 = vmax.f32 %v1799_v16, 0.0 }
 0x1bb   : > { %4107 = vrsqrt.f32 %v1638_v51  ;;  %v1450_v61 = vmul.f32 0.015625, %v1378_v39  ;;  %v4102_v11 = vpop.eup %4101  ;;  %v1755_v4 = vmul.f32 %v5057_v60, %v1710_v19  ;;  %v1599_v39 = vsub.f32 %v4745_v32, %v5172_v17 }
 0x1bc   : > { %v1639_v41 = vadd.f32 1e-05, %v1563_v45  ;;  %v1489_v52 = vmul.f32 %v5216_v2, %v5216_v2  ;;  %v1868_v8 = vpack.c.bf16 %v1837_v31, %v1836_v10  ;;  %v1711_v43 = vmul.f32 %v4102_v11, %v1597_v42 }
 0x1bd   : > { %v1526_v28 = vsub.f32 %v1450_v61, %v1488_v56  ;;  %v1381_v34 = vpop.xlane.xlu1 %1380  ;;  %v1800_v26 = vadd.f32 %v5069_v57, %v1755_v4  ;;  %v1600_v32 = vsub.f32 %v4759_v63, %v5179_v18 }
 0x1be   : > { %v1193_v62 = vpop.xlane.xlu0 %1192  ;;  %4109 = vrsqrt.f32 %v1639_v41  ;;  %v1451_v33 = vmul.f32 0.015625, %v1381_v34  ;;  %3893 = vmatmul.mubr.msk.bf16.gmra.mxu0 %vm1124_vm3, %v1868_v8  ;;  %3977 = vmatmul.mubr.msk.bf16.gmra.mxu1 %vm1124_vm3, %v1868_v8  ;;  %v1756_v9 = vmul.f32 %v5057_v60, %v1711_v43 }
 0x1bf   : > { %v1564_v38 = vmax.f32 %v1526_v28, 0.0  ;;  %v5223_v7 = vmul.f32 0.015625, %v1193_v62  ;;  %3896 = vmatprep.mubr.msk.bf16.mxu0 %vm4236_vm0, %v6326_v35  ;;  %3980 = vmatprep.mubr.msk.bf16.mxu1 %vm4236_vm0, %v6326_v35  ;;  %v1838_v30 = vmax.f32 %v1800_v26, 0.0 }
 0x1c0   : > { %v4104_v37 = vpop.eup %4103  ;;  %v1527_v36 = vsub.f32 %v1451_v33, %v1489_v52  ;;  %v1801_v21 = vadd.f32 %v5069_v57, %v1756_v9 }
 0x1c1   : > { %v1640_v23 = vadd.f32 1e-05, %v1564_v38  ;;  %v1490_v27 = vmul.f32 %v5223_v7, %v5223_v7  ;;  %v1196_v54 = vpop.xlane.xlu1 %1195  ;;  %v1712_v6 = vmul.f32 %v4104_v37, %v1598_v58 }
 0x1c2   : > { %v1384_v14 = vpop.xlane.xlu0 %1383  ;;  %v1565_v13 = vmax.f32 %v1527_v36, 0.0  ;;  %v5238_v50 = vmul.f32 0.015625, %v1196_v54  ;;  %v1839_v16 = vmax.f32 %v1801_v21, 0.0  ;;  %v1601_v36 = vsub.f32 %v4773_v25, %v5194_v3 }
 0x1c3   : > { %4111 = vrsqrt.f32 %v1640_v23  ;;  %v1452_v51 = vmul.f32 0.015625, %v1384_v14  ;;  %v4106_v56 = vpop.eup %4105  ;;  %v1757_v19 = vmul.f32 %v5057_v60, %v1712_v6  ;;  %v1602_v25 = vsub.f32 %v4787_v49, %v5201_v1 }
 0x1c4   : > { %v1641_v45 = vadd.f32 1e-05, %v1565_v13  ;;  %v1491_v11 = vmul.f32 %v5238_v50, %v5238_v50  ;;  %v1869_v31 = vpack.c.bf16 %v1839_v16, %v1838_v30  ;;  %v1713_v4 = vmul.f32 %v4106_v56, %v1599_v39 }
 0x1c5   : > { %v1528_v61 = vsub.f32 %v1452_v51, %v1490_v27  ;;  %v1387_v42 = vpop.xlane.xlu1 %1386  ;;  %v1802_v62 = vadd.f32 %v5069_v57, %v1757_v19 }
 0x1c6   : > { %v1199_v10 = vpop.xlane.xlu0 %1198  ;;  %4113 = vrsqrt.f32 %v1641_v45  ;;  %v1453_v28 = vmul.f32 0.015625, %v1387_v42  ;;  %3897 = vmatmul.mubr.msk.bf16.gmra.mxu0 %vm1124_vm3, %v1869_v31  ;;  %3981 = vmatmul.mubr.msk.bf16.gmra.mxu1 %vm1124_vm3, %v1869_v31  ;;  %v1758_v17 = vmul.f32 %v5057_v60, %v1713_v4 }
 0x1c7   : > { %v1566_v41 = vmax.f32 %v1528_v61, 0.0  ;;  %v5245_v52 = vmul.f32 0.015625, %v1199_v10  ;;  %3900 = vmatprep.mubr.msk.bf16.mxu0 %vm4236_vm0, %v6326_v35  ;;  %3984 = vmatprep.mubr.msk.bf16.mxu1 %vm4236_vm0, %v6326_v35  ;;  %v1840_v27 = vmax.f32 %v1802_v62, 0.0  ;;  %v1603_v62 = vsub.f32 %v4801_v24, %v5216_v2 }
 0x1c8   : > { %v4108_v34 = vpop.eup %4107  ;;  %v1529_v43 = vsub.f32 %v1453_v28, %v1491_v11  ;;  %v1803_v33 = vadd.f32 %v5069_v57, %v1758_v17  ;;  %v1604_v24 = vsub.f32 %v4815_v59, %v5223_v7 }
 0x1c9   : > { %v1642_v8 = vadd.f32 1e-05, %v1566_v41  ;;  %v1492_v38 = vmul.f32 %v5245_v52, %v5245_v52  ;;  %v1202_v18 = vpop.xlane.xlu1 %1201  ;;  %v1714_v37 = vmul.f32 %v4108_v34, %v1600_v32 }
 0x1ca   : > { %v1390_v63 = vpop.xlane.xlu0 %1389  ;;  %v1567_v58 = vmax.f32 %v1529_v43, 0.0  ;;  %v5260_v26 = vmul.f32 0.015625, %v1202_v18  ;;  %v1841_v14 = vmax.f32 %v1803_v33, 0.0 }
 0x1cb   : > { %4115 = vrsqrt.f32 %v1642_v8  ;;  %v1454_v9 = vmul.f32 0.015625, %v1390_v63  ;;  %v4110_v23 = vpop.eup %4109  ;;  %v1759_v54 = vmul.f32 %v5057_v60, %v1714_v37 }
 0x1cc   : > { %v1643_v21 = vadd.f32 1e-05, %v1567_v58  ;;  %v1493_v13 = vmul.f32 %v5260_v26, %v5260_v26  ;;  %v1870_v39 = vpack.c.bf16 %v1841_v14, %v1840_v27  ;;  %v1715_v30 = vmul.f32 %v4110_v23, %v1601_v36 }
 0x1cd   : > { %v1530_v6 = vsub.f32 %v1454_v9, %v1492_v38  ;;  %v1393_v51 = vpop.xlane.xlu1 %1392  ;;  %v1804_v11 = vadd.f32 %v5069_v57, %v1759_v54 }
 0x1ce   : > { %v1205_v56 = vpop.xlane.xlu0 %1204  ;;  %4117 = vrsqrt.f32 %v1643_v21  ;;  %v1455_v19 = vmul.f32 0.015625, %v1393_v51  ;;  %3901 = vmatmul.mubr.msk.bf16.gmra.mxu0 %vm1124_vm3, %v1870_v39  ;;  %3985 = vmatmul.mubr.msk.bf16.gmra.mxu1 %vm1124_vm3, %v1870_v39  ;;  %v1760_v3 = vmul.f32 %v5057_v60, %v1715_v30 }
 0x1cf   : > { %v1568_v16 = vmax.f32 %v1530_v6, 0.0  ;;  %v5267_v45 = vmul.f32 0.015625, %v1205_v56  ;;  %3904 = vmatprep.mubr.msk.bf16.mxu0 %vm4236_vm0, %v6326_v35  ;;  %3988 = vmatprep.mubr.msk.bf16.mxu1 %vm4236_vm0, %v6326_v35  ;;  %v1842_v8 = vmax.f32 %v1804_v11, 0.0 }
 0x1d0   : > { %v4112_v61 = vpop.eup %4111  ;;  %v1531_v10 = vsub.f32 %v1455_v19, %v1493_v13  ;;  %v1805_v4 = vadd.f32 %v5069_v57, %v1760_v3 }
 0x1d1   : > { %v1644_v42 = vadd.f32 1e-05, %v1568_v16  ;;  %v1494_v31 = vmul.f32 %v5267_v45, %v5267_v45  ;;  %v1208_v1 = vpop.xlane.xlu1 %1207  ;;  %v1716_v41 = vmul.f32 %v4112_v61, %v1602_v25  ;;  %v1605_v25 = vsub.f32 %v4829_v46, %v5238_v50 }
 0x1d2   : > { %v1396_v49 = vpop.xlane.xlu0 %1395  ;;  %v1569_v28 = vmax.f32 %v1531_v10, 0.0  ;;  %v5282_v32 = vmul.f32 0.015625, %v1208_v1  ;;  %v1843_v43 = vmax.f32 %v1805_v4, 0.0  ;;  %v1606_v46 = vsub.f32 %v4843_v44, %v5245_v52 }
 0x1d3   : > { %4119 = vrsqrt.f32 %v1644_v42  ;;  %v1456_v34 = vmul.f32 0.015625, %v1396_v49  ;;  %v4114_v17 = vpop.eup %4113  ;;  %v1761_v38 = vmul.f32 %v5057_v60, %v1716_v41 }
 0x1d4   : > { %v1645_v63 = vadd.f32 1e-05, %v1569_v28  ;;  %v1495_v33 = vmul.f32 %v5282_v32, %v5282_v32  ;;  %v1871_v9 = vpack.c.bf16 %v1843_v43, %v1842_v8  ;;  %v1717_v23 = vmul.f32 %v4114_v17, %v1603_v62 }
 0x1d5   : > { %v1532_v18 = vsub.f32 %v1456_v34, %v1494_v31  ;;  %v1399_v37 = vpop.xlane.xlu1 %1398  ;;  %v1806_v21 = vadd.f32 %v5069_v57, %v1761_v38 }
 0x1d6   : > { %v1211_v58 = vpop.xlane.xlu0 %1210  ;;  %4121 = vrsqrt.f32 %v1645_v63  ;;  %v1457_v27 = vmul.f32 0.015625, %v1399_v37  ;;  %3905 = vmatmul.mubr.msk.bf16.gmra.mxu0 %vm1124_vm3, %v1871_v9  ;;  %3989 = vmatmul.mubr.msk.bf16.gmra.mxu1 %vm1124_vm3, %v1871_v9  ;;  %v1762_v2 = vmul.f32 %v5057_v60, %v1717_v23 }
 0x1d7   : > { %v1570_v36 = vmax.f32 %v1532_v18, 0.0  ;;  %v5289_v14 = vmul.f32 0.015625, %v1211_v58  ;;  %3908 = vmatprep.mubr.msk.bf16.mxu0 %vm4236_vm0, %v6326_v35  ;;  %3992 = vmatprep.mubr.msk.bf16.mxu1 %vm4236_vm0, %v6326_v35  ;;  %v1844_v3 = vmax.f32 %v1806_v21, 0.0 }
 0x1d8   : > { %v4116_v54 = vpop.eup %4115  ;;  %v1533_v13 = vsub.f32 %v1457_v27, %v1495_v33  ;;  %v1807_v56 = vadd.f32 %v5069_v57, %v1762_v2  ;;  %v1607_v27 = vsub.f32 %v4857_v47, %v5260_v26 }
 0x1d9   : > { %v1646_v6 = vadd.f32 1e-05, %v1570_v36  ;;  %v1496_v51 = vmul.f32 %v5289_v14, %v5289_v14  ;;  %v1214_v7 = vpop.xlane.xlu1 %1213  ;;  %v1718_v39 = vmul.f32 %v4116_v54, %v1604_v24 }
 0x1da   : > { %v1402_v59 = vpop.xlane.xlu0 %1401  ;;  %v1571_v30 = vmax.f32 %v1533_v13, 0.0  ;;  %v5304_v19 = vmul.f32 0.015625, %v1214_v7  ;;  %v1845_v11 = vmax.f32 %v1807_v56, 0.0  ;;  %v1608_v13 = vsub.f32 %v4871_v40, %v5267_v45 }
 0x1db   : > { %4123 = vrsqrt.f32 %v1646_v6  ;;  %v1458_v16 = vmul.f32 0.015625, %v1402_v59  ;;  %v4118_v61 = vpop.eup %4117  ;;  %v1763_v42 = vmul.f32 %v5057_v60, %v1718_v39 }
 0x1dc   : > { %v1647_v10 = vadd.f32 1e-05, %v1571_v30  ;;  %v1497_v49 = vmul.f32 %v5304_v19, %v5304_v19  ;;  %v1872_v41 = vpack.c.bf16 %v1845_v11, %v1844_v3  ;;  %v1719_v28 = vmul.f32 %v4118_v61, %v1605_v25 }
 0x1dd   : > { %v1534_v31 = vsub.f32 %v1458_v16, %v1496_v51  ;;  %v1405_v1 = vpop.xlane.xlu1 %1404  ;;  %v1808_v43 = vadd.f32 %v5069_v57, %v1763_v42  ;;  %v1609_v11 = vsub.f32 %v4885_v48, %v5282_v32  ;;  %v1610_v32 = vsub.f32 %v4899_v55, %v5289_v14 }
 0x1de   : > { %v1217_v4 = vpop.xlane.xlu0 %1216  ;;  %4125 = vrsqrt.f32 %v1647_v10  ;;  %v1459_v17 = vmul.f32 0.015625, %v1405_v1  ;;  %3909 = vmatmul.mubr.msk.bf16.gmra.mxu0 %vm1124_vm3, %v1872_v41  ;;  %3993 = vmatmul.mubr.msk.bf16.gmra.mxu1 %vm1124_vm3, %v1872_v41  ;;  %v1764_v50 = vmul.f32 %v5057_v60, %v1719_v28 }
 0x1df   : > { %v1572_v34 = vmax.f32 %v1534_v31, 0.0  ;;  %v5311_v62 = vmul.f32 0.015625, %v1217_v4  ;;  %3912 = vmatprep.mubr.msk.bf16.mxu0 %vm4236_vm0, %v6326_v35  ;;  %3996 = vmatprep.mubr.msk.bf16.mxu1 %vm4236_vm0, %v6326_v35  ;;  %v1846_v54 = vmax.f32 %v1808_v43, 0.0 }
 0x1e0   : > { %v4120_v8 = vpop.eup %4119  ;;  %v1535_v63 = vsub.f32 %v1459_v17, %v1497_v49  ;;  %v1809_v33 = vadd.f32 %v5069_v57, %v1764_v50 }
 0x1e1   : > { %v1648_v38 = vadd.f32 1e-05, %v1572_v34  ;;  %v1498_v18 = vmul.f32 %v5311_v62, %v5311_v62  ;;  %v1220_v52 = vpop.xlane.xlu1 %1219  ;;  %v1720_v37 = vmul.f32 %v4120_v8, %v1606_v46 }
 0x1e2   : > { %v1408_v44 = vpop.xlane.xlu0 %1407  ;;  %v1573_v58 = vmax.f32 %v1535_v63, 0.0  ;;  %v5326_v23 = vmul.f32 0.015625, %v1220_v52  ;;  %v1847_v24 = vmax.f32 %v1809_v33, 0.0 }
 0x1e3   : > { %4127 = vrsqrt.f32 %v1648_v38  ;;  %v1460_v9 = vmul.f32 0.015625, %v1408_v44  ;;  %v4122_v36 = vpop.eup %4121  ;;  %v1765_v2 = vmul.f32 %v5057_v60, %v1720_v37 }
 0x1e4   : > { %v1649_v21 = vadd.f32 1e-05, %v1573_v58  ;;  %v1499_v51 = vmul.f32 %v5326_v23, %v5326_v23  ;;  %v1873_v56 = vpack.c.bf16 %v1847_v24, %v1846_v54  ;;  %v1721_v39 = vmul.f32 %v4122_v36, %v1607_v27 }
 0x1e5   : > { %v1536_v6 = vsub.f32 %v1460_v9, %v1498_v18  ;;  %v1411_v59 = vpop.xlane.xlu1 %1410  ;;  %v1810_v40 = vadd.f32 %v5069_v57, %v1765_v2  ;;  %v1611_v27 = vsub.f32 %v4913_v15, %v5304_v19  ;;  %v1612_v19 = vsub.f32 %v4927_v22, %v5311_v62  ;;  %v5386_v22 = vld [vmem:[%s6216_s2] ss:$0 sm:$0xff] }
 0x1e6   : > { %v1223_v7 = vpop.xlane.xlu0 %1222  ;;  %4129 = vrsqrt.f32 %v1649_v21  ;;  %v1461_v16 = vmul.f32 0.015625, %v1411_v59  ;;  %3913 = vmatmul.mubr.msk.bf16.gmra.mxu0 %vm1124_vm3, %v1873_v56  ;;  %3997 = vmatmul.mubr.msk.bf16.gmra.mxu1 %vm1124_vm3, %v1873_v56  ;;  %v1766_v61 = vmul.f32 %v5057_v60, %v1721_v39 }
 0x1e7   : > { %v1574_v30 = vmax.f32 %v1536_v6, 0.0  ;;  %v5335_v47 = vmul.f32 0.015625, %v1223_v7  ;;  %3916 = vmatprep.mubr.msk.bf16.mxu0 %vm4236_vm0, %v6326_v35  ;;  %4000 = vmatprep.mubr.msk.bf16.mxu1 %vm4236_vm0, %v6326_v35  ;;  %v1848_v34 = vmax.f32 %v1810_v40, 0.0 }
 0x1e8   : > { %v4124_v26 = vpop.eup %4123  ;;  %v1537_v3 = vsub.f32 %v1461_v16, %v1499_v51  ;;  %v1811_v49 = vadd.f32 %v5069_v57, %v1766_v61 }
 0x1e9   : > { %v1722_v45 = vmul.f32 %v4124_v26, %v1608_v13  ;;  %v1650_v25 = vadd.f32 1e-05, %v1574_v30  ;;  %v1500_v42 = vmul.f32 %v5335_v47, %v5335_v47  ;;  %v1226_v31 = vpop.xlane.xlu1 %1225 }
 0x1ea   : > { %v1414_v10 = vpop.xlane.xlu0 %1413  ;;  %v1575_v1 = vmax.f32 %v1537_v3, 0.0  ;;  %v5350_v41 = vmul.f32 0.015625, %v1226_v31  ;;  %v1849_v17 = vmax.f32 %v1811_v49, 0.0 }
 0x1eb   : > { %4131 = vrsqrt.f32 %v1650_v25  ;;  %v1462_v4 = vmul.f32 0.015625, %v1414_v10  ;;  %v4126_v28 = vpop.eup %4125  ;;  %v1767_v8 = vmul.f32 %v5057_v60, %v1722_v45 }
 0x1ec   : > { %v1723_v46 = vmul.f32 %v4126_v28, %v1609_v11  ;;  %v1651_v50 = vadd.f32 1e-05, %v1575_v1  ;;  %v1501_v43 = vmul.f32 %v5350_v41, %v5350_v41  ;;  %v1874_v18 = vpack.c.bf16 %v1849_v17, %v1848_v34 }
 0x1ed   : > { %v1538_v48 = vsub.f32 %v1462_v4, %v1500_v42  ;;  %v1417_v38 = vpop.xlane.xlu1 %1416  ;;  %v1812_v55 = vadd.f32 %v5069_v57, %v1767_v8  ;;  %v1613_v1 = vsub.f32 %v4941_v12, %v5326_v23 }
 0x1ee   : > { %v1229_v63 = vpop.xlane.xlu0 %1228  ;;  %4133 = vrsqrt.f32 %v1651_v50  ;;  %v1463_v52 = vmul.f32 0.015625, %v1417_v38  ;;  %3917 = vmatmul.mubr.msk.bf16.gmra.mxu0 %vm1124_vm3, %v1874_v18  ;;  %4001 = vmatmul.mubr.msk.bf16.gmra.mxu1 %vm1124_vm3, %v1874_v18  ;;  %v1768_v58 = vmul.f32 %v5057_v60, %v1723_v46  ;;  %v1614_v18 = vsub.f32 %v4955_v0, %v5335_v47 }
 0x1ef   : > { %v1576_v44 = vmax.f32 %v1538_v48, 0.0  ;;  %v5357_v33 = vmul.f32 0.015625, %v1229_v63  ;;  %3920 = vmatprep.mubr.msk.bf16.mxu0 %vm4236_vm0, %v6326_v35  ;;  %4004 = vmatprep.mubr.msk.bf16.mxu1 %vm4236_vm0, %v6326_v35  ;;  %v1850_v7 = vmax.f32 %v1812_v55, 0.0 }
 0x1f0   : > { %v4128_v37 = vpop.eup %4127  ;;  %v1539_v36 = vsub.f32 %v1463_v52, %v1501_v43  ;;  %v1813_v21 = vadd.f32 %v5069_v57, %v1768_v58 }
 0x1f1   : > { %v1724_v14 = vmul.f32 %v4128_v37, %v1610_v32  ;;  %v1652_v9 = vadd.f32 1e-05, %v1576_v44  ;;  %v1502_v54 = vmul.f32 %v5357_v33, %v5357_v33  ;;  %v1232_v2 = vpop.xlane.xlu1 %1231 }
 0x1f2   : > { %v1420_v24 = vpop.xlane.xlu0 %1419  ;;  %v1577_v6 = vmax.f32 %v1539_v36, 0.0  ;;  %v5372_v51 = vmul.f32 0.015625, %v1232_v2  ;;  %v1851_v56 = vmax.f32 %v1813_v21, 0.0 }
 0x1f3   : > { %4135 = vrsqrt.f32 %v1652_v9  ;;  %v1464_v13 = vmul.f32 0.015625, %v1420_v24  ;;  %v4130_v59 = vpop.eup %4129  ;;  %v1769_v39 = vmul.f32 %v5057_v60, %v1724_v14  ;;  %v1615_v24 = vsub.f32 %v4969_v29, %v5350_v41 }
 0x1f4   : > { %v1725_v30 = vmul.f32 %v4130_v59, %v1611_v27  ;;  %v1653_v16 = vadd.f32 1e-05, %v1577_v6  ;;  %v1503_v26 = vmul.f32 %v5372_v51, %v5372_v51  ;;  %v1875_v45 = vpack.c.bf16 %v1851_v56, %v1850_v7 }
 0x1f5   : > { %v1540_v15 = vsub.f32 %v1464_v13, %v1502_v54  ;;  %v1423_v61 = vpop.xlane.xlu1 %1422  ;;  %v1814_v62 = vadd.f32 %v5069_v57, %v1769_v39  ;;  %v5401_v57 = vld [vmem:[%s6217_s3] ss:$0 sm:$0xff] }
 0x1f6   : > { %v1235_v40 = vpop.xlane.xlu0 %1234  ;;  %4137 = vrsqrt.f32 %v1653_v16  ;;  %v1465_v3 = vmul.f32 0.015625, %v1423_v61  ;;  %3921 = vmatmul.mubr.msk.bf16.gmra.mxu0 %vm1124_vm3, %v1875_v45  ;;  %4005 = vmatmul.mubr.msk.bf16.gmra.mxu1 %vm1124_vm3, %v1875_v45  ;;  %v1770_v60 = vmul.f32 %v5386_v22, %v1725_v30  ;;  %v1616_v30 = vsub.f32 %v4983_v53, %v5357_v33 }
 0x1f7   : > { %v1578_v25 = vmax.f32 %v1540_v15, 0.0  ;;  %v5379_v11 = vmul.f32 0.015625, %v1235_v40  ;;  %3924 = vmatprep.mubr.msk.bf16.mxu0 %vm4236_vm0, %v6326_v35  ;;  %4008 = vmatprep.mubr.msk.bf16.mxu1 %vm4236_vm0, %v6326_v35  ;;  %v1852_v32 = vmax.f32 %v1814_v62, 0.0  ;;  %v1617_v53 = vsub.f32 %v4999_v5, %v5372_v51 }
 0x1f8   : > { %v4132_v42 = vpop.eup %4131  ;;  %v1541_v49 = vsub.f32 %v1465_v3, %v1503_v26  ;;  %v1815_v17 = vadd.f32 %v5401_v57, %v1770_v60 }
 0x1f9   : > { %v1726_v10 = vmul.f32 %v4132_v42, %v1612_v19  ;;  %v1654_v31 = vadd.f32 1e-05, %v1578_v25  ;;  %v1504_v4 = vmul.f32 %v5379_v11, %v5379_v11  ;;  %v1238_v34 = vpop.xlane.xlu1 %1237  ;;  %v1618_v3 = vsub.f32 %v5016_v20, %v5379_v11  ;;  %v6327_v20 = vld [vmem:[#allocation40_spill] sm:$0xff] }
 0x1fa   : > { %v1426_v28 = vpop.xlane.xlu0 %1425  ;;  %v1579_v8 = vmax.f32 %v1541_v49, 0.0  ;;  %v5404_v50 = vmul.f32 0.015625, %v1238_v34  ;;  %v1853_v12 = vmax.f32 %v1815_v17, 0.0 }
 0x1fb   : > { %4139 = vrsqrt.f32 %v1654_v31  ;;  %v1466_v46 = vmul.f32 0.015625, %v1426_v28  ;;  %v4134_v48 = vpop.eup %4133  ;;  %v1771_v23 = vmul.f32 %v5386_v22, %v1726_v10 }
 0x1fc   : > { %v1727_v43 = vmul.f32 %v4134_v48, %v1613_v1  ;;  %v1655_v38 = vadd.f32 1e-05, %v1579_v8  ;;  %v1505_v44 = vmul.f32 %v5404_v50, %v5404_v50  ;;  %v1876_v37 = vpack.c.bf16 %v1853_v12, %v1852_v32 }
 0x1fd   : > { %v1542_v63 = vsub.f32 %v1466_v46, %v1504_v4  ;;  %v1429_v52 = vpop.xlane.xlu1 %1428  ;;  %v1816_v58 = vadd.f32 %v5401_v57, %v1771_v23  ;;  %v1619_v11 = vsub.f32 %v6327_v20, %v5404_v50 }
 0x1fe   : > { %4141 = vrsqrt.f32 %v1655_v38  ;;  %v1467_v14 = vmul.f32 0.015625, %v1429_v52  ;;  %v1772_v9 = vmul.f32 %v5386_v22, %v1727_v43  ;;  %3925 = vmatmul.mubr.msk.bf16.gmra.mxu0 %vm1124_vm3, %v1876_v37  ;;  %4009 = vmatmul.mubr.msk.bf16.gmra.mxu1 %vm1124_vm3, %v1876_v37 }
 0x1ff   : > { %v1580_v55 = vmax.f32 %v1542_v63, 0.0  ;;  %3928 = vmatprep.mubr.msk.bf16.mxu0 %vm4236_vm0, %v6326_v35  ;;  %4012 = vmatprep.mubr.msk.bf16.mxu1 %vm4236_vm0, %v6326_v35  ;;  %v1854_v2 = vmax.f32 %v1816_v58, 0.0 }
 0x200   : > { %v4136_v36 = vpop.eup %4135  ;;  %v1543_v0 = vsub.f32 %v1467_v14, %v1505_v44  ;;  %v1817_v47 = vadd.f32 %v5401_v57, %v1772_v9 }
 0x201   : > { %v1728_v27 = vmul.f32 %v4136_v36, %v1614_v18  ;;  %v1656_v54 = vadd.f32 1e-05, %v1580_v55 }
 0x202   : > { %v1581_v21 = vmax.f32 %v1543_v0, 0.0  ;;  %v1855_v6 = vmax.f32 %v1817_v47, 0.0 }
 0x203   : > { %4143 = vrsqrt.f32 %v1656_v54  ;;  %v1773_v13 = vmul.f32 %v5386_v22, %v1728_v27  ;;  %v4138_v59 = vpop.eup %4137 }
 0x204   : > { %v1729_v7 = vmul.f32 %v4138_v59, %v1615_v24  ;;  %v1657_v56 = vadd.f32 1e-05, %v1581_v21  ;;  %v1877_v39 = vpack.c.bf16 %v1855_v6, %v1854_v2 }
 0x205   : > { %v1818_v15 = vadd.f32 %v5401_v57, %v1773_v13 }
 0x206   : > { %4145 = vrsqrt.f32 %v1657_v56  ;;  %v1774_v16 = vmul.f32 %v5386_v22, %v1729_v7  ;;  %3929 = vmatmul.mubr.msk.bf16.gmra.mxu0 %vm1124_vm3, %v1877_v39  ;;  %4013 = vmatmul.mubr.msk.bf16.gmra.mxu1 %vm1124_vm3, %v1877_v39 }
 0x207   : > { %3932 = vmatprep.mubr.msk.bf16.mxu0 %vm4236_vm0, %v6326_v35  ;;  %4016 = vmatprep.mubr.msk.bf16.mxu1 %vm4236_vm0, %v6326_v35  ;;  %v1856_v33 = vmax.f32 %v1818_v15, 0.0 }
 0x208   : > { %v4140_v19 = vpop.eup %4139  ;;  %v1819_v41 = vadd.f32 %v5401_v57, %v1774_v16 }
 0x209   : > { %v1730_v29 = vmul.f32 %v4140_v19, %v1616_v30 }
 0x20a   : > { %v1857_v26 = vmax.f32 %v1819_v41, 0.0 }
 0x20b   : > { %v1775_v61 = vmul.f32 %v5386_v22, %v1730_v29  ;;  %v4142_v40 = vpop.eup %4141 }
 0x20c   : > { %v1731_v45 = vmul.f32 %v4142_v40, %v1617_v53  ;;  %v1878_v25 = vpack.c.bf16 %v1857_v26, %v1856_v33 }
 0x20d   : > { %v1820_v60 = vadd.f32 %v5401_v57, %v1775_v61 }
 0x20e   : > { %v1776_v42 = vmul.f32 %v5386_v22, %v1731_v45  ;;  %3933 = vmatmul.mubr.msk.bf16.gmra.mxu0 %vm1124_vm3, %v1878_v25  ;;  %4017 = vmatmul.mubr.msk.bf16.gmra.mxu1 %vm1124_vm3, %v1878_v25 }
 0x20f   : > { %3936 = vmatprep.mubr.msk.bf16.mxu0 %vm4236_vm0, %v6326_v35  ;;  %4020 = vmatprep.mubr.msk.bf16.mxu1 %vm4236_vm0, %v6326_v35  ;;  %v1858_v10 = vmax.f32 %v1820_v60, 0.0 }
 0x210   : > { %v4144_v62 = vpop.eup %4143  ;;  %v1821_v51 = vadd.f32 %v5401_v57, %v1776_v42 }
 0x211   : > { %v1732_v5 = vmul.f32 %v4144_v62, %v1618_v3 }
 0x212   : > { %v1859_v31 = vmax.f32 %v1821_v51, 0.0 }
 0x213   : > { %v1777_v49 = vmul.f32 %v5386_v22, %v1732_v5  ;;  %v4146_v1 = vpop.eup %4145 }
 0x214   : > { %v1733_v4 = vmul.f32 %v4146_v1, %v1619_v11  ;;  %v1879_v28 = vpack.c.bf16 %v1859_v31, %v1858_v10 }
 0x215   : > { %v1822_v17 = vadd.f32 %v5401_v57, %v1777_v49 }
 0x216   : > { %v1778_v34 = vmul.f32 %v5386_v22, %v1733_v4  ;;  %3937 = vmatmul.mubr.msk.bf16.gmra.mxu0 %vm1124_vm3, %v1879_v28  ;;  %4021 = vmatmul.mubr.msk.bf16.gmra.mxu1 %vm1124_vm3, %v1879_v28 }
 0x217   : > { %3940 = vmatprep.mubr.msk.bf16.mxu0 %vm4236_vm0, %v6326_v35  ;;  %4024 = vmatprep.mubr.msk.bf16.mxu1 %vm4236_vm0, %v6326_v35  ;;  %v1860_v46 = vmax.f32 %v1822_v17, 0.0 }
 0x218   : > { %v1823_v8 = vadd.f32 %v5401_v57, %v1778_v34 }
 0x21a   : > { %v1861_v50 = vmax.f32 %v1823_v8, 0.0 }
 0x21c   : > { %v1880_v48 = vpack.c.bf16 %v1861_v50, %v1860_v46 }
 0x21e   : > { %3941 = vmatmul.mubr.msk.bf16.gmra.mxu0 %vm1124_vm3, %v1880_v48  ;;  %4025 = vmatmul.mubr.msk.bf16.gmra.mxu1 %vm1124_vm3, %v1880_v48 }
 0x24c   : > { %v2004_v22 = vpop.f32.mrf.mxu0  ;;  %v2222_v32 = vpop.f32.mrf.mxu1 }
 0x24d   : > { %v5464_v23 = vsel %vm362_vm2, %v2222_v32, %v2004_v22 }
 0x24e   : > { %v3870_v43 = vpop.f32.mrf.mxu0  ;;  %v3954_v38 = vpop.f32.mrf.mxu1  ;;  %v2411_v35 = vsel %vm1124_vm3, %v5464_v23, 0.0  ;;  %v2563_v57 = vmul.f32 %v5464_v23, %v5464_v23 }
 0x24f   : > { %2412 = vadd.xlane.f32.xlu0 %v2411_v35 }
 0x250   : > { %v2007_v63 = vpop.f32.mrf.mxu0  ;;  %v2225_v18 = vpop.f32.mrf.mxu1  ;;  %v2601_v55 = vsel %vm1124_vm3, %v2563_v57, 0.0 }
 0x251   : > { %v5472_v52 = vsel %vm363_vm4, %v2225_v18, %v2007_v63 }
 0x252   : > { %v3871_v37 = vpop.f32.mrf.mxu0  ;;  %v3955_v58 = vpop.f32.mrf.mxu1  ;;  %v2414_v14 = vsel %vm1124_vm3, %v5472_v52, 0.0  ;;  %v2564_v9 = vmul.f32 %v5472_v52, %v5472_v52 }
 0x253   : > { %2602 = vadd.xlane.f32.xlu0 %v2601_v55  ;;  %2415 = vadd.xlane.f32.xlu1 %v2414_v14 }
 0x254   : > { %v2604_v54 = vsel %vm1124_vm3, %v2564_v9, 0.0 }
 0x256   : > { %v2012_v36 = vpop.f32.mrf.mxu0  ;;  %v2230_v27 = vpop.f32.mrf.mxu1 }
 0x257   : > { %v5482_v47 = vsel %vm364_vm5, %v2230_v27, %v2012_v36  ;;  %2605 = vadd.xlane.f32.xlu1 %v2604_v54 }
 0x258   : > { %v3874_v24 = vpop.f32.mrf.mxu0  ;;  %v3958_v2 = vpop.f32.mrf.mxu1  ;;  %v2417_v21 = vsel %vm1124_vm3, %v5482_v47, 0.0  ;;  %v2565_v6 = vmul.f32 %v5482_v47, %v5482_v47 }
 0x259   : > { %2418 = vadd.xlane.f32.xlu0 %v2417_v21 }
 0x25a   : > { %v2015_v13 = vpop.f32.mrf.mxu0  ;;  %v2233_v59 = vpop.f32.mrf.mxu1  ;;  %v2607_v16 = vsel %vm1124_vm3, %v2565_v6, 0.0 }
 0x25b   : > { %v5490_v56 = vsel %vm365_vm6, %v2233_v59, %v2015_v13 }
 0x25c   : > { %v3875_v39 = vpop.f32.mrf.mxu0  ;;  %v3959_v30 = vpop.f32.mrf.mxu1  ;;  %v2420_v15 = vsel %vm1124_vm3, %v5490_v56, 0.0  ;;  %v2566_v19 = vmul.f32 %v5490_v56, %v5490_v56 }
 0x25d   : > { %2608 = vadd.xlane.f32.xlu0 %v2607_v16  ;;  %2421 = vadd.xlane.f32.xlu1 %v2420_v15  ;;  %v6348_v30 = vld [vmem:[#allocation18_spill] sm:$0xff] }
 0x25e   : > { %v2020_v29 = vpop.f32.mrf.mxu0  ;;  %v2238_v41 = vpop.f32.mrf.mxu1  ;;  %v2610_v40 = vsel %vm1124_vm3, %v2566_v19, 0.0  ;;  %vm6349_vm6 = vcmp.lt.s32.totalorder %v6348_v30, 300 }
 0x25f   : > { %v5499_v33 = vsel %vm366_vm7, %v2238_v41, %v2020_v29 }
 0x260   : > { %v3878_v26 = vpop.f32.mrf.mxu0  ;;  %v3962_v61 = vpop.f32.mrf.mxu1  ;;  %v2423_v45 = vsel %vm1124_vm3, %v5499_v33, 0.0  ;;  %v2567_v25 = vmul.f32 %v5499_v33, %v5499_v33 }
 0x261   : > { %2611 = vadd.xlane.f32.xlu1 %v2610_v40  ;;  %2424 = vadd.xlane.f32.xlu0 %v2423_v45 }
 0x262   : > { %v2023_v3 = vpop.f32.mrf.mxu0  ;;  %v2241_v42 = vpop.f32.mrf.mxu1  ;;  %v2613_v20 = vsel %vm1124_vm3, %v2567_v25, 0.0 }
 0x263   : > { %v5508_v62 = vsel %vm367_vm8, %v2241_v42, %v2023_v3 }
 0x264   : > { %v3879_v5 = vpop.f32.mrf.mxu0  ;;  %v3963_v51 = vpop.f32.mrf.mxu1  ;;  %v2426_v11 = vsel %vm1124_vm3, %v5508_v62, 0.0  ;;  %v2568_v10 = vmul.f32 %v5508_v62, %v5508_v62 }
 0x265   : > { %2614 = vadd.xlane.f32.xlu0 %v2613_v20  ;;  %2427 = vadd.xlane.f32.xlu1 %v2426_v11  ;;  %v6340_v11 = vld [vmem:[#allocation14_spill] sm:$0xff] }
 0x266   : > { %v2028_v31 = vpop.f32.mrf.mxu0  ;;  %v2246_v49 = vpop.f32.mrf.mxu1  ;;  %v2616_v17 = vsel %vm1124_vm3, %v2568_v10, 0.0  ;;  %vm6341_vm0 = vcmp.lt.s32.totalorder %v6340_v11, 300 }
 0x267   : > { %v5517_v4 = vsel %vm368_vm9, %v2246_v49, %v2028_v31 }
 0x268   : > { %v3882_v28 = vpop.f32.mrf.mxu0  ;;  %v3966_v34 = vpop.f32.mrf.mxu1  ;;  %v2429_v8 = vsel %vm1124_vm3, %v5517_v4, 0.0  ;;  %v2569_v46 = vmul.f32 %v5517_v4, %v5517_v4 }
 0x269   : > { %2617 = vadd.xlane.f32.xlu1 %v2616_v17  ;;  %2430 = vadd.xlane.f32.xlu0 %v2429_v8 }
 0x26a   : > { %v2031_v50 = vpop.f32.mrf.mxu0  ;;  %v2249_v48 = vpop.f32.mrf.mxu1  ;;  %v2619_v38 = vsel %vm1124_vm3, %v2569_v46, 0.0  ;;  %v6342_v46 = vld [vmem:[#allocation15_spill] sm:$0xff] }
 0x26b   : > { %v5526_v32 = vsel %vm369_vm10, %v2249_v48, %v2031_v50  ;;  %vm6343_vm2 = vcmp.lt.s32.totalorder %v6342_v46, 300 }
 0x26c   : > { %v3883_v12 = vpop.f32.mrf.mxu0  ;;  %v3967_v43 = vpop.f32.mrf.mxu1  ;;  %v2432_v35 = vsel %vm1124_vm3, %v5526_v32, 0.0  ;;  %v2570_v57 = vmul.f32 %v5526_v32, %v5526_v32 }
 0x26d   : > { %2620 = vadd.xlane.f32.xlu0 %v2619_v38  ;;  %2433 = vadd.xlane.f32.xlu1 %v2432_v35 }
 0x26e   : > { %v2036_v63 = vpop.f32.mrf.mxu0  ;;  %v2254_v18 = vpop.f32.mrf.mxu1  ;;  %v2622_v14 = vsel %vm1124_vm3, %v2570_v57, 0.0 }
 0x26f   : > { %v5535_v37 = vsel %vm370_vm11, %v2254_v18, %v2036_v63  ;;  %v6344_v63 = vld [vmem:[#allocation16_spill] sm:$0xff] }
 0x270   : > { %v3886_v58 = vpop.f32.mrf.mxu0  ;;  %v3970_v55 = vpop.f32.mrf.mxu1  ;;  %v2435_v9 = vsel %vm1124_vm3, %v5535_v37, 0.0  ;;  %v2571_v36 = vmul.f32 %v5535_v37, %v5535_v37  ;;  %vm6345_vm4 = vcmp.lt.s32.totalorder %v6344_v63, 300 }
 0x271   : > { %2623 = vadd.xlane.f32.xlu1 %v2622_v14  ;;  %2436 = vadd.xlane.f32.xlu0 %v2435_v9 }
 0x272   : > { %v2039_v27 = vpop.f32.mrf.mxu0  ;;  %v2257_v54 = vpop.f32.mrf.mxu1  ;;  %v2625_v6 = vsel %vm1124_vm3, %v2571_v36, 0.0 }
 0x273   : > { %v5544_v24 = vsel %vm371_vm12, %v2257_v54, %v2039_v27  ;;  %v6346_v54 = vld [vmem:[#allocation17_spill] sm:$0xff] }
 0x274   : > { %v3887_v2 = vpop.f32.mrf.mxu0  ;;  %v3971_v21 = vpop.f32.mrf.mxu1  ;;  %v2438_v13 = vsel %vm1124_vm3, %v5544_v24, 0.0  ;;  %v2572_v59 = vmul.f32 %v5544_v24, %v5544_v24  ;;  %vm6347_vm5 = vcmp.lt.s32.totalorder %v6346_v54, 300 }
 0x275   : > { %2626 = vadd.xlane.f32.xlu0 %v2625_v6  ;;  %2439 = vadd.xlane.f32.xlu1 %v2438_v13 }
 0x276   : > { %v2044_v7 = vpop.f32.mrf.mxu0  ;;  %v2262_v39 = vpop.f32.mrf.mxu1  ;;  %v2628_v29 = vsel %vm1124_vm3, %v2572_v59, 0.0 }
 0x277   : > { %v5553_v16 = vsel %vm372_vm13, %v2262_v39, %v2044_v7 }
 0x278   : > { %v3890_v15 = vpop.f32.mrf.mxu0  ;;  %v3974_v19 = vpop.f32.mrf.mxu1  ;;  %v2441_v41 = vsel %vm1124_vm3, %v5553_v16, 0.0  ;;  %v2573_v53 = vmul.f32 %v5553_v16, %v5553_v16 }
 0x279   : > { %2629 = vadd.xlane.f32.xlu1 %v2628_v29  ;;  %2442 = vadd.xlane.f32.xlu0 %v2441_v41 }
 0x27a   : > { %v2047_v26 = vpop.f32.mrf.mxu0  ;;  %v2265_v61 = vpop.f32.mrf.mxu1  ;;  %v2631_v42 = vsel %vm1124_vm3, %v2573_v53, 0.0 }
 0x27b   : > { %v5562_v45 = vsel %vm373_vm14, %v2265_v61, %v2047_v26 }
 0x27c   : > { %v3891_v25 = vpop.f32.mrf.mxu0  ;;  %v3975_v3 = vpop.f32.mrf.mxu1  ;;  %v2444_v60 = vsel %vm1124_vm3, %v5562_v45, 0.0  ;;  %v2574_v5 = vmul.f32 %v5562_v45, %v5562_v45 }
 0x27d   : > { %2632 = vadd.xlane.f32.xlu0 %v2631_v42  ;;  %2445 = vadd.xlane.f32.xlu1 %v2444_v60  ;;  %v6350_v25 = vld [vmem:[#allocation19_spill] sm:$0xff] }
 0x27e   : > { %v2052_v51 = vpop.f32.mrf.mxu0  ;;  %v2270_v20 = vpop.f32.mrf.mxu1  ;;  %v2634_v1 = vsel %vm1124_vm3, %v2574_v5, 0.0  ;;  %vm6351_vm7 = vcmp.lt.s32.totalorder %v6350_v25, 300 }
 0x27f   : > { %v5571_v10 = vsel %vm6341_vm0, %v2270_v20, %v2052_v51 }
 0x280   : > { %v3894_v31 = vpop.f32.mrf.mxu0  ;;  %v3978_v49 = vpop.f32.mrf.mxu1  ;;  %v2447_v28 = vsel %vm1124_vm3, %v5571_v10, 0.0  ;;  %v2575_v34 = vmul.f32 %v5571_v10, %v5571_v10 }
 0x281   : > { %2635 = vadd.xlane.f32.xlu1 %v2634_v1  ;;  %2448 = vadd.xlane.f32.xlu0 %v2447_v28  ;;  %v6352_v49 = vld [vmem:[#allocation20_spill] sm:$0xff] }
 0x282   : > { %v2055_v17 = vpop.f32.mrf.mxu0  ;;  %v2273_v8 = vpop.f32.mrf.mxu1  ;;  %v2637_v12 = vsel %vm1124_vm3, %v2575_v34, 0.0  ;;  %vm6353_vm8 = vcmp.lt.s32.totalorder %v6352_v49, 300 }
 0x283   : > { %v5580_v50 = vsel %vm6343_vm2, %v2273_v8, %v2055_v17 }
 0x284   : > { %v3895_v48 = vpop.f32.mrf.mxu0  ;;  %v3979_v22 = vpop.f32.mrf.mxu1  ;;  %v2450_v43 = vsel %vm1124_vm3, %v5580_v50, 0.0  ;;  %v2576_v38 = vmul.f32 %v5580_v50, %v5580_v50 }
 0x285   : > { %2638 = vadd.xlane.f32.xlu0 %v2637_v12  ;;  %2451 = vadd.xlane.f32.xlu1 %v2450_v43  ;;  %v6354_v12 = vld [vmem:[#allocation21_spill] sm:$0xff] }
 0x286   : > { %v2060_v35 = vpop.f32.mrf.mxu0  ;;  %v2278_v57 = vpop.f32.mrf.mxu1  ;;  %v2640_v55 = vsel %vm1124_vm3, %v2576_v38, 0.0  ;;  %vm6355_vm9 = vcmp.lt.s32.totalorder %v6354_v12, 300  ;;  %v6364_v12 = vld [vmem:[#allocation26_spill] sm:$0xff] }
 0x287   : > { %v5589_v18 = vsel %vm6345_vm4, %v2278_v57, %v2060_v35  ;;  %vm6365_vm14 = vcmp.lt.s32.totalorder %v6364_v12, 300 }
 0x288   : > { %v3898_v44 = vpop.f32.mrf.mxu0  ;;  %v3982_v58 = vpop.f32.mrf.mxu1  ;;  %v2453_v14 = vsel %vm1124_vm3, %v5589_v18, 0.0  ;;  %v2577_v9 = vmul.f32 %v5589_v18, %v5589_v18 }
 0x289   : > { %2641 = vadd.xlane.f32.xlu1 %v2640_v55  ;;  %2454 = vadd.xlane.f32.xlu0 %v2453_v14  ;;  %v6356_v14 = vld [vmem:[#allocation22_spill] sm:$0xff] }
 0x28a   : > { %v2063_v36 = vpop.f32.mrf.mxu0  ;;  %v2281_v27 = vpop.f32.mrf.mxu1  ;;  %v2643_v6 = vsel %vm1124_vm3, %v2577_v9, 0.0  ;;  %vm6357_vm10 = vcmp.lt.s32.totalorder %v6356_v14, 300 }
 0x28b   : > { %v5598_v0 = vsel %vm6347_vm5, %v2281_v27, %v2063_v36 }
 0x28c   : > { %v3899_v2 = vpop.f32.mrf.mxu0  ;;  %v3983_v21 = vpop.f32.mrf.mxu1  ;;  %v2456_v13 = vsel %vm1124_vm3, %v5598_v0, 0.0  ;;  %v2578_v59 = vmul.f32 %v5598_v0, %v5598_v0 }
 0x28d   : > { %2644 = vadd.xlane.f32.xlu0 %v2643_v6  ;;  %2457 = vadd.xlane.f32.xlu1 %v2456_v13 }
 0x28e   : > { %v2068_v7 = vpop.f32.mrf.mxu0  ;;  %v2286_v39 = vpop.f32.mrf.mxu1  ;;  %v2646_v41 = vsel %vm1124_vm3, %v2578_v59, 0.0  ;;  %v6358_v59 = vld [vmem:[#allocation23_spill] sm:$0xff] }
 0x28f   : > { %v5607_v15 = vsel %vm6349_vm6, %v2286_v39, %v2068_v7  ;;  %vm6359_vm11 = vcmp.lt.s32.totalorder %v6358_v59, 300 }
 0x290   : > { %v3902_v19 = vpop.f32.mrf.mxu0  ;;  %v3986_v29 = vpop.f32.mrf.mxu1  ;;  %v2459_v53 = vsel %vm1124_vm3, %v5607_v15, 0.0  ;;  %v2579_v26 = vmul.f32 %v5607_v15, %v5607_v15 }
 0x291   : > { %2647 = vadd.xlane.f32.xlu1 %v2646_v41  ;;  %2460 = vadd.xlane.f32.xlu0 %v2459_v53 }
 0x292   : > { %v2071_v61 = vpop.f32.mrf.mxu0  ;;  %v2289_v40 = vpop.f32.mrf.mxu1  ;;  %v2649_v5 = vsel %vm1124_vm3, %v2579_v26, 0.0 }
 0x293   : > { %v5616_v3 = vsel %vm6351_vm7, %v2289_v40, %v2071_v61  ;;  %v6360_v61 = vld [vmem:[#allocation24_spill] sm:$0xff] }
 0x294   : > { %v3903_v42 = vpop.f32.mrf.mxu0  ;;  %v3987_v60 = vpop.f32.mrf.mxu1  ;;  %v2462_v51 = vsel %vm1124_vm3, %v5616_v3, 0.0  ;;  %v2580_v20 = vmul.f32 %v5616_v3, %v5616_v3  ;;  %vm6361_vm12 = vcmp.lt.s32.totalorder %v6360_v61, 300 }
 0x295   : > { %2650 = vadd.xlane.f32.xlu0 %v2649_v5  ;;  %2463 = vadd.xlane.f32.xlu1 %v2462_v51 }
 0x296   : > { %v2076_v11 = vpop.f32.mrf.mxu0  ;;  %v2294_v31 = vpop.f32.mrf.mxu1  ;;  %v2652_v17 = vsel %vm1124_vm3, %v2580_v20, 0.0 }
 0x297   : > { %v5625_v1 = vsel %vm6353_vm8, %v2294_v31, %v2076_v11  ;;  %v6362_v31 = vld [vmem:[#allocation25_spill] sm:$0xff] }
 0x298   : > { %v3906_v28 = vpop.f32.mrf.mxu0  ;;  %v3990_v34 = vpop.f32.mrf.mxu1  ;;  %v2465_v8 = vsel %vm1124_vm3, %v5625_v1, 0.0  ;;  %v2581_v46 = vmul.f32 %v5625_v1, %v5625_v1  ;;  %vm6363_vm13 = vcmp.lt.s32.totalorder %v6362_v31, 300 }
 0x299   : > { %2653 = vadd.xlane.f32.xlu1 %v2652_v17  ;;  %2466 = vadd.xlane.f32.xlu0 %v2465_v8 }
 0x29a   : > { %v2079_v48 = vpop.f32.mrf.mxu0  ;;  %v2297_v22 = vpop.f32.mrf.mxu1  ;;  %v2655_v57 = vsel %vm1124_vm3, %v2581_v46, 0.0 }
 0x29b   : > { %v5634_v43 = vsel %vm6355_vm9, %v2297_v22, %v2079_v48 }
 0x29c   : > { %v3907_v38 = vpop.f32.mrf.mxu0  ;;  %v3991_v35 = vpop.f32.mrf.mxu1  ;;  %v2468_v63 = vsel %vm1124_vm3, %v5634_v43, 0.0  ;;  %v2582_v44 = vmul.f32 %v5634_v43, %v5634_v43 }
 0x29d   : > { %2656 = vadd.xlane.f32.xlu0 %v2655_v57  ;;  %2469 = vadd.xlane.f32.xlu1 %v2468_v63 }
 0x29e   : > { %v2084_v58 = vpop.f32.mrf.mxu0  ;;  %v2302_v55 = vpop.f32.mrf.mxu1  ;;  %v2658_v54 = vsel %vm1124_vm3, %v2582_v44, 0.0 }
 0x29f   : > { %v5643_v9 = vsel %vm6357_vm10, %v2302_v55, %v2084_v58 }
 0x2a0   : > { %v3910_v36 = vpop.f32.mrf.mxu0  ;;  %v3994_v27 = vpop.f32.mrf.mxu1  ;;  %v2471_v2 = vsel %vm1124_vm3, %v5643_v9, 0.0  ;;  %v2583_v21 = vmul.f32 %v5643_v9, %v5643_v9 }
 0x2a1   : > { %2659 = vadd.xlane.f32.xlu1 %v2658_v54  ;;  %2472 = vadd.xlane.f32.xlu0 %v2471_v2  ;;  %v6366_v36 = vld [vmem:[#allocation27_spill] sm:$0xff] }
 0x2a2   : > { %v2087_v6 = vpop.f32.mrf.mxu0  ;;  %v2305_v13 = vpop.f32.mrf.mxu1  ;;  %v2661_v19 = vsel %vm1124_vm3, %v2583_v21, 0.0  ;;  %vm6367_vm0 = vcmp.lt.s32.totalorder %v6366_v36, 300 }
 0x2a3   : > { %v5652_v7 = vsel %vm6359_vm11, %v2305_v13, %v2087_v6 }
 0x2a4   : > { %v3911_v39 = vpop.f32.mrf.mxu0  ;;  %v3995_v30 = vpop.f32.mrf.mxu1  ;;  %v2474_v29 = vsel %vm1124_vm3, %v5652_v7, 0.0  ;;  %v2584_v41 = vmul.f32 %v5652_v7, %v5652_v7 }
 0x2a5   : > { %2662 = vadd.xlane.f32.xlu0 %v2661_v19  ;;  %2475 = vadd.xlane.f32.xlu1 %v2474_v29  ;;  %v6368_v30 = vld [vmem:[#allocation28_spill] sm:$0xff] }
 0x2a6   : > { %v2092_v53 = vpop.f32.mrf.mxu0  ;;  %v2310_v26 = vpop.f32.mrf.mxu1  ;;  %v2664_v60 = vsel %vm1124_vm3, %v2584_v41, 0.0  ;;  %vm6369_vm2 = vcmp.lt.s32.totalorder %v6368_v30, 300 }
 0x2a7   : > { %v5661_v40 = vsel %vm6361_vm12, %v2310_v26, %v2092_v53 }
 0x2a8   : > { %v3914_v25 = vpop.f32.mrf.mxu0  ;;  %v3998_v42 = vpop.f32.mrf.mxu1  ;;  %v2477_v5 = vsel %vm1124_vm3, %v5661_v40, 0.0  ;;  %v2585_v51 = vmul.f32 %v5661_v40, %v5661_v40 }
 0x2a9   : > { %2665 = vadd.xlane.f32.xlu1 %v2664_v60  ;;  %2478 = vadd.xlane.f32.xlu0 %v2477_v5  ;;  %v6370_v60 = vld [vmem:[#allocation29_spill] sm:$0xff] }
 0x2aa   : > { %v2095_v20 = vpop.f32.mrf.mxu0  ;;  %v2313_v11 = vpop.f32.mrf.mxu1  ;;  %v2667_v17 = vsel %vm1124_vm3, %v2585_v51, 0.0  ;;  %vm6371_vm4 = vcmp.lt.s32.totalorder %v6370_v60, 300 }
 0x2ab   : > { %v5670_v49 = vsel %vm6363_vm13, %v2313_v11, %v2095_v20 }
 0x2ac   : > { %v3915_v28 = vpop.f32.mrf.mxu0  ;;  %v3999_v34 = vpop.f32.mrf.mxu1  ;;  %v2480_v8 = vsel %vm1124_vm3, %v5670_v49, 0.0  ;;  %v2586_v46 = vmul.f32 %v5670_v49, %v5670_v49 }
 0x2ad   : > { %2668 = vadd.xlane.f32.xlu0 %v2667_v17  ;;  %2481 = vadd.xlane.f32.xlu1 %v2480_v8  ;;  %v6372_v8 = vld [vmem:[#allocation30_spill] sm:$0xff] }
 0x2ae   : > { %v2100_v48 = vpop.f32.mrf.mxu0  ;;  %v2318_v22 = vpop.f32.mrf.mxu1  ;;  %v2670_v63 = vsel %vm1124_vm3, %v2586_v46, 0.0  ;;  %vm6373_vm5 = vcmp.lt.s32.totalorder %v6372_v8, 300  ;;  %v6380_v8 = vld [vmem:[#allocation34_spill] sm:$0xff] }
 0x2af   : > { %v5679_v38 = vsel %vm6365_vm14, %v2318_v22, %v2100_v48  ;;  %vm6381_vm9 = vcmp.lt.s32.totalorder %v6380_v8, 300 }
 0x2b0   : > { %v3918_v35 = vpop.f32.mrf.mxu0  ;;  %v4002_v57 = vpop.f32.mrf.mxu1  ;;  %v2483_v44 = vsel %vm1124_vm3, %v5679_v38, 0.0  ;;  %v2587_v58 = vmul.f32 %v5679_v38, %v5679_v38 }
 0x2b1   : > { %2671 = vadd.xlane.f32.xlu1 %v2670_v63  ;;  %2484 = vadd.xlane.f32.xlu0 %v2483_v44 }
 0x2b2   : > { %v2103_v55 = vpop.f32.mrf.mxu0  ;;  %v2321_v14 = vpop.f32.mrf.mxu1  ;;  %v2673_v21 = vsel %vm1124_vm3, %v2587_v58, 0.0  ;;  %v6374_v58 = vld [vmem:[#allocation31_spill] sm:$0xff] }
 0x2b3   : > { %v5688_v27 = vsel %vm6367_vm0, %v2321_v14, %v2103_v55  ;;  %vm6375_vm6 = vcmp.lt.s32.totalorder %v6374_v58, 300 }
 0x2b4   : > { %v3919_v54 = vpop.f32.mrf.mxu0  ;;  %v4003_v2 = vpop.f32.mrf.mxu1  ;;  %v2486_v6 = vsel %vm1124_vm3, %v5688_v27, 0.0  ;;  %v2588_v13 = vmul.f32 %v5688_v27, %v5688_v27 }
 0x2b5   : > { %2674 = vadd.xlane.f32.xlu0 %v2673_v21  ;;  %2487 = vadd.xlane.f32.xlu1 %v2486_v6 }
 0x2b6   : > { %v2108_v59 = vpop.f32.mrf.mxu0  ;;  %v2326_v39 = vpop.f32.mrf.mxu1  ;;  %v2676_v53 = vsel %vm1124_vm3, %v2588_v13, 0.0 }
 0x2b7   : > { %v5697_v19 = vsel %vm6369_vm2, %v2326_v39, %v2108_v59  ;;  %v6376_v59 = vld [vmem:[#allocation32_spill] sm:$0xff] }
 0x2b8   : > { %v3922_v29 = vpop.f32.mrf.mxu0  ;;  %v4006_v41 = vpop.f32.mrf.mxu1  ;;  %v2489_v26 = vsel %vm1124_vm3, %v5697_v19, 0.0  ;;  %v2589_v61 = vmul.f32 %v5697_v19, %v5697_v19  ;;  %vm6377_vm7 = vcmp.lt.s32.totalorder %v6376_v59, 300 }
 0x2b9   : > { %2677 = vadd.xlane.f32.xlu1 %v2676_v53  ;;  %2490 = vadd.xlane.f32.xlu0 %v2489_v26 }
 0x2ba   : > { %v2111_v25 = vpop.f32.mrf.mxu0  ;;  %v2329_v42 = vpop.f32.mrf.mxu1  ;;  %v2679_v11 = vsel %vm1124_vm3, %v2589_v61, 0.0 }
 0x2bb   : > { %v5706_v5 = vsel %vm6371_vm4, %v2329_v42, %v2111_v25  ;;  %v6378_v42 = vld [vmem:[#allocation33_spill] sm:$0xff] }
 0x2bc   : > { %v3923_v51 = vpop.f32.mrf.mxu0  ;;  %v4007_v20 = vpop.f32.mrf.mxu1  ;;  %v2492_v31 = vsel %vm1124_vm3, %v5706_v5, 0.0  ;;  %v2590_v28 = vmul.f32 %v5706_v5, %v5706_v5  ;;  %vm6379_vm8 = vcmp.lt.s32.totalorder %v6378_v42, 300 }
 0x2bd   : > { %2680 = vadd.xlane.f32.xlu0 %v2679_v11  ;;  %2493 = vadd.xlane.f32.xlu1 %v2492_v31 }
 0x2be   : > { %v2116_v34 = vpop.f32.mrf.mxu0  ;;  %v2334_v17 = vpop.f32.mrf.mxu1  ;;  %v2682_v12 = vsel %vm1124_vm3, %v2590_v28, 0.0 }
 0x2bf   : > { %v5715_v46 = vsel %vm6373_vm5, %v2334_v17, %v2116_v34 }
 0x2c0   : > { %v3926_v48 = vpop.f32.mrf.mxu0  ;;  %v4010_v22 = vpop.f32.mrf.mxu1  ;;  %v2495_v35 = vsel %vm1124_vm3, %v5715_v46, 0.0  ;;  %v2591_v57 = vmul.f32 %v5715_v46, %v5715_v46 }
 0x2c1   : > { %2683 = vadd.xlane.f32.xlu1 %v2682_v12  ;;  %2496 = vadd.xlane.f32.xlu0 %v2495_v35 }
 0x2c2   : > { %v2119_v63 = vpop.f32.mrf.mxu0  ;;  %v2337_v44 = vpop.f32.mrf.mxu1  ;;  %v2685_v54 = vsel %vm1124_vm3, %v2591_v57, 0.0 }
 0x2c3   : > { %v5724_v55 = vsel %vm6375_vm6, %v2337_v44, %v2119_v63 }
 0x2c4   : > { %v3927_v14 = vpop.f32.mrf.mxu0  ;;  %v4011_v36 = vpop.f32.mrf.mxu1  ;;  %v2498_v2 = vsel %vm1124_vm3, %v5724_v55, 0.0  ;;  %v2592_v21 = vmul.f32 %v5724_v55, %v5724_v55 }
 0x2c5   : > { %2686 = vadd.xlane.f32.xlu0 %v2685_v54  ;;  %2499 = vadd.xlane.f32.xlu1 %v2498_v2  ;;  %v6382_v14 = vld [vmem:[#allocation35_spill] sm:$0xff] }
 0x2c6   : > { %v2124_v6 = vpop.f32.mrf.mxu0  ;;  %v2342_v13 = vpop.f32.mrf.mxu1  ;;  %v2688_v41 = vsel %vm1124_vm3, %v2592_v21, 0.0  ;;  %vm6383_vm10 = vcmp.lt.s32.totalorder %v6382_v14, 300 }
 0x2c7   : > { %v5733_v39 = vsel %vm6377_vm7, %v2342_v13, %v2124_v6 }
 0x2c8   : > { %v3930_v30 = vpop.f32.mrf.mxu0  ;;  %v4014_v29 = vpop.f32.mrf.mxu1  ;;  %v2501_v53 = vsel %vm1124_vm3, %v5733_v39, 0.0  ;;  %v2593_v26 = vmul.f32 %v5733_v39, %v5733_v39 }
 0x2c9   : > { %2689 = vadd.xlane.f32.xlu1 %v2688_v41  ;;  %2502 = vadd.xlane.f32.xlu0 %v2501_v53  ;;  %v6384_v29 = vld [vmem:[#allocation36_spill] sm:$0xff] }
 0x2ca   : > { %v2127_v61 = vpop.f32.mrf.mxu0  ;;  %v2345_v25 = vpop.f32.mrf.mxu1  ;;  %v2691_v11 = vsel %vm1124_vm3, %v2593_v26, 0.0  ;;  %vm6385_vm11 = vcmp.lt.s32.totalorder %v6384_v29, 300 }
 0x2cb   : > { %v5742_v60 = vsel %vm6379_vm8, %v2345_v25, %v2127_v61 }
 0x2cc   : > { %v3931_v51 = vpop.f32.mrf.mxu0  ;;  %v4015_v20 = vpop.f32.mrf.mxu1  ;;  %v2504_v31 = vsel %vm1124_vm3, %v5742_v60, 0.0  ;;  %v2594_v28 = vmul.f32 %v5742_v60, %v5742_v60 }
 0x2cd   : > { %2692 = vadd.xlane.f32.xlu0 %v2691_v11  ;;  %2505 = vadd.xlane.f32.xlu1 %v2504_v31 }
 0x2ce   : > { %v2132_v34 = vpop.f32.mrf.mxu0  ;;  %v2350_v17 = vpop.f32.mrf.mxu1  ;;  %v2694_v35 = vsel %vm1124_vm3, %v2594_v28, 0.0  ;;  %v6386_v28 = vld [vmem:[#allocation37_spill] sm:$0xff] }
 0x2cf   : > { %v5751_v48 = vsel %vm6381_vm9, %v2350_v17, %v2132_v34  ;;  %vm6387_vm12 = vcmp.lt.s32.totalorder %v6386_v28, 300 }
 0x2d0   : > { %v3934_v22 = vpop.f32.mrf.mxu0  ;;  %v4018_v12 = vpop.f32.mrf.mxu1  ;;  %v2507_v57 = vsel %vm1124_vm3, %v5751_v48, 0.0  ;;  %v2595_v63 = vmul.f32 %v5751_v48, %v5751_v48 }
 0x2d1   : > { %2695 = vadd.xlane.f32.xlu1 %v2694_v35  ;;  %2508 = vadd.xlane.f32.xlu0 %v2507_v57 }
 0x2d2   : > { %v2135_v44 = vpop.f32.mrf.mxu0  ;;  %v2353_v58 = vpop.f32.mrf.mxu1  ;;  %v2697_v21 = vsel %vm1124_vm3, %v2595_v63, 0.0 }
 0x2d3   : > { %v5760_v36 = vsel %vm6383_vm10, %v2353_v58, %v2135_v44 }
 0x2d4   : > { %v3935_v54 = vpop.f32.mrf.mxu0  ;;  %v4019_v2 = vpop.f32.mrf.mxu1  ;;  %v2510_v6 = vsel %vm1124_vm3, %v5760_v36, 0.0  ;;  %v2596_v13 = vmul.f32 %v5760_v36, %v5760_v36 }
 0x2d5   : > { %2698 = vadd.xlane.f32.xlu0 %v2697_v21  ;;  %2511 = vadd.xlane.f32.xlu1 %v2510_v6 }
 0x2d6   : > { %v2140_v59 = vpop.f32.mrf.mxu0  ;;  %v2358_v30 = vpop.f32.mrf.mxu1  ;;  %v2700_v61 = vsel %vm1124_vm3, %v2596_v13, 0.0 }
 0x2d7   : > { %v5769_v41 = vsel %vm6385_vm11, %v2358_v30, %v2140_v59 }
 0x2d8   : > { %v4022_v53 = vpop.f32.mrf.mxu1  ;;  %v2413_v26 = vpop.xlane.xlu0 %2412  ;;  %v2513_v25 = vsel %vm1124_vm3, %v5769_v41, 0.0  ;;  %v2597_v42 = vmul.f32 %v5769_v41, %v5769_v41 }
 0x2d9   : > { %v5776_v51 = vmul.f32 0.015625, %v2413_v26  ;;  %v3938_v20 = vpop.f32.mrf.mxu0  ;;  %2701 = vadd.xlane.f32.xlu1 %v2700_v61  ;;  %2514 = vadd.xlane.f32.xlu0 %v2513_v25 }
 0x2da   : > { %v2361_v11 = vpop.f32.mrf.mxu1  ;;  %v2703_v22 = vsel %vm1124_vm3, %v2597_v42, 0.0 }
 0x2db   : > { %v2143_v31 = vpop.f32.mrf.mxu0  ;;  %v2753_v12 = vmul.f32 %v5776_v51, %v5776_v51 }
 0x2dc   : > { %v5780_v34 = vsel %vm6387_vm12, %v2361_v11, %v2143_v31  ;;  %v4023_v17 = vpop.f32.mrf.mxu1  ;;  %v2603_v8 = vpop.xlane.xlu0 %2602 }
 0x2dd   : > { %v2715_v35 = vmul.f32 0.015625, %v2603_v8  ;;  %v2416_v57 = vpop.xlane.xlu1 %2415  ;;  %v3939_v63 = vpop.f32.mrf.mxu0  ;;  %2704 = vadd.xlane.f32.xlu0 %v2703_v22  ;;  %v2516_v44 = vsel %vm1124_vm3, %v5780_v34, 0.0  ;;  %v2598_v58 = vmul.f32 %v5780_v34, %v5780_v34 }
 0x2de   : > { %v5789_v14 = vmul.f32 0.015625, %v2416_v57  ;;  %2517 = vadd.xlane.f32.xlu1 %v2516_v44  ;;  %v2366_v54 = vpop.f32.mrf.mxu1 }
 0x2df   : > { %v2791_v2 = vsub.f32 %v2715_v35, %v2753_v12  ;;  %v2148_v21 = vpop.f32.mrf.mxu0  ;;  %v2706_v26 = vsel %vm1124_vm3, %v2598_v58, 0.0 }
 0x2e0   : > { %v5793_v13 = vsel %vm398_vm15, %v2366_v54, %v2148_v21  ;;  %v4026_v59 = vpop.f32.mrf.mxu1  ;;  %v2754_v42 = vmul.f32 %v5789_v14, %v5789_v14 }
 0x2e1   : > { %v2829_v30 = vmax.f32 %v2791_v2, 0.0  ;;  %v2606_v29 = vpop.xlane.xlu1 %2605  ;;  %v3942_v53 = vpop.f32.mrf.mxu0  ;;  %v2519_v61 = vsel %vm1124_vm3, %v5793_v13, 0.0  ;;  %v2599_v25 = vmul.f32 %v5793_v13, %v5793_v13 }
 0x2e2   : > { %v2716_v20 = vmul.f32 0.015625, %v2606_v29  ;;  %2707 = vadd.xlane.f32.xlu1 %v2706_v26  ;;  %2520 = vadd.xlane.f32.xlu0 %v2519_v61  ;;  %v2369_v11 = vpop.f32.mrf.mxu1  ;;  %v2419_v31 = vpop.xlane.xlu0 %2418 }
 0x2e3   : > { %v2905_v28 = vadd.f32 1e-05, %v2829_v30  ;;  %v5802_v17 = vmul.f32 0.015625, %v2419_v31  ;;  %v2151_v8 = vpop.f32.mrf.mxu0  ;;  %v2709_v44 = vsel %vm1124_vm3, %v2599_v25, 0.0 }
 0x2e4   : > { %v2792_v22 = vsub.f32 %v2716_v20, %v2754_v42  ;;  %v5806_v35 = vsel %vm399_vm1, %v2369_v11, %v2151_v8  ;;  %v4027_v57 = vpop.f32.mrf.mxu1 }
 0x2e5   : > { %4147 = vrsqrt.f32 %v2905_v28  ;;  %v3943_v63 = vpop.f32.mrf.mxu0  ;;  %v2522_v58 = vsel %vm1124_vm3, %v5806_v35, 0.0  ;;  %v2600_v6 = vmul.f32 %v5806_v35, %v5806_v35  ;;  %v2755_v59 = vmul.f32 %v5802_v17, %v5802_v17 }
 0x2e6   : > { %v2830_v54 = vmax.f32 %v2792_v22, 0.0  ;;  %2710 = vadd.xlane.f32.xlu0 %v2709_v44  ;;  %2523 = vadd.xlane.f32.xlu1 %v2522_v58  ;;  %v2609_v2 = vpop.xlane.xlu0 %2608  ;;  %v2422_v21 = vpop.xlane.xlu1 %2421 }
 0x2e7   : > { %v2717_v30 = vmul.f32 0.015625, %v2609_v2  ;;  %v5815_v29 = vmul.f32 0.015625, %v2422_v21  ;;  %v2712_v61 = vsel %vm1124_vm3, %v2600_v6, 0.0  ;;  %v2867_v2 = vsub.f32 %v5464_v23, %v5776_v51  ;;  %v5838_v23 = vld [vmem:[%s6220_s6] ss:$0 sm:$0xff] }
 0x2e8   : > { %v2906_v53 = vadd.f32 1e-05, %v2830_v54  ;;  %vm3299_vm3 = vcmask 519168  }
 0x2e9   : > { %v2793_v26 = vsub.f32 %v2717_v30, %v2755_v59  ;;  %v2756_v11 = vmul.f32 %v5815_v29, %v5815_v29  ;;  %v5831_v30 = vld [vmem:[%s6219_s5] ss:$0 sm:$0xff] }
 0x2ea   : > { %4149 = vrsqrt.f32 %v2906_v53  ;;  %2713 = vadd.xlane.f32.xlu1 %v2712_v61  ;;  %v2612_v25 = vpop.xlane.xlu1 %2611  ;;  %v2425_v42 = vpop.xlane.xlu0 %2424 }
 0x2eb   : > { %v2831_v20 = vmax.f32 %v2793_v26, 0.0  ;;  %v2718_v31 = vmul.f32 0.015625, %v2612_v25  ;;  %v5820_v28 = vmul.f32 0.015625, %v2425_v42 }
 0x2ed   : > { %v2907_v8 = vadd.f32 1e-05, %v2831_v20  ;;  %v2794_v22 = vsub.f32 %v2718_v31, %v2756_v11  ;;  %v2757_v12 = vmul.f32 %v5820_v28, %v5820_v28 }
 0x2ee   : > { %v2615_v57 = vpop.xlane.xlu0 %2614  ;;  %v2428_v63 = vpop.xlane.xlu1 %2427 }
 0x2ef   : > { %4151 = vrsqrt.f32 %v2907_v8  ;;  %v2832_v44 = vmax.f32 %v2794_v22, 0.0  ;;  %v2719_v58 = vmul.f32 0.015625, %v2615_v57  ;;  %v5824_v54 = vmul.f32 0.015625, %v2428_v63 }
 0x2f0   : > { %v2868_v22 = vsub.f32 %v5472_v52, %v5789_v14  ;;  %v2869_v14 = vsub.f32 %v5482_v47, %v5802_v17  ;;  %v2870_v17 = vsub.f32 %v5490_v56, %v5815_v29  ;;  %v2871_v56 = vsub.f32 %v5499_v33, %v5820_v28 }
 0x2f1   : > { %v2908_v21 = vadd.f32 1e-05, %v2832_v44  ;;  %v2795_v6 = vsub.f32 %v2719_v58, %v2757_v12  ;;  %v2758_v53 = vmul.f32 %v5824_v54, %v5824_v54  ;;  %v2872_v28 = vsub.f32 %v5508_v62, %v5824_v54 }
 0x2f2   : > { %v4148_v59 = vpop.eup %4147  ;;  %v2618_v26 = vpop.xlane.xlu1 %2617 }
 0x2f3   : > { %v2431_v61 = vpop.xlane.xlu0 %2430  ;;  %v2981_v25 = vmul.f32 %v4148_v59, %v2867_v2  ;;  %4153 = vrsqrt.f32 %v2908_v21  ;;  %v2833_v42 = vmax.f32 %v2795_v6, 0.0  ;;  %v2720_v20 = vmul.f32 0.015625, %v2618_v26 }
 0x2f4   : > { %v5840_v51 = vmul.f32 0.015625, %v2431_v61 }
 0x2f5   : > { %v3026_v11 = vmul.f32 %v5831_v30, %v2981_v25  ;;  %v2909_v31 = vadd.f32 1e-05, %v2833_v42  ;;  %v2796_v8 = vsub.f32 %v2720_v20, %v2758_v53 }
 0x2f6   : > { %v2759_v12 = vmul.f32 %v5840_v51, %v5840_v51  ;;  %v2434_v63 = vpop.xlane.xlu1 %2433 }
 0x2f7   : > { %v2621_v57 = vpop.xlane.xlu0 %2620  ;;  %v4150_v44 = vpop.eup %4149  ;;  %v3071_v58 = vadd.f32 %v5838_v23, %v3026_v11  ;;  %4155 = vrsqrt.f32 %v2909_v31  ;;  %v2834_v2 = vmax.f32 %v2796_v8, 0.0  ;;  %v5848_v59 = vmul.f32 0.015625, %v2434_v63 }
 0x2f8   : > { %v2721_v21 = vmul.f32 0.015625, %v2621_v57  ;;  %v2982_v6 = vmul.f32 %v4150_v44, %v2868_v22 }
 0x2f9   : > { %v3109_v26 = vmax.f32 %v3071_v58, 0.0  ;;  %v2910_v61 = vadd.f32 1e-05, %v2834_v2  ;;  %v2760_v25 = vmul.f32 %v5848_v59, %v5848_v59 }
 0x2fa   : > { %v2797_v53 = vsub.f32 %v2721_v21, %v2759_v12  ;;  %v3027_v52 = vmul.f32 %v5831_v30, %v2982_v6  ;;  %v2624_v42 = vpop.xlane.xlu1 %2623 }
 0x2fb   : > { %v2437_v20 = vpop.xlane.xlu0 %2436  ;;  %v3568_v11 = vpack.c.bf16 %v3109_v26, %v3109_v26  ;;  %4157 = vrsqrt.f32 %v2910_v61  ;;  %v2722_v8 = vmul.f32 0.015625, %v2624_v42 }
 0x2fc   : > { %v2835_v31 = vmax.f32 %v2797_v53, 0.0  ;;  %v4152_v22 = vpop.eup %4151  ;;  %v3072_v12 = vadd.f32 %v5838_v23, %v3027_v52  ;;  %v5863_v57 = vmul.f32 0.015625, %v2437_v20 }
 0x2fd   : > { %3300 = vst.msk [vmem:[%s5855_s11] sm:$0xf] %vm3299_vm3, %v3568_v11  ;;  %v2983_v63 = vmul.f32 %v4152_v22, %v2869_v14  ;;  %v2798_v58 = vsub.f32 %v2722_v8, %v2760_v25 }
 0x2fe   : > { %v2911_v44 = vadd.f32 1e-05, %v2835_v31  ;;  %v3110_v47 = vmax.f32 %v3072_v12, 0.0  ;;  %v2761_v2 = vmul.f32 %v5863_v57, %v5863_v57  ;;  %v2440_v6 = vpop.xlane.xlu1 %2439 }
 0x2ff   : > { %v2627_v21 = vpop.xlane.xlu0 %2626  ;;  %v3028_v26 = vmul.f32 %v5831_v30, %v2983_v63  ;;  %v2836_v61 = vmax.f32 %v2798_v58, 0.0  ;;  %v5872_v14 = vmul.f32 0.015625, %v2440_v6 }
 0x300   : > { %4159 = vrsqrt.f32 %v2911_v44  ;;  %v2723_v53 = vmul.f32 0.015625, %v2627_v21  ;;  %v4154_v52 = vpop.eup %4153  ;;  %v3569_v42 = vpack.c.bf16 %v3110_v47, %v3110_v47 }
 0x301   : > { %v3073_v25 = vadd.f32 %v5838_v23, %v3028_v26  ;;  %v2984_v20 = vmul.f32 %v4154_v52, %v2870_v17  ;;  %v2912_v11 = vadd.f32 1e-05, %v2836_v61  ;;  %v2762_v58 = vmul.f32 %v5872_v14, %v5872_v14 }
 0x302   : > { %v2799_v31 = vsub.f32 %v2723_v53, %v2761_v2  ;;  %3301 = vst.msk [vmem:[%s5855_s11 + $0x4] sm:$0xf] %vm3299_vm3, %v3569_v42  ;;  %v2630_v29 = vpop.xlane.xlu1 %2629 }
 0x303   : > { %v2443_v8 = vpop.xlane.xlu0 %2442  ;;  %v3111_v22 = vmax.f32 %v3073_v25, 0.0  ;;  %v3029_v12 = vmul.f32 %v5831_v30, %v2984_v20  ;;  %4161 = vrsqrt.f32 %v2912_v11  ;;  %v2724_v47 = vmul.f32 0.015625, %v2630_v29 }
 0x304   : > { %v2837_v63 = vmax.f32 %v2799_v31, 0.0  ;;  %v4156_v44 = vpop.eup %4155  ;;  %v5882_v17 = vmul.f32 0.015625, %v2443_v8 }
 0x305   : > { %v3570_v2 = vpack.c.bf16 %v3111_v22, %v3111_v22  ;;  %v3074_v21 = vadd.f32 %v5838_v23, %v3029_v12  ;;  %v2985_v6 = vmul.f32 %v4156_v44, %v2871_v56  ;;  %v2800_v26 = vsub.f32 %v2724_v47, %v2762_v58 }
 0x306   : > { %v2913_v33 = vadd.f32 1e-05, %v2837_v63  ;;  %v2763_v61 = vmul.f32 %v5882_v17, %v5882_v17  ;;  %v2446_v52 = vpop.xlane.xlu1 %2445  ;;  %v2873_v22 = vsub.f32 %v5517_v4, %v5840_v51 }
 0x307   : > { %v2633_v53 = vpop.xlane.xlu0 %2632  ;;  %3302 = vst.msk [vmem:[%s5855_s11 + $0x8] sm:$0xf] %vm3299_vm3, %v3570_v2  ;;  %v3112_v42 = vmax.f32 %v3074_v21, 0.0  ;;  %v3030_v25 = vmul.f32 %v5831_v30, %v2985_v6  ;;  %v2838_v31 = vmax.f32 %v2800_v26, 0.0  ;;  %v5892_v56 = vmul.f32 0.015625, %v2446_v52 }
 0x308   : > { %4163 = vrsqrt.f32 %v2913_v33  ;;  %v2725_v20 = vmul.f32 0.015625, %v2633_v53  ;;  %v4158_v11 = vpop.eup %4157  ;;  %v2874_v53 = vsub.f32 %v5526_v32, %v5848_v59 }
 0x309   : > { %v3571_v29 = vpack.c.bf16 %v3112_v42, %v3112_v42  ;;  %v3075_v62 = vadd.f32 %v5838_v23, %v3030_v25  ;;  %v2986_v54 = vmul.f32 %v4158_v11, %v2872_v28  ;;  %v2914_v12 = vadd.f32 1e-05, %v2838_v31 }
 0x30a   : > { %v2801_v8 = vsub.f32 %v2725_v20, %v2763_v61  ;;  %v2636_v63 = vpop.xlane.xlu1 %2635  ;;  %v2764_v33 = vmul.f32 %v5892_v56, %v5892_v56 }
 0x30b   : > { %v2449_v44 = vpop.xlane.xlu0 %2448  ;;  %3303 = vst.msk [vmem:[%s5855_s11 + $0xc] sm:$0xf] %vm3299_vm3, %v3571_v29  ;;  %v3113_v58 = vmax.f32 %v3075_v62, 0.0  ;;  %v3031_v47 = vmul.f32 %v5831_v30, %v2986_v54  ;;  %v2726_v21 = vmul.f32 0.015625, %v2636_v63  ;;  %4165 = vrsqrt.f32 %v2914_v12 }
 0x30c   : > { %v2839_v2 = vmax.f32 %v2801_v8, 0.0  ;;  %v5902_v28 = vmul.f32 0.015625, %v2449_v44  ;;  %v2875_v63 = vsub.f32 %v5535_v37, %v5863_v57 }
 0x30d   : > { %v4160_v6 = vpop.eup %4159  ;;  %v3572_v26 = vpack.c.bf16 %v3113_v58, %v3113_v58  ;;  %v3076_v4 = vadd.f32 %v5838_v23, %v3031_v47  ;;  %v2802_v52 = vsub.f32 %v2726_v21, %v2764_v33 }
 0x30e   : > { %v2987_v51 = vmul.f32 %v4160_v6, %v2873_v22  ;;  %v2915_v61 = vadd.f32 1e-05, %v2839_v2  ;;  %v2765_v42 = vmul.f32 %v5902_v28, %v5902_v28  ;;  %v2452_v20 = vpop.xlane.xlu1 %2451 }
 0x30f   : > { %v2639_v25 = vpop.xlane.xlu0 %2638  ;;  %3304 = vst.msk [vmem:[%s5855_s11 + $0x10] sm:$0xf] %vm3299_vm3, %v3572_v26  ;;  %v3114_v11 = vmax.f32 %v3076_v4, 0.0  ;;  %v2840_v54 = vmax.f32 %v2802_v52, 0.0  ;;  %v5912_v8 = vmul.f32 0.015625, %v2452_v20 }
 0x310   : > { %v3032_v31 = vmul.f32 %v5831_v30, %v2987_v51  ;;  %4167 = vrsqrt.f32 %v2915_v61  ;;  %v2727_v29 = vmul.f32 0.015625, %v2639_v25  ;;  %v4162_v62 = vpop.eup %4161 }
 0x311   : > { %v3573_v22 = vpack.c.bf16 %v3114_v11, %v3114_v11  ;;  %v2988_v59 = vmul.f32 %v4162_v62, %v2874_v53  ;;  %v2916_v44 = vadd.f32 1e-05, %v2840_v54  ;;  %v2766_v4 = vmul.f32 %v5912_v8, %v5912_v8 }
 0x312   : > { %v3077_v32 = vadd.f32 %v5838_v23, %v3032_v31  ;;  %v2803_v12 = vsub.f32 %v2727_v29, %v2765_v42  ;;  %v2642_v58 = vpop.xlane.xlu1 %2641  ;;  %v2876_v62 = vsub.f32 %v5544_v24, %v5872_v14 }
 0x313   : > { %v2455_v47 = vpop.xlane.xlu0 %2454  ;;  %3305 = vst.msk [vmem:[%s5855_s11 + $0x14] sm:$0xf] %vm3299_vm3, %v3573_v22  ;;  %v3033_v21 = vmul.f32 %v5831_v30, %v2988_v59  ;;  %v2728_v33 = vmul.f32 0.015625, %v2642_v58  ;;  %4169 = vrsqrt.f32 %v2916_v44  ;;  %v2877_v58 = vsub.f32 %v5553_v16, %v5882_v17 }
 0x314   : > { %v3115_v2 = vmax.f32 %v3077_v32, 0.0  ;;  %v2841_v6 = vmax.f32 %v2803_v12, 0.0  ;;  %v5922_v51 = vmul.f32 0.015625, %v2455_v47 }
 0x315   : > { %v4164_v26 = vpop.eup %4163  ;;  %v3078_v37 = vadd.f32 %v5838_v23, %v3033_v21  ;;  %v2804_v52 = vsub.f32 %v2728_v33, %v2766_v4 }
 0x316   : > { %v3574_v61 = vpack.c.bf16 %v3115_v2, %v3115_v2  ;;  %v2989_v57 = vmul.f32 %v4164_v26, %v2875_v63  ;;  %v2917_v53 = vadd.f32 1e-05, %v2841_v6  ;;  %v2767_v42 = vmul.f32 %v5922_v51, %v5922_v51  ;;  %v2458_v20 = vpop.xlane.xlu1 %2457 }
 0x317   : > { %v2645_v25 = vpop.xlane.xlu0 %2644  ;;  %v3116_v11 = vmax.f32 %v3078_v37, 0.0  ;;  %v2842_v54 = vmax.f32 %v2804_v52, 0.0  ;;  %v5932_v22 = vmul.f32 0.015625, %v2458_v20 }
 0x318   : > { %3306 = vst.msk [vmem:[%s5855_s11 + $0x18] sm:$0xf] %vm3299_vm3, %v3574_v61  ;;  %v3034_v31 = vmul.f32 %v5831_v30, %v2989_v57  ;;  %4171 = vrsqrt.f32 %v2917_v53  ;;  %v2729_v29 = vmul.f32 0.015625, %v2645_v25  ;;  %v4166_v32 = vpop.eup %4165 }
 0x319   : > { %v3575_v59 = vpack.c.bf16 %v3116_v11, %v3116_v11  ;;  %v2990_v44 = vmul.f32 %v4166_v32, %v2876_v62  ;;  %v2918_v47 = vadd.f32 1e-05, %v2842_v54  ;;  %v2768_v2 = vmul.f32 %v5932_v22, %v5932_v22 }
 0x31a   : > { %v3079_v12 = vadd.f32 %v5838_v23, %v3034_v31  ;;  %v2805_v63 = vsub.f32 %v2729_v29, %v2767_v42  ;;  %v2648_v21 = vpop.xlane.xlu1 %2647  ;;  %v2878_v62 = vsub.f32 %v5562_v45, %v5892_v56 }
 0x31b   : > { %v2461_v6 = vpop.xlane.xlu0 %2460  ;;  %3307 = vst.msk [vmem:[%s5855_s11 + $0x1c] sm:$0xf] %vm3299_vm3, %v3575_v59  ;;  %v2730_v33 = vmul.f32 0.015625, %v2648_v21  ;;  %v3035_v61 = vmul.f32 %v5831_v30, %v2990_v44  ;;  %4173 = vrsqrt.f32 %v2918_v47  ;;  %v2879_v47 = vsub.f32 %v5571_v10, %v5902_v28 }
 0x31c   : > { %v3117_v24 = vmax.f32 %v3079_v12, 0.0  ;;  %v2843_v14 = vmax.f32 %v2805_v63, 0.0  ;;  %v5941_v26 = vmul.f32 0.015625, %v2461_v6 }
 0x31d   : > { %v4168_v4 = vpop.eup %4167  ;;  %v2806_v57 = vsub.f32 %v2730_v33, %v2768_v2  ;;  %v3080_v53 = vadd.f32 %v5838_v23, %v3035_v61 }
 0x31e   : > { %v3576_v37 = vpack.c.bf16 %v3117_v24, %v3117_v24  ;;  %v2991_v16 = vmul.f32 %v4168_v4, %v2877_v58  ;;  %v2919_v17 = vadd.f32 1e-05, %v2843_v14  ;;  %v2769_v52 = vmul.f32 %v5941_v26, %v5941_v26  ;;  %v2464_v25 = vpop.xlane.xlu1 %2463 }
 0x31f   : > { %v2651_v42 = vpop.xlane.xlu0 %2650  ;;  %v2844_v11 = vmax.f32 %v2806_v57, 0.0  ;;  %v3118_v29 = vmax.f32 %v3080_v53, 0.0  ;;  %v5952_v54 = vmul.f32 0.015625, %v2464_v25 }
 0x320   : > { %3308 = vst.msk [vmem:[%s5855_s11 + $0x20] sm:$0xf] %vm3299_vm3, %v3576_v37  ;;  %v3036_v20 = vmul.f32 %v5831_v30, %v2991_v16  ;;  %4175 = vrsqrt.f32 %v2919_v17  ;;  %v2731_v31 = vmul.f32 0.015625, %v2651_v42  ;;  %v4170_v32 = vpop.eup %4169 }
 0x321   : > { %v2920_v12 = vadd.f32 1e-05, %v2844_v11  ;;  %v3577_v44 = vpack.c.bf16 %v3118_v29, %v3118_v29  ;;  %v2992_v58 = vmul.f32 %v4170_v32, %v2878_v62  ;;  %v2770_v2 = vmul.f32 %v5952_v54, %v5952_v54 }
 0x322   : > { %v3081_v59 = vadd.f32 %v5838_v23, %v3036_v20  ;;  %v2807_v63 = vsub.f32 %v2731_v31, %v2769_v52  ;;  %v2654_v21 = vpop.xlane.xlu1 %2653  ;;  %v2880_v11 = vsub.f32 %v5580_v50, %v5912_v8 }
 0x323   : > { %v2467_v6 = vpop.xlane.xlu0 %2466  ;;  %4177 = vrsqrt.f32 %v2920_v12  ;;  %v2732_v56 = vmul.f32 0.015625, %v2654_v21  ;;  %3309 = vst.msk [vmem:[%s5855_s11 + $0x24] sm:$0xf] %vm3299_vm3, %v3577_v44  ;;  %v3037_v33 = vmul.f32 %v5831_v30, %v2992_v58  ;;  %v2881_v44 = vsub.f32 %v5589_v18, %v5922_v51 }
 0x324   : > { %v3119_v24 = vmax.f32 %v3081_v59, 0.0  ;;  %v2845_v45 = vmax.f32 %v2807_v63, 0.0  ;;  %v5962_v4 = vmul.f32 0.015625, %v2467_v6 }
 0x325   : > { %v4172_v14 = vpop.eup %4171  ;;  %v2808_v28 = vsub.f32 %v2732_v56, %v2770_v2  ;;  %v3082_v16 = vadd.f32 %v5838_v23, %v3037_v33 }
 0x326   : > { %v3578_v61 = vpack.c.bf16 %v3119_v24, %v3119_v24  ;;  %v2993_v37 = vmul.f32 %v4172_v14, %v2879_v47  ;;  %v2921_v10 = vadd.f32 1e-05, %v2845_v45  ;;  %v2771_v17 = vmul.f32 %v5962_v4, %v5962_v4  ;;  %v2470_v53 = vpop.xlane.xlu1 %2469 }
 0x327   : > { %v2657_v57 = vpop.xlane.xlu0 %2656  ;;  %v2846_v42 = vmax.f32 %v2808_v28, 0.0  ;;  %v3120_v20 = vmax.f32 %v3082_v16, 0.0  ;;  %v5972_v31 = vmul.f32 0.015625, %v2470_v53 }
 0x328   : > { %3310 = vst.msk [vmem:[%s5855_s11 + $0x28] sm:$0xf] %vm3299_vm3, %v3578_v61  ;;  %v3038_v52 = vmul.f32 %v5831_v30, %v2993_v37  ;;  %4179 = vrsqrt.f32 %v2921_v10  ;;  %v2733_v25 = vmul.f32 0.015625, %v2657_v57  ;;  %v4174_v29 = vpop.eup %4173  ;;  %v2882_v61 = vsub.f32 %v5598_v0, %v5932_v22 }
 0x329   : > { %v2922_v32 = vadd.f32 1e-05, %v2846_v42  ;;  %v3579_v12 = vpack.c.bf16 %v3120_v20, %v3120_v20  ;;  %v2994_v63 = vmul.f32 %v4174_v29, %v2880_v11  ;;  %v2772_v58 = vmul.f32 %v5972_v31, %v5972_v31 }
 0x32a   : > { %v3083_v62 = vadd.f32 %v5838_v23, %v3038_v52  ;;  %v2809_v59 = vsub.f32 %v2733_v25, %v2771_v17  ;;  %v2660_v47 = vpop.xlane.xlu1 %2659  ;;  %v2883_v29 = vsub.f32 %v5607_v15, %v5941_v26 }
 0x32b   : > { %v2473_v2 = vpop.xlane.xlu0 %2472  ;;  %4181 = vrsqrt.f32 %v2922_v32  ;;  %v2734_v8 = vmul.f32 0.015625, %v2660_v47  ;;  %3311 = vst.msk [vmem:[%s5855_s11 + $0x2c] sm:$0xf] %vm3299_vm3, %v3579_v12  ;;  %v3039_v24 = vmul.f32 %v5831_v30, %v2994_v63 }
 0x32c   : > { %v3121_v21 = vmax.f32 %v3083_v62, 0.0  ;;  %v2847_v50 = vmax.f32 %v2809_v59, 0.0  ;;  %v5982_v45 = vmul.f32 0.015625, %v2473_v2 }
 0x32d   : > { %v4176_v6 = vpop.eup %4175  ;;  %v2810_v51 = vsub.f32 %v2734_v8, %v2772_v58  ;;  %v3084_v33 = vadd.f32 %v5838_v23, %v3039_v24  ;;  %v2884_v8 = vsub.f32 %v5616_v3, %v5952_v54 }
 0x32e   : > { %v3580_v56 = vpack.c.bf16 %v3121_v21, %v3121_v21  ;;  %v2995_v14 = vmul.f32 %v4176_v6, %v2881_v44  ;;  %v2923_v18 = vadd.f32 1e-05, %v2847_v50  ;;  %v2773_v37 = vmul.f32 %v5982_v45, %v5982_v45  ;;  %v2476_v28 = vpop.xlane.xlu1 %2475 }
 0x32f   : > { %v2663_v10 = vpop.xlane.xlu0 %2662  ;;  %v2848_v17 = vmax.f32 %v2810_v51, 0.0  ;;  %v3122_v52 = vmax.f32 %v3084_v33, 0.0  ;;  %v5992_v42 = vmul.f32 0.015625, %v2476_v28 }
 0x330   : > { %3312 = vst.msk [vmem:[%s5855_s11 + $0x30] sm:$0xf] %vm3299_vm3, %v3580_v56  ;;  %v3040_v16 = vmul.f32 %v5831_v30, %v2995_v14  ;;  %4183 = vrsqrt.f32 %v2923_v18  ;;  %v2735_v57 = vmul.f32 0.015625, %v2663_v10  ;;  %v4178_v53 = vpop.eup %4177 }
 0x331   : > { %v2996_v0 = vmul.f32 %v4178_v53, %v2882_v61  ;;  %v2924_v22 = vadd.f32 1e-05, %v2848_v17  ;;  %v3581_v11 = vpack.c.bf16 %v3122_v52, %v3122_v52  ;;  %v2774_v58 = vmul.f32 %v5992_v42, %v5992_v42 }
 0x332   : > { %v3085_v25 = vadd.f32 %v5838_v23, %v3040_v16  ;;  %v2811_v20 = vsub.f32 %v2735_v57, %v2773_v37  ;;  %v2666_v62 = vpop.xlane.xlu1 %2665  ;;  %v2885_v17 = vsub.f32 %v5625_v1, %v5962_v4 }
 0x333   : > { %v2479_v32 = vpop.xlane.xlu0 %2478  ;;  %v3041_v12 = vmul.f32 %v5831_v30, %v2996_v0  ;;  %4185 = vrsqrt.f32 %v2924_v22  ;;  %3313 = vst.msk [vmem:[%s5855_s11 + $0x34] sm:$0xf] %vm3299_vm3, %v3581_v11  ;;  %v2736_v47 = vmul.f32 0.015625, %v2666_v62 }
 0x334   : > { %v3123_v59 = vmax.f32 %v3085_v25, 0.0  ;;  %v2849_v63 = vmax.f32 %v2811_v20, 0.0  ;;  %v6002_v2 = vmul.f32 0.015625, %v2479_v32 }
 0x335   : > { %v4180_v44 = vpop.eup %4179  ;;  %v3086_v15 = vadd.f32 %v5838_v23, %v3041_v12  ;;  %v2812_v6 = vsub.f32 %v2736_v47, %v2774_v58  ;;  %v2886_v12 = vsub.f32 %v5634_v43, %v5972_v31 }
 0x336   : > { %v3582_v21 = vpack.c.bf16 %v3123_v59, %v3123_v59  ;;  %v2997_v26 = vmul.f32 %v4180_v44, %v2883_v29  ;;  %v2925_v50 = vadd.f32 1e-05, %v2849_v63  ;;  %v2775_v24 = vmul.f32 %v6002_v2, %v6002_v2  ;;  %v2482_v14 = vpop.xlane.xlu1 %2481 }
 0x337   : > { %v2669_v56 = vpop.xlane.xlu0 %2668  ;;  %v3124_v18 = vmax.f32 %v3086_v15, 0.0  ;;  %v2850_v37 = vmax.f32 %v2812_v6, 0.0  ;;  %v6012_v10 = vmul.f32 0.015625, %v2482_v14  ;;  %v2887_v14 = vsub.f32 %v5643_v9, %v5982_v45 }
 0x338   : > { %3314 = vst.msk [vmem:[%s5855_s11 + $0x38] sm:$0xf] %vm3299_vm3, %v3582_v21  ;;  %v3042_v51 = vmul.f32 %v5831_v30, %v2997_v26  ;;  %4187 = vrsqrt.f32 %v2925_v50  ;;  %v2737_v33 = vmul.f32 0.015625, %v2669_v56  ;;  %v4182_v61 = vpop.eup %4181 }
 0x339   : > { %v3583_v28 = vpack.c.bf16 %v3124_v18, %v3124_v18  ;;  %v2998_v54 = vmul.f32 %v4182_v61, %v2884_v8  ;;  %v2926_v57 = vadd.f32 1e-05, %v2850_v37  ;;  %v2776_v29 = vmul.f32 %v6012_v10, %v6012_v10 }
 0x33a   : > { %v3087_v3 = vadd.f32 %v5838_v23, %v3042_v51  ;;  %v2813_v16 = vsub.f32 %v2737_v33, %v2775_v24  ;;  %v2672_v53 = vpop.xlane.xlu1 %2671 }
 0x33b   : > { %v2485_v52 = vpop.xlane.xlu0 %2484  ;;  %3315 = vst.msk [vmem:[%s5855_s11 + $0x3c] sm:$0xf] %vm3299_vm3, %v3583_v28  ;;  %v3043_v0 = vmul.f32 %v5831_v30, %v2998_v54  ;;  %v2738_v20 = vmul.f32 0.015625, %v2672_v53  ;;  %4189 = vrsqrt.f32 %v2926_v57 }
 0x33c   : > { %v3125_v25 = vmax.f32 %v3087_v3, 0.0  ;;  %v2851_v22 = vmax.f32 %v2813_v16, 0.0  ;;  %v6022_v62 = vmul.f32 0.015625, %v2485_v52 }
 0x33d   : > { %v4184_v11 = vpop.eup %4183  ;;  %v3088_v1 = vadd.f32 %v5838_v23, %v3043_v0  ;;  %v2814_v63 = vsub.f32 %v2738_v20, %v2776_v29 }
 0x33e   : > { %v3584_v32 = vpack.c.bf16 %v3125_v25, %v3125_v25  ;;  %v2999_v4 = vmul.f32 %v4184_v11, %v2885_v17  ;;  %v2927_v59 = vadd.f32 1e-05, %v2851_v22  ;;  %v2777_v44 = vmul.f32 %v6022_v62, %v6022_v62  ;;  %v2488_v47 = vpop.xlane.xlu1 %2487 }
 0x33f   : > { %v2675_v58 = vpop.xlane.xlu0 %2674  ;;  %v3126_v21 = vmax.f32 %v3088_v1, 0.0  ;;  %v2852_v8 = vmax.f32 %v2814_v63, 0.0  ;;  %v6032_v6 = vmul.f32 0.015625, %v2488_v47  ;;  %v2889_v47 = vsub.f32 %v5661_v40, %v6002_v2 }
 0x340   : > { %3316 = vst.msk [vmem:[%s5855_s11 + $0x40] sm:$0xf] %vm3299_vm3, %v3584_v32  ;;  %v3044_v15 = vmul.f32 %v5831_v30, %v2999_v4  ;;  %4191 = vrsqrt.f32 %v2927_v59  ;;  %v2739_v26 = vmul.f32 0.015625, %v2675_v58  ;;  %v4186_v50 = vpop.eup %4185  ;;  %v2888_v32 = vsub.f32 %v5652_v7, %v5992_v42 }
 0x341   : > { %v3585_v24 = vpack.c.bf16 %v3126_v21, %v3126_v21  ;;  %v3000_v31 = vmul.f32 %v4186_v50, %v2886_v12  ;;  %v2928_v18 = vadd.f32 1e-05, %v2852_v8  ;;  %v2778_v16 = vmul.f32 %v6032_v6, %v6032_v6 }
 0x342   : > { %v3089_v43 = vadd.f32 %v5838_v23, %v3044_v15  ;;  %v2815_v56 = vsub.f32 %v2739_v26, %v2777_v44  ;;  %v2678_v51 = vpop.xlane.xlu1 %2677 }
 0x343   : > { %v2491_v33 = vpop.xlane.xlu0 %2490  ;;  %3317 = vst.msk [vmem:[%s5855_s11 + $0x44] sm:$0xf] %vm3299_vm3, %v3585_v24  ;;  %v3045_v37 = vmul.f32 %v5831_v30, %v3000_v31  ;;  %v2740_v3 = vmul.f32 0.015625, %v2678_v51  ;;  %4193 = vrsqrt.f32 %v2928_v18 }
 0x344   : > { %v3127_v61 = vmax.f32 %v3089_v43, 0.0  ;;  %v2853_v28 = vmax.f32 %v2815_v56, 0.0  ;;  %v6042_v17 = vmul.f32 0.015625, %v2491_v33 }
 0x345   : > { %v4188_v54 = vpop.eup %4187  ;;  %v3090_v9 = vadd.f32 %v5838_v23, %v3045_v37  ;;  %v2816_v52 = vsub.f32 %v2740_v3, %v2778_v16  ;;  %v2890_v16 = vsub.f32 %v5670_v49, %v6012_v10 }
 0x346   : > { %v3586_v57 = vpack.c.bf16 %v3127_v61, %v3127_v61  ;;  %v3001_v45 = vmul.f32 %v4188_v54, %v2887_v14  ;;  %v2929_v53 = vadd.f32 1e-05, %v2853_v28  ;;  %v2779_v25 = vmul.f32 %v6042_v17, %v6042_v17  ;;  %v2494_v22 = vpop.xlane.xlu1 %2493 }
 0x347   : > { %v2681_v0 = vpop.xlane.xlu0 %2680  ;;  %v3128_v20 = vmax.f32 %v3090_v9, 0.0  ;;  %v2854_v1 = vmax.f32 %v2816_v52, 0.0  ;;  %v6052_v4 = vmul.f32 0.015625, %v2494_v22  ;;  %v2891_v22 = vsub.f32 %v5679_v38, %v6022_v62 }
 0x348   : > { %3318 = vst.msk [vmem:[%s5855_s11 + $0x48] sm:$0xf] %vm3299_vm3, %v3586_v57  ;;  %v3046_v11 = vmul.f32 %v5831_v30, %v3001_v45  ;;  %4195 = vrsqrt.f32 %v2929_v53  ;;  %v2741_v29 = vmul.f32 0.015625, %v2681_v0  ;;  %v4190_v59 = vpop.eup %4189 }
 0x349   : > { %v3587_v12 = vpack.c.bf16 %v3128_v20, %v3128_v20  ;;  %v3002_v58 = vmul.f32 %v4190_v59, %v2888_v32  ;;  %v2930_v21 = vadd.f32 1e-05, %v2854_v1  ;;  %v2780_v15 = vmul.f32 %v6052_v4, %v6052_v4 }
 0x34a   : > { %v3091_v63 = vadd.f32 %v5838_v23, %v3046_v11  ;;  %v2817_v44 = vsub.f32 %v2741_v29, %v2779_v25  ;;  %v2684_v26 = vpop.xlane.xlu1 %2683 }
 0x34b   : > { %v2497_v50 = vpop.xlane.xlu0 %2496  ;;  %3319 = vst.msk [vmem:[%s5855_s11 + $0x4c] sm:$0xf] %vm3299_vm3, %v3587_v12  ;;  %v2742_v8 = vmul.f32 0.015625, %v2684_v26  ;;  %v3047_v31 = vmul.f32 %v5831_v30, %v3002_v58  ;;  %4197 = vrsqrt.f32 %v2930_v21 }
 0x34c   : > { %v3129_v7 = vmax.f32 %v3091_v63, 0.0  ;;  %v2855_v42 = vmax.f32 %v2817_v44, 0.0  ;;  %v6061_v24 = vmul.f32 0.015625, %v2497_v50 }
 0x34d   : > { %v4192_v43 = vpop.eup %4191  ;;  %v2818_v14 = vsub.f32 %v2742_v8, %v2780_v15  ;;  %v3092_v18 = vadd.f32 %v5838_v23, %v3047_v31  ;;  %v2892_v8 = vsub.f32 %v5688_v27, %v6032_v6 }
 0x34e   : > { %v3588_v56 = vpack.c.bf16 %v3129_v7, %v3129_v7  ;;  %v3003_v40 = vmul.f32 %v4192_v43, %v2889_v47  ;;  %v2931_v2 = vadd.f32 1e-05, %v2855_v42  ;;  %v2781_v51 = vmul.f32 %v6061_v24, %v6061_v24  ;;  %v2500_v61 = vpop.xlane.xlu1 %2499 }
 0x34f   : > { %v2687_v33 = vpop.xlane.xlu0 %2686  ;;  %v2856_v28 = vmax.f32 %v2818_v14, 0.0  ;;  %v3130_v54 = vmax.f32 %v3092_v18, 0.0  ;;  %v6072_v57 = vmul.f32 0.015625, %v2500_v61 }
 0x350   : > { %3320 = vst.msk [vmem:[%s5855_s11 + $0x50] sm:$0xf] %vm3299_vm3, %v3588_v56  ;;  %v3048_v37 = vmul.f32 %v5831_v30, %v3003_v40  ;;  %4199 = vrsqrt.f32 %v2931_v2  ;;  %v2743_v3 = vmul.f32 0.015625, %v2687_v33  ;;  %v4194_v9 = vpop.eup %4193 }
 0x351   : > { %v2932_v53 = vadd.f32 1e-05, %v2856_v28  ;;  %v3589_v25 = vpack.c.bf16 %v3130_v54, %v3130_v54  ;;  %v3004_v0 = vmul.f32 %v4194_v9, %v2890_v16  ;;  %v2782_v20 = vmul.f32 %v6072_v57, %v6072_v57 }
 0x352   : > { %v3093_v45 = vadd.f32 %v5838_v23, %v3048_v37  ;;  %v2819_v52 = vsub.f32 %v2743_v3, %v2781_v51  ;;  %v2690_v11 = vpop.xlane.xlu1 %2689  ;;  %v2893_v51 = vsub.f32 %v5697_v19, %v6042_v17 }
 0x353   : > { %v2503_v29 = vpop.xlane.xlu0 %2502  ;;  %4201 = vrsqrt.f32 %v2932_v53  ;;  %v2744_v10 = vmul.f32 0.015625, %v2690_v11  ;;  %3321 = vst.msk [vmem:[%s5855_s11 + $0x54] sm:$0xf] %vm3299_vm3, %v3589_v25  ;;  %v3049_v59 = vmul.f32 %v5831_v30, %v3004_v0 }
 0x354   : > { %v3131_v32 = vmax.f32 %v3093_v45, 0.0  ;;  %v2857_v49 = vmax.f32 %v2819_v52, 0.0  ;;  %v6082_v12 = vmul.f32 0.015625, %v2503_v29  ;;  %v2894_v52 = vsub.f32 %v5706_v5, %v6052_v4 }
 0x355   : > { %v4196_v1 = vpop.eup %4195  ;;  %v2820_v62 = vsub.f32 %v2744_v10, %v2782_v20  ;;  %v3094_v58 = vadd.f32 %v5838_v23, %v3049_v59 }
 0x356   : > { %v3590_v63 = vpack.c.bf16 %v3131_v32, %v3131_v32  ;;  %v3005_v44 = vmul.f32 %v4196_v1, %v2891_v22  ;;  %v2933_v38 = vadd.f32 1e-05, %v2857_v49  ;;  %v2783_v47 = vmul.f32 %v6082_v12, %v6082_v12  ;;  %v2506_v15 = vpop.xlane.xlu1 %2505 }
 0x357   : > { %v2693_v21 = vpop.xlane.xlu0 %2692  ;;  %v2858_v50 = vmax.f32 %v2820_v62, 0.0  ;;  %v3132_v42 = vmax.f32 %v3094_v58, 0.0  ;;  %v6092_v43 = vmul.f32 0.015625, %v2506_v15 }
 0x358   : > { %3322 = vst.msk [vmem:[%s5855_s11 + $0x58] sm:$0xf] %vm3299_vm3, %v3590_v63  ;;  %v3050_v26 = vmul.f32 %v5831_v30, %v3005_v44  ;;  %4203 = vrsqrt.f32 %v2933_v38  ;;  %v2745_v7 = vmul.f32 0.015625, %v2693_v21  ;;  %v4198_v31 = vpop.eup %4197  ;;  %v2895_v44 = vsub.f32 %v5715_v46, %v6061_v24 }
 0x359   : > { %v2934_v40 = vadd.f32 1e-05, %v2858_v50  ;;  %v3591_v14 = vpack.c.bf16 %v3132_v42, %v3132_v42  ;;  %v3006_v18 = vmul.f32 %v4198_v31, %v2892_v8  ;;  %v2784_v33 = vmul.f32 %v6092_v43, %v6092_v43 }
 0x35a   : > { %v3095_v56 = vadd.f32 %v5838_v23, %v3050_v26  ;;  %v2821_v2 = vsub.f32 %v2745_v7, %v2783_v47  ;;  %v2696_v61 = vpop.xlane.xlu1 %2695  ;;  %v2896_v31 = vsub.f32 %v5724_v55, %v6072_v57 }
 0x35b   : > { %v2509_v37 = vpop.xlane.xlu0 %2508  ;;  %4205 = vrsqrt.f32 %v2934_v40  ;;  %v2746_v6 = vmul.f32 0.015625, %v2696_v61  ;;  %3323 = vst.msk [vmem:[%s5855_s11 + $0x5c] sm:$0xf] %vm3299_vm3, %v3591_v14  ;;  %v3051_v54 = vmul.f32 %v5831_v30, %v3006_v18 }
 0x35c   : > { %v3133_v28 = vmax.f32 %v3095_v56, 0.0  ;;  %v2859_v27 = vmax.f32 %v2821_v2, 0.0  ;;  %v6102_v16 = vmul.f32 0.015625, %v2509_v37 }
 0x35d   : > { %v4200_v3 = vpop.eup %4199  ;;  %v2822_v17 = vsub.f32 %v2746_v6, %v2784_v33  ;;  %v3096_v53 = vadd.f32 %v5838_v23, %v3051_v54 }
 0x35e   : > { %v3592_v9 = vpack.c.bf16 %v3133_v28, %v3133_v28  ;;  %v3007_v45 = vmul.f32 %v4200_v3, %v2893_v51  ;;  %v2935_v19 = vadd.f32 1e-05, %v2859_v27  ;;  %v2785_v25 = vmul.f32 %v6102_v16, %v6102_v16  ;;  %v2512_v22 = vpop.xlane.xlu1 %2511 }
 0x35f   : > { %v2699_v0 = vpop.xlane.xlu0 %2698  ;;  %v2860_v11 = vmax.f32 %v2822_v17, 0.0  ;;  %v3134_v49 = vmax.f32 %v3096_v53, 0.0  ;;  %v6112_v10 = vmul.f32 0.015625, %v2512_v22 }
 0x360   : > { %3324 = vst.msk [vmem:[%s5855_s11 + $0x60] sm:$0xf] %vm3299_vm3, %v3592_v9  ;;  %v3052_v20 = vmul.f32 %v5831_v30, %v3007_v45  ;;  %4207 = vrsqrt.f32 %v2935_v19  ;;  %v2747_v29 = vmul.f32 0.015625, %v2699_v0  ;;  %v4202_v32 = vpop.eup %4201  ;;  %v2897_v45 = vsub.f32 %v5733_v39, %v6082_v12  ;;  %v6150_v12 = vld [vmem:[%s6219_s5] ss:$0 sm:$0xff] }
 0x361   : > { %v3008_v5 = vmul.f32 %v4202_v32, %v2894_v52  ;;  %v2936_v4 = vadd.f32 1e-05, %v2860_v11  ;;  %v3593_v63 = vpack.c.bf16 %v3134_v49, %v3134_v49  ;;  %v2786_v26 = vmul.f32 %v6112_v10, %v6112_v10 }
 0x362   : > { %v3097_v1 = vadd.f32 %v5838_v23, %v3052_v20  ;;  %v2823_v59 = vsub.f32 %v2747_v29, %v2785_v25  ;;  %v2702_v38 = vpop.xlane.xlu1 %2701 }
 0x363   : > { %v2515_v62 = vpop.xlane.xlu0 %2514  ;;  %v3053_v47 = vmul.f32 %v5831_v30, %v3008_v5  ;;  %4209 = vrsqrt.f32 %v2936_v4  ;;  %3325 = vst.msk [vmem:[%s5855_s11 + $0x64] sm:$0xf] %vm3299_vm3, %v3593_v63  ;;  %v2748_v50 = vmul.f32 0.015625, %v2702_v38 }
 0x364   : > { %v3135_v58 = vmax.f32 %v3097_v1, 0.0  ;;  %v2861_v21 = vmax.f32 %v2823_v59, 0.0  ;;  %v6122_v7 = vmul.f32 0.015625, %v2515_v62  ;;  %v2898_v1 = vsub.f32 %v5742_v60, %v6092_v43 }
 0x365   : > { %v4204_v15 = vpop.eup %4203  ;;  %v3098_v46 = vadd.f32 %v5838_v23, %v3053_v47  ;;  %v2824_v56 = vsub.f32 %v2748_v50, %v2786_v26  ;;  %v2899_v50 = vsub.f32 %v5751_v48, %v6102_v16  ;;  %v2900_v16 = vsub.f32 %v5760_v36, %v6112_v10 }
 0x366   : > { %v3594_v42 = vpack.c.bf16 %v3135_v58, %v3135_v58  ;;  %v3009_v24 = vmul.f32 %v4204_v15, %v2895_v44  ;;  %v2937_v8 = vadd.f32 1e-05, %v2861_v21  ;;  %v2787_v40 = vmul.f32 %v6122_v7, %v6122_v7  ;;  %v6162_v58 = vld [vmem:[%s6220_s6] ss:$0 sm:$0xff] }
 0x367   : > { %v2705_v2 = vpop.xlane.xlu0 %2704  ;;  %v3136_v14 = vmax.f32 %v3098_v46, 0.0  ;;  %v2518_v33 = vpop.xlane.xlu1 %2517  ;;  %v2862_v37 = vmax.f32 %v2824_v56, 0.0 }
 0x368   : > { %3326 = vst.msk [vmem:[%s5855_s11 + $0x68] sm:$0xf] %vm3299_vm3, %v3594_v42  ;;  %v3054_v18 = vmul.f32 %v5831_v30, %v3009_v24  ;;  %4211 = vrsqrt.f32 %v2937_v8  ;;  %v2749_v51 = vmul.f32 0.015625, %v2705_v2  ;;  %v4206_v61 = vpop.eup %4205  ;;  %v6132_v28 = vmul.f32 0.015625, %v2518_v33 }
 0x369   : > { %v3595_v27 = vpack.c.bf16 %v3136_v14, %v3136_v14  ;;  %v3010_v57 = vmul.f32 %v4206_v61, %v2896_v31  ;;  %v2938_v3 = vadd.f32 1e-05, %v2862_v37 }
 0x36a   : > { %v3099_v55 = vadd.f32 %v5838_v23, %v3054_v18  ;;  %v2825_v6 = vsub.f32 %v2749_v51, %v2787_v40  ;;  %v2788_v25 = vmul.f32 %v6132_v28, %v6132_v28 }
 0x36b   : > { %3327 = vst.msk [vmem:[%s5855_s11 + $0x6c] sm:$0xf] %vm3299_vm3, %v3595_v27  ;;  %v3055_v9 = vmul.f32 %v5831_v30, %v3010_v57  ;;  %v2708_v17 = vpop.xlane.xlu1 %2707  ;;  %v2521_v53 = vpop.xlane.xlu0 %2520  ;;  %4213 = vrsqrt.f32 %v2938_v3  ;;  %v2901_v3 = vsub.f32 %v5769_v41, %v6122_v7 }
 0x36c   : > { %v3137_v54 = vmax.f32 %v3099_v55, 0.0  ;;  %v2863_v19 = vmax.f32 %v2825_v6, 0.0  ;;  %v2750_v0 = vmul.f32 0.015625, %v2708_v17  ;;  %v6142_v22 = vmul.f32 0.015625, %v2521_v53 }
 0x36d   : > { %v4208_v52 = vpop.eup %4207  ;;  %v3100_v11 = vadd.f32 %v5838_v23, %v3055_v9  ;;  %v2902_v53 = vsub.f32 %v5780_v34, %v6132_v28 }
 0x36e   : > { %v3596_v20 = vpack.c.bf16 %v3137_v54, %v3137_v54  ;;  %v3011_v29 = vmul.f32 %v4208_v52, %v2897_v45  ;;  %v2939_v32 = vadd.f32 1e-05, %v2863_v19  ;;  %v2826_v30 = vsub.f32 %v2750_v0, %v2788_v25 }
 0x36f   : > { %v3138_v39 = vmax.f32 %v3100_v11, 0.0  ;;  %v2711_v5 = vpop.xlane.xlu0 %2710  ;;  %v2524_v23 = vpop.xlane.xlu1 %2523  ;;  %v2789_v63 = vmul.f32 %v6142_v22, %v6142_v22  ;;  %v2903_v11 = vsub.f32 %v5793_v13, %v6142_v22 }
 0x370   : > { %3328 = vst.msk [vmem:[%s5855_s11 + $0x70] sm:$0xf] %vm3299_vm3, %v3596_v20  ;;  %v3056_v49 = vmul.f32 %v6150_v12, %v3011_v29  ;;  %4215 = vrsqrt.f32 %v2939_v32  ;;  %v4210_v4 = vpop.eup %4209  ;;  %v2864_v59 = vmax.f32 %v2826_v30, 0.0  ;;  %v2751_v44 = vmul.f32 0.015625, %v2711_v5 }
 0x371   : > { %v6157_v38 = vmul.f32 0.015625, %v2524_v23  ;;  %v3597_v62 = vpack.c.bf16 %v3138_v39, %v3138_v39  ;;  %v3012_v60 = vmul.f32 %v4210_v4, %v2898_v1 }
 0x372   : > { %v3101_v47 = vadd.f32 %v6162_v58, %v3056_v49  ;;  %v2940_v43 = vadd.f32 1e-05, %v2864_v59  ;;  %v2827_v21 = vsub.f32 %v2751_v44, %v2789_v63 }
 0x373   : > { %3329 = vst.msk [vmem:[%s5855_s11 + $0x74] sm:$0xf] %vm3299_vm3, %v3597_v62  ;;  %v3057_v26 = vmul.f32 %v6150_v12, %v3012_v60  ;;  %v2714_v42 = vpop.xlane.xlu1 %2713  ;;  %v2790_v8 = vmul.f32 %v6157_v38, %v6157_v38  ;;  %v2904_v49 = vsub.f32 %v5806_v35, %v6157_v38 }
 0x374   : > { %v3139_v15 = vmax.f32 %v3101_v47, 0.0  ;;  %4217 = vrsqrt.f32 %v2940_v43  ;;  %v2865_v24 = vmax.f32 %v2827_v21, 0.0  ;;  %v2752_v31 = vmul.f32 0.015625, %v2714_v42 }
 0x375   : > { %v4212_v46 = vpop.eup %4211  ;;  %v3102_v40 = vadd.f32 %v6162_v58, %v3057_v26 }
 0x376   : > { %v3598_v56 = vpack.c.bf16 %v3139_v15, %v3139_v15  ;;  %v3013_v2 = vmul.f32 %v4212_v46, %v2899_v50  ;;  %v2941_v14 = vadd.f32 1e-05, %v2865_v24  ;;  %v2828_v18 = vsub.f32 %v2752_v31, %v2790_v8 }
 0x377   : > { %v3140_v51 = vmax.f32 %v3102_v40, 0.0 }
 0x378   : > { %3330 = vst.msk [vmem:[%s5855_s11 + $0x78] sm:$0xf] %vm3299_vm3, %v3598_v56  ;;  %v3058_v48 = vmul.f32 %v6150_v12, %v3013_v2  ;;  %4219 = vrsqrt.f32 %v2941_v14  ;;  %v2866_v33 = vmax.f32 %v2828_v18, 0.0  ;;  %v4214_v61 = vpop.eup %4213 }
 0x379   : > { %v3599_v37 = vpack.c.bf16 %v3140_v51, %v3140_v51  ;;  %v3014_v55 = vmul.f32 %v4214_v61, %v2900_v16 }
 0x37a   : > { %v3103_v27 = vadd.f32 %v6162_v58, %v3058_v48  ;;  %v2942_v57 = vadd.f32 1e-05, %v2866_v33 }
 0x37b   : > { %3331 = vst.msk [vmem:[%s5855_s11 + $0x7c] sm:$0xf] %vm3299_vm3, %v3599_v37  ;;  %v3059_v9 = vmul.f32 %v6150_v12, %v3014_v55 }
 0x37c   : > { %v3141_v6 = vmax.f32 %v3103_v27, 0.0  ;;  %4221 = vrsqrt.f32 %v2942_v57 }
 0x37d   : > { %v4216_v54 = vpop.eup %4215  ;;  %v3104_v45 = vadd.f32 %v6162_v58, %v3059_v9 }
 0x37e   : > { %v3600_v36 = vpack.c.bf16 %v3141_v6, %v3141_v6  ;;  %v3015_v10 = vmul.f32 %v4216_v54, %v2901_v3 }
 0x37f   : > { %v3142_v17 = vmax.f32 %v3104_v45, 0.0 }
 0x380   : > { %3332 = vst.msk [vmem:[%s5855_s11 + $0x80] sm:$0xf] %vm3299_vm3, %v3600_v36  ;;  %v3060_v19 = vmul.f32 %v6150_v12, %v3015_v10 }
 0x381   : > { %v4218_v52 = vpop.eup %4217  ;;  %v3601_v7 = vpack.c.bf16 %v3142_v17, %v3142_v17 }
 0x382   : > { %v3105_v41 = vadd.f32 %v6162_v58, %v3060_v19  ;;  %v3016_v25 = vmul.f32 %v4218_v52, %v2902_v53 }
 0x383   : > { %3333 = vst.msk [vmem:[%s5855_s11 + $0x84] sm:$0xf] %vm3299_vm3, %v3601_v7 }
 0x384   : > { %v3143_v0 = vmax.f32 %v3105_v41, 0.0  ;;  %v3061_v20 = vmul.f32 %v6150_v12, %v3016_v25 }
 0x385   : > { %v4220_v29 = vpop.eup %4219 }
 0x386   : > { %v3602_v32 = vpack.c.bf16 %v3143_v0, %v3143_v0  ;;  %v3106_v30 = vadd.f32 %v6162_v58, %v3061_v20  ;;  %v3017_v34 = vmul.f32 %v4220_v29, %v2903_v11 }
 0x388   : > { %3334 = vst.msk [vmem:[%s5855_s11 + $0x88] sm:$0xf] %vm3299_vm3, %v3602_v32  ;;  %v3144_v28 = vmax.f32 %v3106_v30, 0.0  ;;  %v3062_v39 = vmul.f32 %v6150_v12, %v3017_v34 }
 0x389   : > { %v4222_v1 = vpop.eup %4221 }
 0x38a   : > { %v3603_v5 = vpack.c.bf16 %v3144_v28, %v3144_v28  ;;  %v3107_v23 = vadd.f32 %v6162_v58, %v3062_v39  ;;  %v3018_v13 = vmul.f32 %v4222_v1, %v2904_v49 }
 0x38c   : > { %3335 = vst.msk [vmem:[%s5855_s11 + $0x8c] sm:$0xf] %vm3299_vm3, %v3603_v5  ;;  %v3145_v22 = vmax.f32 %v3107_v23, 0.0  ;;  %v3063_v4 = vmul.f32 %v6150_v12, %v3018_v13 }
 0x38e   : > { %v3604_v59 = vpack.c.bf16 %v3145_v22, %v3145_v22  ;;  %v3108_v63 = vadd.f32 %v6162_v58, %v3063_v4 }
 0x390   : > { %3336 = vst.msk [vmem:[%s5855_s11 + $0x90] sm:$0xf] %vm3299_vm3, %v3604_v59  ;;  %v3146_v44 = vmax.f32 %v3108_v63, 0.0 }
 0x392   : > { %v3605_v62 = vpack.c.bf16 %v3146_v44, %v3146_v44 }
 0x394   : > { %3337 = vst.msk [vmem:[%s5855_s11 + $0x94] sm:$0xf] %vm3299_vm3, %v3605_v62 }
 0x395 PF: > { %s17_s24 = sadd.s32 1, %s4233_s24  }
 0x396   : > { %p14_p4 = scmp.ge.s32.totalorder %s17_s24, 4  }
 0x398   :  { %16 = sbr.rel (!%p14_p4) target bundleno = 1 (0x1), region = 80 }

</bundles_post_ra>
